<compile_context>
chip_gen: v7x
topology: tpu7x:2x2x1
jax: 0.10.0
libtpu: 0.0.40
codegen_flags: <defaults>
</compile_context>

<pallas_src>
import functools

import jax
import jax.numpy as jnp
from jax.experimental import pallas as pl
from jax.experimental.pallas import tpu as pltpu

IN_F = 3072     # 3 * 32 * 32
H1 = 512
H2 = 64
OUT = 13
H2_PAD = 128    # lane-dense padding for layer-2 output
OUT_PAD = 128   # lane-dense padding for the logits


def _round_up(x, m):
    return (x + m - 1) // m * m


def _mlp_kernel(x_ref, w1_ref, b1_ref, w2_ref, b2_ref, w3_ref, b3_ref, o_ref):
    # Layer 1: (TB, 3072) @ (3072, 512) + (1, 512) -> ReLU   (bf16 in, f32 acc)
    h1 = jnp.dot(x_ref[...], w1_ref[...], preferred_element_type=jnp.float32)
    h1 = jnp.maximum(h1 + b1_ref[...], 0.0)
    # Layer 2: (TB, 512) @ (512, 128) + (1, 128) -> ReLU
    h2 = jnp.dot(h1.astype(jnp.bfloat16), w2_ref[...],
                 preferred_element_type=jnp.float32)
    h2 = jnp.maximum(h2 + b2_ref[...], 0.0)
    # Layer 3: (TB, 128) @ (128, 128) + (1, 128)   (columns >= 13 are zero)
    out = jnp.dot(h2.astype(jnp.bfloat16), w3_ref[...],
                  preferred_element_type=jnp.float32)
    o_ref[...] = (out + b3_ref[...]).astype(o_ref.dtype)


def prepare_params(params):
    """One-time parameter prep: transpose, zero-pad to lane width, cast to bf16.

    Do this at parameter-load time, NOT per forward call, so no per-step
    transpose/cast kernels hit HBM.
    """
    w1t = params["w1"].T.astype(jnp.bfloat16)                      # (3072, 512)
    w2t = jnp.zeros((H1, H2_PAD), jnp.float32)
    w2t = w2t.at[:, :H2].set(params["w2"].T).astype(jnp.bfloat16)  # (512, 128)
    w3t = jnp.zeros((H2_PAD, OUT_PAD), jnp.float32)
    w3t = w3t.at[:H2, :OUT].set(params["w3"].T).astype(jnp.bfloat16)  # (128,128)
    b1 = params["b1"].reshape(1, H1).astype(jnp.float32)
    b2 = jnp.zeros((1, H2_PAD), jnp.float32).at[:, :H2].set(params["b2"])
    b3 = jnp.zeros((1, OUT_PAD), jnp.float32).at[:, :OUT].set(params["b3"])
    return (w1t, b1, w2t, b2, w3t, b3)


def neural_network_forward(tensor_image, prepared):
    """Pallas implementation of NeuralNetwork.forward.

    tensor_image: (B, 3, 32, 32) float32 (NCHW, as in PyTorch).
    prepared: output of prepare_params(params).
    """
    w1t, b1, w2t, b2, w3t, b3 = prepared
    B = tensor_image.shape[0]
    # nn.Flatten(): flatten everything but the batch dim, row-major.
    x = tensor_image.reshape(B, -1).astype(jnp.bfloat16)  # (B, 3072)

    # Batch tile: 256 rows (sized for v5e's 16 MiB scoped VMEM and v7x's
    # 64 MiB physical VMEM); small batches use one sublane-aligned tile.
    tile_b = min(256, _round_up(B, 8))
    b_pad = _round_up(B, tile_b)
    if b_pad != B:
        x = jnp.pad(x, ((0, b_pad - B), (0, 0)))
    grid = (b_pad // tile_b,)

    weights = (w1t, b1, w2t, b2, w3t, b3)
    flops = 2 * b_pad * (IN_F * H1 + H1 * H2_PAD + H2_PAD * OUT_PAD)
    bytes_accessed = (
        x.size * x.dtype.itemsize
        + sum(a.size * a.dtype.itemsize for a in weights)
        + b_pad * OUT_PAD * 4)

    out = pl.pallas_call(
        _mlp_kernel,
        out_shape=jax.ShapeDtypeStruct((b_pad, OUT_PAD), jnp.float32),
        grid=grid,
        in_specs=[
            pl.BlockSpec((tile_b, IN_F), lambda i: (i, 0)),   # x: tiled on B
            pl.BlockSpec((IN_F, H1), lambda i: (0, 0)),       # w1: resident
            pl.BlockSpec((1, H1), lambda i: (0, 0)),          # b1
            pl.BlockSpec((H1, H2_PAD), lambda i: (0, 0)),     # w2
            pl.BlockSpec((1, H2_PAD), lambda i: (0, 0)),      # b2
            pl.BlockSpec((H2_PAD, OUT_PAD), lambda i: (0, 0)),  # w3
            pl.BlockSpec((1, OUT_PAD), lambda i: (0, 0)),     # b3
        ],
        out_specs=pl.BlockSpec((tile_b, OUT_PAD), lambda i: (i, 0)),
        compiler_params=pltpu.CompilerParams(
            dimension_semantics=("parallel",),
            vmem_limit_bytes=32 * 1024 * 1024,
        ),
        cost_estimate=pl.CostEstimate(
            flops=flops, transcendentals=0, bytes_accessed=bytes_accessed),
    )(x, *weights)

    # Drop batch padding and the zero-padded logit columns.
    return out[:B, :OUT]


def init_params(key):
    """Deterministic PyTorch-style (uniform +/- 1/sqrt(fan_in)) init."""
    dims = [(H1, IN_F), (H2, H1), (OUT, H2)]
    params = {}
    for i, (out_f, in_f) in enumerate(dims, start=1):
        key, kw, kb = jax.random.split(key, 3)
        bound = 1.0 / (in_f ** 0.5)
        params[f"w{i}"] = jax.random.uniform(
            kw, (out_f, in_f), jnp.float32, minval=-bound, maxval=bound)
        params[f"b{i}"] = jax.random.uniform(
            kb, (out_f,), jnp.float32, minval=-bound, maxval=bound)
    return params


def _reference_forward(tensor_image, params):
    """f32 reference mirroring the kernel's bf16-quantized matmul inputs."""
    bf = lambda a: a.astype(jnp.bfloat16).astype(jnp.float32)
    x = bf(tensor_image.reshape(tensor_image.shape[0], -1))
    h = jnp.maximum(x @ bf(params["w1"].T) + params["b1"], 0.0)
    h = jnp.maximum(bf(h) @ bf(params["w2"].T) + params["b2"], 0.0)
    return bf(h) @ bf(params["w3"].T) + params["b3"]


if __name__ == "__main__":
    key = jax.random.PRNGKey(0)
    key, k_img = jax.random.split(key)
    # Small batch; spatial/channel shape implied by Linear(3072, ...): 3*32*32.
    x = jax.random.normal(k_img, (2, 3, 32, 32), jnp.float32)
    params = init_params(key)
    prepared = prepare_params(params)

    logits = neural_network_forward(x, prepared)
    jax.block_until_ready(logits)

    ref = _reference_forward(x, params)
    assert logits.shape == (2, OUT)
    assert jnp.allclose(logits, ref, atol=2e-3, rtol=2e-3)
    print("KERNEL_OK")
</pallas_src>

<mosaic_0001>
module attributes {stable_mosaic.version = 11 : i64} {
  func.func @_mlp_kernel(%arg0: i32, %arg1: memref<8x3072xbf16, #tpu.memory_space<vmem>>, %arg2: memref<3072x512xbf16, #tpu.memory_space<vmem>>, %arg3: memref<1x512xf32, #tpu.memory_space<vmem>>, %arg4: memref<512x128xbf16, #tpu.memory_space<vmem>>, %arg5: memref<1x128xf32, #tpu.memory_space<vmem>>, %arg6: memref<128x128xbf16, #tpu.memory_space<vmem>>, %arg7: memref<1x128xf32, #tpu.memory_space<vmem>>, %arg8: memref<8x128xf32, #tpu.memory_space<vmem>>) attributes {dimension_semantics = [#tpu.dimension_semantics<parallel>], iteration_bounds = array<i64: 1>, scalar_prefetch = 0 : i64, scratch_operands = 0 : i64, tpu.core_type = #tpu.core_type<tc>, window_params = [{transform_indices = @transform_0, window_bounds = array<i64: 8, 3072>}, {pipeline_mode = #tpu.pipeline_mode<synchronous>, transform_indices = @transform_1, window_bounds = array<i64: 3072, 512>}, {pipeline_mode = #tpu.pipeline_mode<synchronous>, transform_indices = @transform_2, window_bounds = array<i64: 1, 512>}, {pipeline_mode = #tpu.pipeline_mode<synchronous>, transform_indices = @transform_3, window_bounds = array<i64: 512, 128>}, {pipeline_mode = #tpu.pipeline_mode<synchronous>, transform_indices = @transform_4, window_bounds = array<i64: 1, 128>}, {pipeline_mode = #tpu.pipeline_mode<synchronous>, transform_indices = @transform_5, window_bounds = array<i64: 128, 128>}, {pipeline_mode = #tpu.pipeline_mode<synchronous>, transform_indices = @transform_6, window_bounds = array<i64: 1, 128>}, {transform_indices = @transform_7, window_bounds = array<i64: 8, 128>}]} {
    %c0 = arith.constant 0 : index
    %c0_0 = arith.constant 0 : index
    %0 = vector.load %arg1[%c0, %c0_0] : memref<8x3072xbf16, #tpu.memory_space<vmem>>, vector<8x3072xbf16>
    %c0_1 = arith.constant 0 : index
    %c0_2 = arith.constant 0 : index
    %1 = vector.load %arg2[%c0_1, %c0_2] : memref<3072x512xbf16, #tpu.memory_space<vmem>>, vector<3072x512xbf16>
    %cst = arith.constant dense<0.000000e+00> : vector<8x512xf32>
    %2 = tpu.matmul %0, %1, %cst {dimension_numbers = #tpu.dot_dimension_numbers<[1], [0], [0], [1], [0, 0, 1, 1], [], []>} : vector<8x3072xbf16>, vector<3072x512xbf16>, vector<8x512xf32> -> vector<8x512xf32>
    %c0_3 = arith.constant 0 : index
    %c0_4 = arith.constant 0 : index
    %3 = vector.load %arg3[%c0_3, %c0_4] : memref<1x512xf32, #tpu.memory_space<vmem>>, vector<1x512xf32>
    %4 = vector.broadcast %3 : vector<1x512xf32> to vector<8x512xf32>
    %5 = arith.addf %2, %4 : vector<8x512xf32>
    %cst_5 = arith.constant 0.000000e+00 : f32
    %6 = vector.broadcast %cst_5 : f32 to vector<8x512xf32>
    %7 = arith.maximumf %5, %6 : vector<8x512xf32>
    %8 = arith.truncf %7 : vector<8x512xf32> to vector<8x512xbf16>
    %c0_6 = arith.constant 0 : index
    %c0_7 = arith.constant 0 : index
    %9 = vector.load %arg4[%c0_6, %c0_7] : memref<512x128xbf16, #tpu.memory_space<vmem>>, vector<512x128xbf16>
    %cst_8 = arith.constant dense<0.000000e+00> : vector<8x128xf32>
    %10 = tpu.matmul %8, %9, %cst_8 {dimension_numbers = #tpu.dot_dimension_numbers<[1], [0], [0], [1], [0, 0, 1, 1], [], []>} : vector<8x512xbf16>, vector<512x128xbf16>, vector<8x128xf32> -> vector<8x128xf32>
    %c0_9 = arith.constant 0 : index
    %c0_10 = arith.constant 0 : index
    %11 = vector.load %arg5[%c0_9, %c0_10] : memref<1x128xf32, #tpu.memory_space<vmem>>, vector<1x128xf32>
    %12 = vector.broadcast %11 : vector<1x128xf32> to vector<8x128xf32>
    %13 = arith.addf %10, %12 : vector<8x128xf32>
    %cst_11 = arith.constant 0.000000e+00 : f32
    %14 = vector.broadcast %cst_11 : f32 to vector<8x128xf32>
    %15 = arith.maximumf %13, %14 : vector<8x128xf32>
    %16 = arith.truncf %15 : vector<8x128xf32> to vector<8x128xbf16>
    %c0_12 = arith.constant 0 : index
    %c0_13 = arith.constant 0 : index
    %17 = vector.load %arg6[%c0_12, %c0_13] : memref<128x128xbf16, #tpu.memory_space<vmem>>, vector<128x128xbf16>
    %cst_14 = arith.constant dense<0.000000e+00> : vector<8x128xf32>
    %18 = tpu.matmul %16, %17, %cst_14 {dimension_numbers = #tpu.dot_dimension_numbers<[1], [0], [0], [1], [0, 0, 1, 1], [], []>} : vector<8x128xbf16>, vector<128x128xbf16>, vector<8x128xf32> -> vector<8x128xf32>
    %c0_15 = arith.constant 0 : index
    %c0_16 = arith.constant 0 : index
    %19 = vector.load %arg7[%c0_15, %c0_16] : memref<1x128xf32, #tpu.memory_space<vmem>>, vector<1x128xf32>
    %20 = vector.broadcast %19 : vector<1x128xf32> to vector<8x128xf32>
    %21 = arith.addf %18, %20 : vector<8x128xf32>
    %c0_17 = arith.constant 0 : index
    %c0_18 = arith.constant 0 : index
    %22 = vector.load %arg8[%c0_17, %c0_18] : memref<8x128xf32, #tpu.memory_space<vmem>>, vector<8x128xf32>
    tpu.vector_store %arg8[%c0_17, %c0_18], %21 {strides = array<i32>} : memref<8x128xf32, #tpu.memory_space<vmem>>, vector<8x128xf32>,
    return
  }
  func.func @transform_0(%arg0: i32) -> (i32, i32) {
    %c0_i32 = arith.constant 0 : i32
    %c0_i32_0 = arith.constant 0 : i32
    return %arg0, %c0_i32 : i32, i32
  }
  func.func @transform_1(%arg0: i32) -> (i32, i32) {
    %c0_i32 = arith.constant 0 : i32
    %c0_i32_0 = arith.constant 0 : i32
    %c0_i32_1 = arith.constant 0 : i32
    return %c0_i32, %c0_i32_0 : i32, i32
  }
  func.func @transform_2(%arg0: i32) -> (i32, i32) {
    %c0_i32 = arith.constant 0 : i32
    %c0_i32_0 = arith.constant 0 : i32
    %c0_i32_1 = arith.constant 0 : i32
    return %c0_i32, %c0_i32_0 : i32, i32
  }
  func.func @transform_3(%arg0: i32) -> (i32, i32) {
    %c0_i32 = arith.constant 0 : i32
    %c0_i32_0 = arith.constant 0 : i32
    %c0_i32_1 = arith.constant 0 : i32
    return %c0_i32, %c0_i32_0 : i32, i32
  }
  func.func @transform_4(%arg0: i32) -> (i32, i32) {
    %c0_i32 = arith.constant 0 : i32
    %c0_i32_0 = arith.constant 0 : i32
    %c0_i32_1 = arith.constant 0 : i32
    return %c0_i32, %c0_i32_0 : i32, i32
  }
  func.func @transform_5(%arg0: i32) -> (i32, i32) {
    %c0_i32 = arith.constant 0 : i32
    %c0_i32_0 = arith.constant 0 : i32
    %c0_i32_1 = arith.constant 0 : i32
    return %c0_i32, %c0_i32_0 : i32, i32
  }
  func.func @transform_6(%arg0: i32) -> (i32, i32) {
    %c0_i32 = arith.constant 0 : i32
    %c0_i32_0 = arith.constant 0 : i32
    %c0_i32_1 = arith.constant 0 : i32
    return %c0_i32, %c0_i32_0 : i32, i32
  }
  func.func @transform_7(%arg0: i32) -> (i32, i32) {
    %c0_i32 = arith.constant 0 : i32
    %c0_i32_0 = arith.constant 0 : i32
    return %arg0, %c0_i32 : i32, i32
  }
}

</mosaic_0001>

<bundles_post_ra>
// kernel: tpu_custom_call.1
= control target key start
LH: loop header
LB: loop body
LE: loop exit
PB: predicated region body
PF: predicated region fallthrough
CT: control target
= control target key end

     0   :  { %12 = vsyncpa [#allocation3], 0  ;;  %s8939_s0 = inlined_call_operand.hbm [shape: bf16[8,3072], index: 0, kind: input, shape index: {}]   ;;  %s8940_s1 = inlined_call_operand.hbm [shape: bf16[3072,512], index: 1, kind: input, shape index: {}]   ;;  %s8941_s2 = inlined_call_operand.hbm [shape: f32[1,512], index: 2, kind: input, shape index: {}]   ;;  %s8942_s3 = inlined_call_operand.hbm [shape: bf16[512,128], index: 3, kind: input, shape index: {}]   ;;  %s8943_s4 = inlined_call_operand.hbm [shape: f32[1,128], index: 4, kind: input, shape index: {}]   ;;  %s8944_s5 = inlined_call_operand.hbm [shape: bf16[128,128], index: 5, kind: input, shape index: {}]   ;;  %s8945_s6 = inlined_call_operand.hbm [shape: f32[1,128], index: 6, kind: input, shape index: {}]   ;;  %s8946_s7 = inlined_call_operand.hbm [shape: f32[8,128], index: 7, kind: output, shape index: {}]  }
   0x1   :  { %13 = vsyncpa [#allocation6], 0 }
   0x2   :  { %14 = vsyncpa [#allocation9], 0 }
   0x3   :  { %15 = vsyncpa [#allocation12], 0 }
   0x4   :  { %16 = vsyncpa [#allocation4], 0  ;;  %s8723_s24 = smov [#allocation5]   ;;  %s8537_s28 = scalar_lea.hbm %s8940_s1, 98304 }
   0x5   :  { %s32_s25 = sshll.u32 %s8723_s24, 4  ;;  %p8538_p0 = scmp.ne.s32.totalorder %s8940_s1, %s8537_s28  ;;  %s33_s25 = int_to_ptr.vmem [resolvable:$true] %s32_s25 }
   0x6   :  { %p8541_p1 = scmp.lt.u32.totalorder %s8537_s28, %s8940_s1 }
   0x8   :  { %p8543_p2 = pnand %p8541_p1, %p8538_p0 }
   0xa   :  { %8546 = shalt.err (!%p8543_p2)
}
   0xb   :  { %s8547_s10 = scalar_lea.vmem %s33_s25, 98304  ;;  %p8552_p4 = scmp.lt.s32.totalorder %s33_s25, %s33_s25 }
   0xc   :  { %p8548_p3 = scmp.ne.s32.totalorder %s33_s25, %s8547_s10  ;;  %p8553_p5 = scmp.lt.s32.totalorder %s8547_s10, %s8547_s10 }
   0xe   :  { %p8554_p6 = por %p8553_p5, %p8552_p4 }
  0x10   :  { %p8555_p7 = pnand %p8554_p6, %p8548_p3 }
  0x12   :  { %8558 = shalt.err (!%p8555_p7)
}
  0x13   :  { %s8724_s11 = smov 256   ;;  %s8725_s12 = smov 16  }
  0x14   :  { %38 = dma.hbm_to_vmem [thread:$0]  %s8940_s1, 98304, %s33_s25, [#allocation6], %s8724_s11, %s8724_s11, %s8725_s12  }
  0x15   :  { %s8726_s15 = smov [#allocation8]   ;;  %s8559_s19 = scalar_lea.hbm %s8942_s3, 4096 }
  0x16   :  { %s54_s16 = sshll.u32 %s8726_s15, 4  ;;  %p8560_p8 = scmp.ne.s32.totalorder %s8942_s3, %s8559_s19  ;;  %s55_s16 = int_to_ptr.vmem [resolvable:$true] %s54_s16 }
  0x17   :  { %p8563_p9 = scmp.lt.u32.totalorder %s8559_s19, %s8942_s3 }
  0x19   :  { %p8565_p10 = pnand %p8563_p9, %p8560_p8 }
  0x1b   :  { %8568 = shalt.err (!%p8565_p10)
}
  0x1c   :  { %s8569_s24 = scalar_lea.vmem %s55_s16, 4096  ;;  %p8574_p12 = scmp.lt.s32.totalorder %s55_s16, %s55_s16 }
  0x1d   :  { %p8570_p11 = scmp.ne.s32.totalorder %s55_s16, %s8569_s24  ;;  %p8575_p13 = scmp.lt.s32.totalorder %s8569_s24, %s8569_s24 }
  0x1f   :  { %p8576_p0 = por %p8575_p13, %p8574_p12 }
  0x21   :  { %p8577_p1 = pnand %p8576_p0, %p8570_p11 }
  0x23   :  { %8580 = shalt.err (!%p8577_p1)
}
  0x24   :  { %s8727_s1 = smov 64   ;;  %s8728_s25 = smov 4  }
  0x25   :  { %60 = dma.hbm_to_vmem [thread:$0]  %s8942_s3, 4096, %s55_s16, [#allocation9], %s8727_s1, %s8727_s1, %s8728_s25  }
  0x26   :  { %s8729_s28 = smov [#allocation11]   ;;  %s8730_s30 = smov [#allocation2]  }
  0x27   :  { %s76_s29 = sshll.u32 %s8729_s28, 4  ;;  %s23_s8 = sshll.u32 %s8730_s30, 4  ;;  %s77_s29 = int_to_ptr.vmem [resolvable:$true] %s76_s29  ;;  %s24_s8 = int_to_ptr.vmem [resolvable:$true] %s23_s8 }
  0x28   :  { %s8581_s11 = scalar_lea.hbm %s8944_s5, 1024 }
  0x29   :  { %p8582_p2 = scmp.ne.s32.totalorder %s8944_s5, %s8581_s11  ;;  %p8585_p3 = scmp.lt.u32.totalorder %s8581_s11, %s8944_s5 }
  0x2b   :  { %p8587_p4 = pnand %p8585_p3, %p8582_p2 }
  0x2d   :  { %8590 = shalt.err (!%p8587_p4)
}
  0x2e   :  { %s8591_s3 = scalar_lea.vmem %s77_s29, 1024  ;;  %p8596_p6 = scmp.lt.s32.totalorder %s77_s29, %s77_s29 }
  0x2f   :  { %p8592_p5 = scmp.ne.s32.totalorder %s77_s29, %s8591_s3  ;;  %p8597_p7 = scmp.lt.s32.totalorder %s8591_s3, %s8591_s3 }
  0x31   :  { %p8598_p8 = por %p8597_p7, %p8596_p6 }
  0x33   :  { %p8599_p9 = pnand %p8598_p8, %p8592_p5 }
  0x35   :  { %8602 = shalt.err (!%p8599_p9)
}
  0x36   :  { %82 = dma.hbm_to_vmem [thread:$0]  %s8944_s5, 1024, %s77_s29, [#allocation12], %s8727_s1, %s8727_s1, %s8728_s25  }
  0x37   :  { %s8603_s20 = scalar_lea.hbm %s8939_s0, 1536 }
  0x38   :  { %p8604_p10 = scmp.ne.s32.totalorder %s8939_s0, %s8603_s20  ;;  %p8607_p11 = scmp.lt.u32.totalorder %s8603_s20, %s8939_s0 }
  0x3a   :  { %p8609_p12 = pnand %p8607_p11, %p8604_p10 }
  0x3c   :  { %8612 = shalt.err (!%p8609_p12)
}
  0x3d   :  { %s8613_s26 = scalar_lea.vmem %s24_s8, 1536  ;;  %p8618_p0 = scmp.lt.s32.totalorder %s24_s8, %s24_s8 }
  0x3e   :  { %p8614_p13 = scmp.ne.s32.totalorder %s24_s8, %s8613_s26  ;;  %p8619_p1 = scmp.lt.s32.totalorder %s8613_s26, %s8613_s26 }
  0x40   :  { %p8620_p2 = por %p8619_p1, %p8618_p0 }
  0x42   :  { %p8621_p3 = pnand %p8620_p2, %p8614_p13 }
  0x44   :  { %8624 = shalt.err (!%p8621_p3)
}
  0x45   :  { %26 = dma.hbm_to_vmem [thread:$0]  %s8939_s0, 1536, %s24_s8, [#allocation3]  }
  0x46   :  { %s8731_s25 = smov [#allocation7]   ;;  %s8732_s28 = smov [#allocation10]  }
  0x47   :  { %s45_s27 = sshll.u32 %s8731_s25, 4  ;;  %s67_s29 = sshll.u32 %s8732_s28, 4  ;;  %s46_s27 = int_to_ptr.vmem [resolvable:$true] %s45_s27  ;;  %s68_s29 = int_to_ptr.vmem [resolvable:$true] %s67_s29 }
  0x48   :  { %s8625_s10 = scalar_lea.hbm %s8941_s2, 64 }
  0x49   :  { %p8626_p4 = scmp.ne.s32.totalorder %s8941_s2, %s8625_s10  ;;  %p8629_p5 = scmp.lt.u32.totalorder %s8625_s10, %s8941_s2 }
  0x4b   :  { %p8631_p6 = pnand %p8629_p5, %p8626_p4 }
  0x4d   :  { %8634 = shalt.err (!%p8631_p6)
}
  0x4e   :  { %s8635_s0 = scalar_lea.vmem %s46_s27, 64  ;;  %p8640_p8 = scmp.lt.s32.totalorder %s46_s27, %s46_s27 }
  0x4f   :  { %p8636_p7 = scmp.ne.s32.totalorder %s46_s27, %s8635_s0  ;;  %p8641_p9 = scmp.lt.s32.totalorder %s8635_s0, %s8635_s0 }
  0x51   :  { %p8642_p10 = por %p8641_p9, %p8640_p8 }
  0x53   :  { %p8643_p11 = pnand %p8642_p10, %p8636_p7 }
  0x55   :  { %8646 = shalt.err (!%p8643_p11)
}
  0x56   :  { %48 = dma.hbm_to_vmem [thread:$0]  %s8941_s2, 64, %s46_s27, [#allocation6]  }
  0x57   :  { %s8647_s17 = scalar_lea.hbm %s8943_s4, 16 }
  0x58   :  { %p8648_p12 = scmp.ne.s32.totalorder %s8943_s4, %s8647_s17  ;;  %p8651_p13 = scmp.lt.u32.totalorder %s8647_s17, %s8943_s4 }
  0x5a   :  { %p8653_p0 = pnand %p8651_p13, %p8648_p12 }
  0x5c   :  { %8656 = shalt.err (!%p8653_p0)
}
  0x5d   :  { %s8657_s22 = scalar_lea.vmem %s68_s29, 16  ;;  %s8661_s23 = scalar_lea.vmem %s68_s29, 32 }
  0x5e   :  { %p8658_p1 = scmp.ne.s32.totalorder %s68_s29, %s8657_s22  ;;  %p8662_p2 = scmp.lt.s32.totalorder %s68_s29, %s68_s29 }
  0x5f   :  { %p8663_p3 = scmp.lt.s32.totalorder %s8661_s23, %s8657_s22 }
  0x61   :  { %p8664_p4 = por %p8663_p3, %p8662_p2 }
  0x63   :  { %p8665_p5 = pnand %p8664_p4, %p8658_p1 }
  0x65   :  { %8668 = shalt.err (!%p8665_p5)
}
  0x66   :  { %70 = dma.hbm_to_vmem [thread:$0]  %s8943_s4, 16, %s68_s29, [#allocation9]  }
  0x67   :  { %s8733_s26 = smov [#allocation13]   ;;  %s8669_s27 = scalar_lea.hbm %s8945_s6, 16 }
  0x68   :  { %s89_s5 = sshll.u32 %s8733_s26, 4  ;;  %p8670_p6 = scmp.ne.s32.totalorder %s8945_s6, %s8669_s27  ;;  %s90_s5 = int_to_ptr.vmem [resolvable:$true] %s89_s5 }
  0x69   :  { %p8673_p7 = scmp.lt.u32.totalorder %s8669_s27, %s8945_s6 }
  0x6b   :  { %p8675_p8 = pnand %p8673_p7, %p8670_p6 }
  0x6d   :  { %8678 = shalt.err (!%p8675_p8)
}
  0x6e   :  { %s8679_s11 = scalar_lea.vmem %s90_s5, 16  ;;  %s8683_s4 = scalar_lea.vmem %s90_s5, 32 }
  0x6f   :  { %p8680_p9 = scmp.ne.s32.totalorder %s90_s5, %s8679_s11  ;;  %p8684_p10 = scmp.lt.s32.totalorder %s90_s5, %s90_s5 }
  0x70   :  { %p8685_p11 = scmp.lt.s32.totalorder %s8683_s4, %s8679_s11 }
  0x72   :  { %p8686_p12 = por %p8685_p11, %p8684_p10 }
  0x74   :  { %p8687_p13 = pnand %p8686_p12, %p8680_p9 }
  0x76   :  { %8690 = shalt.err (!%p8687_p13)
}
  0x77   :  { %92 = dma.hbm_to_vmem [thread:$0]  %s8945_s6, 16, %s90_s5, [#allocation12]  }
  0x78   :  { %8713 = dma.done.wait [#allocation3], 1536  }
  0x79   :  { %8714 = vsyncadd [#allocation3], 4294965760 }
  0x7a   :  { %8715 = dma.done.wait [#allocation6], 98368  }
  0x7b   :  { %8716 = vsyncadd [#allocation6], 4294868928 }
  0x7c   :  { %8717 = dma.done.wait [#allocation9], 4112  }
  0x7d   :  { %8718 = vsyncadd [#allocation9], 4294963184 }
  0x7e   :  { %8719 = dma.done.wait [#allocation12], 1040  }
  0x7f   :  { %8720 = vsyncadd [#allocation12], 4294966256  ;;  %v7321_v0 = vld [vmem:[#allocation5 + $0x4] ss:$16 sps:$4 sm:$0xff]   ;;  %v7323_v1 = vld [vmem:[#allocation5 + $0xc] ss:$16 sps:$4 sm:$0xff]  }
  0x80   :  { %4841 = vmatprep.subr.bf16.mxu0 %v7321_v0  ;;  %v7325_v2 = vld [vmem:[#allocation5] ss:$16 sps:$4 sm:$0xff]   ;;  %v7326_v3 = vld [vmem:[#allocation5 + $0x8] ss:$16 sps:$4 sm:$0xff]   ;;  %5333 = vmatprep.subr.bf16.mxu1 %v7323_v1  ;;  %v7327_v4 = vld [vmem:[#allocation5 + $0x24] ss:$16 sps:$4 sm:$0xff]  }
  0x81   :  { %4842 = vmatpush1.bf16.msra.mxu0 %v7325_v2  ;;  %5334 = vmatpush1.bf16.msra.mxu1 %v7326_v3  ;;  %v7329_v5 = vld [vmem:[#allocation5 + $0x2c] ss:$16 sps:$4 sm:$0xff]   ;;  %v7331_v6 = vld [vmem:[#allocation5 + $0x20] ss:$16 sps:$4 sm:$0xff]   ;;  %v7332_v7 = vld [vmem:[#allocation5 + $0x28] ss:$16 sps:$4 sm:$0xff]  }
  0x82   :  { %4843 = vmatprep.subr.bf16.mxu0 %v7327_v4  ;;  %5335 = vmatprep.subr.bf16.mxu1 %v7329_v5  ;;  %v7333_v8 = vld [vmem:[#allocation5 + $0x44] ss:$16 sps:$4 sm:$0xff]   ;;  %v7335_v9 = vld [vmem:[#allocation5 + $0x4c] ss:$16 sps:$4 sm:$0xff]   ;;  %v7337_v10 = vld [vmem:[#allocation5 + $0x40] ss:$16 sps:$4 sm:$0xff]  }
  0x83   :  { %v7338_v11 = vld [vmem:[#allocation5 + $0x48] ss:$16 sps:$4 sm:$0xff]   ;;  %v7339_v12 = vld [vmem:[#allocation5 + $0x64] ss:$16 sps:$4 sm:$0xff]   ;;  %v7341_v13 = vld [vmem:[#allocation5 + $0x6c] ss:$16 sps:$4 sm:$0xff]  }
  0x84   :  { %v7343_v14 = vld [vmem:[#allocation5 + $0x60] ss:$16 sps:$4 sm:$0xff]   ;;  %v7344_v15 = vld [vmem:[#allocation5 + $0x68] ss:$16 sps:$4 sm:$0xff]   ;;  %v7345_v16 = vld [vmem:[#allocation5 + $0x84] ss:$16 sps:$4 sm:$0xff]  }
  0x85   :  { %4844 = vmatpush1.bf16.msra.mxu0 %v7331_v6  ;;  %5336 = vmatpush1.bf16.msra.mxu1 %v7332_v7  ;;  %v7347_v17 = vld [vmem:[#allocation5 + $0x8c] ss:$16 sps:$4 sm:$0xff]   ;;  %v7349_v18 = vld [vmem:[#allocation5 + $0x80] ss:$16 sps:$4 sm:$0xff]   ;;  %v7350_v19 = vld [vmem:[#allocation5 + $0x88] ss:$16 sps:$4 sm:$0xff]  }
  0x86   :  { %4845 = vmatprep.subr.bf16.mxu0 %v7333_v8  ;;  %5337 = vmatprep.subr.bf16.mxu1 %v7335_v9  ;;  %v7351_v20 = vld [vmem:[#allocation5 + $0xa4] ss:$16 sps:$4 sm:$0xff]   ;;  %v7353_v21 = vld [vmem:[#allocation5 + $0xac] ss:$16 sps:$4 sm:$0xff]   ;;  %v7355_v22 = vld [vmem:[#allocation5 + $0xa0] ss:$16 sps:$4 sm:$0xff]  }
  0x87   :  { %v7356_v23 = vld [vmem:[#allocation5 + $0xa8] ss:$16 sps:$4 sm:$0xff]   ;;  %v7357_v24 = vld [vmem:[#allocation5 + $0xc4] ss:$16 sps:$4 sm:$0xff]   ;;  %v7359_v25 = vld [vmem:[#allocation5 + $0xcc] ss:$16 sps:$4 sm:$0xff]  }
  0x88   :  { %v7361_v26 = vld [vmem:[#allocation5 + $0xc0] ss:$16 sps:$4 sm:$0xff]   ;;  %v7362_v27 = vld [vmem:[#allocation5 + $0xc8] ss:$16 sps:$4 sm:$0xff]   ;;  %v7363_v28 = vld [vmem:[#allocation5 + $0xe4] ss:$16 sps:$4 sm:$0xff]  }
  0x89   :  { %4846 = vmatpush1.bf16.msra.mxu0 %v7337_v10  ;;  %5338 = vmatpush1.bf16.msra.mxu1 %v7338_v11  ;;  %v7365_v29 = vld [vmem:[#allocation5 + $0xec] ss:$16 sps:$4 sm:$0xff]   ;;  %v7367_v30 = vld [vmem:[#allocation5 + $0xe0] ss:$16 sps:$4 sm:$0xff]   ;;  %v7368_v31 = vld [vmem:[#allocation5 + $0xe8] ss:$16 sps:$4 sm:$0xff]  }
  0x8a   :  { %4847 = vmatprep.subr.bf16.mxu0 %v7339_v12  ;;  %5339 = vmatprep.subr.bf16.mxu1 %v7341_v13  ;;  %v7369_v32 = vld [vmem:[#allocation5 + $0x104] ss:$16 sps:$4 sm:$0xff]   ;;  %v7371_v33 = vld [vmem:[#allocation5 + $0x10c] ss:$16 sps:$4 sm:$0xff]   ;;  %v7373_v34 = vld [vmem:[#allocation5 + $0x100] ss:$16 sps:$4 sm:$0xff]  }
  0x8b   :  { %v7374_v35 = vld [vmem:[#allocation5 + $0x108] ss:$16 sps:$4 sm:$0xff]   ;;  %v7375_v36 = vld [vmem:[#allocation5 + $0x124] ss:$16 sps:$4 sm:$0xff]   ;;  %v7377_v37 = vld [vmem:[#allocation5 + $0x12c] ss:$16 sps:$4 sm:$0xff]  }
  0x8c   :  { %v7379_v38 = vld [vmem:[#allocation5 + $0x120] ss:$16 sps:$4 sm:$0xff]   ;;  %v7380_v39 = vld [vmem:[#allocation5 + $0x128] ss:$16 sps:$4 sm:$0xff]   ;;  %v7381_v40 = vld [vmem:[#allocation5 + $0x144] ss:$16 sps:$4 sm:$0xff]  }
  0x8d   :  { %4848 = vmatpush1.bf16.msra.mxu0 %v7343_v14  ;;  %5340 = vmatpush1.bf16.msra.mxu1 %v7344_v15  ;;  %v7383_v41 = vld [vmem:[#allocation5 + $0x14c] ss:$16 sps:$4 sm:$0xff]   ;;  %v7385_v42 = vld [vmem:[#allocation5 + $0x140] ss:$16 sps:$4 sm:$0xff]   ;;  %v7386_v43 = vld [vmem:[#allocation5 + $0x148] ss:$16 sps:$4 sm:$0xff]  }
  0x8e   :  { %4849 = vmatprep.subr.bf16.mxu0 %v7345_v16  ;;  %5341 = vmatprep.subr.bf16.mxu1 %v7347_v17  ;;  %v7387_v44 = vld [vmem:[#allocation5 + $0x164] ss:$16 sps:$4 sm:$0xff]   ;;  %v7389_v45 = vld [vmem:[#allocation5 + $0x16c] ss:$16 sps:$4 sm:$0xff]   ;;  %v7391_v47 = vld [vmem:[#allocation5 + $0x160] ss:$16 sps:$4 sm:$0xff]  }
  0x8f   :  { %v115_v46 = vld [vmem:[#allocation2] sm:$0xff]  ;;  %v7392_v49 = vld [vmem:[#allocation5 + $0x168] ss:$16 sps:$4 sm:$0xff]   ;;  %v7395_v51 = vld [vmem:[#allocation5 + $0x18c] ss:$16 sps:$4 sm:$0xff]   ;;  %vm8735_vm0 = vmmov 0  }
  0x90   :  { %v6309_v48 = vcombine.high %v115_v46, %v115_v46  ;;  %v7393_v50 = vld [vmem:[#allocation5 + $0x184] ss:$16 sps:$4 sm:$0xff]   ;;  %v7397_v52 = vld [vmem:[#allocation5 + $0x180] ss:$16 sps:$4 sm:$0xff]   ;;  %v7398_v53 = vld [vmem:[#allocation5 + $0x188] ss:$16 sps:$4 sm:$0xff]   ;;  %v6308_v4 = vcombine.low %v115_v46, %v115_v46 }
  0x91   :  { %4850 = vmatpush1.bf16.msra.mxu0 %v7349_v18  ;;  %5342 = vmatpush1.bf16.msra.mxu1 %v7350_v19  ;;  %v7399_v54 = vld [vmem:[#allocation5 + $0x1a4] ss:$16 sps:$4 sm:$0xff]   ;;  %v7401_v55 = vld [vmem:[#allocation5 + $0x1ac] ss:$16 sps:$4 sm:$0xff]   ;;  %v7403_v56 = vld [vmem:[#allocation5 + $0x1a0] ss:$16 sps:$4 sm:$0xff]  }
  0x92   :  { %4851 = vmatprep.subr.bf16.mxu0 %v7351_v20  ;;  %5343 = vmatprep.subr.bf16.mxu1 %v7353_v21  ;;  %v7404_v57 = vld [vmem:[#allocation5 + $0x1a8] ss:$16 sps:$4 sm:$0xff]   ;;  %v7405_v58 = vld [vmem:[#allocation5 + $0x1c4] ss:$16 sps:$4 sm:$0xff]   ;;  %v7407_v59 = vld [vmem:[#allocation5 + $0x1cc] ss:$16 sps:$4 sm:$0xff]  }
  0x93   :  { %4873 = vmatprep.mubr.bf16.mxu0 %v6309_v48  ;;  %5365 = vmatprep.mubr.bf16.mxu1 %v6309_v48  ;;  %v7409_v60 = vld [vmem:[#allocation5 + $0x1c0] ss:$16 sps:$4 sm:$0xff]   ;;  %v7410_v61 = vld [vmem:[#allocation5 + $0x1c8] ss:$16 sps:$4 sm:$0xff]   ;;  %v7411_v62 = vld [vmem:[#allocation5 + $0x1e4] ss:$16 sps:$4 sm:$0xff]  }
  0x94   :  { %v7413_v63 = vld [vmem:[#allocation5 + $0x1ec] ss:$16 sps:$4 sm:$0xff]   ;;  %v7415_v0 = vld [vmem:[#allocation5 + $0x1e0] ss:$16 sps:$4 sm:$0xff]   ;;  %v7416_v1 = vld [vmem:[#allocation5 + $0x1e8] ss:$16 sps:$4 sm:$0xff]  }
  0x95   :  { %4852 = vmatpush1.bf16.msra.mxu0 %v7355_v22  ;;  %5344 = vmatpush1.bf16.msra.mxu1 %v7356_v23  ;;  %v7421_v2 = vld [vmem:[#allocation5 + $0x204] ss:$16 sps:$4 sm:$0xff]   ;;  %v7424_v3 = vld [vmem:[#allocation5 + $0x20c] ss:$16 sps:$4 sm:$0xff]   ;;  %v7419_v5 = vld [vmem:[#allocation5 + $0x200] ss:$16 sps:$4 sm:$0xff]  }
  0x96   :  { %4853 = vmatprep.subr.bf16.mxu0 %v7357_v24  ;;  %5345 = vmatprep.subr.bf16.mxu1 %v7359_v25  ;;  %v7422_v6 = vld [vmem:[#allocation5 + $0x208] ss:$16 sps:$4 sm:$0xff]   ;;  %v7427_v7 = vld [vmem:[#allocation5 + $0x224] ss:$16 sps:$4 sm:$0xff]   ;;  %v7430_v8 = vld [vmem:[#allocation5 + $0x22c] ss:$16 sps:$4 sm:$0xff]  }
  0x97   :  { %v7425_v9 = vld [vmem:[#allocation5 + $0x220] ss:$16 sps:$4 sm:$0xff]   ;;  %v7428_v10 = vld [vmem:[#allocation5 + $0x228] ss:$16 sps:$4 sm:$0xff]   ;;  %v7433_v11 = vld [vmem:[#allocation5 + $0x244] ss:$16 sps:$4 sm:$0xff]  }
  0x98   :  { %v7436_v12 = vld [vmem:[#allocation5 + $0x24c] ss:$16 sps:$4 sm:$0xff]   ;;  %v7431_v13 = vld [vmem:[#allocation5 + $0x240] ss:$16 sps:$4 sm:$0xff]   ;;  %v7434_v14 = vld [vmem:[#allocation5 + $0x248] ss:$16 sps:$4 sm:$0xff]  }
  0x99   :  { %4854 = vmatpush1.bf16.msra.mxu0 %v7361_v26  ;;  %5346 = vmatpush1.bf16.msra.mxu1 %v7362_v27  ;;  %v7439_v15 = vld [vmem:[#allocation5 + $0x264] ss:$16 sps:$4 sm:$0xff]   ;;  %v7442_v16 = vld [vmem:[#allocation5 + $0x26c] ss:$16 sps:$4 sm:$0xff]   ;;  %v7437_v17 = vld [vmem:[#allocation5 + $0x260] ss:$16 sps:$4 sm:$0xff]  }
  0x9a   :  { %4855 = vmatprep.subr.bf16.mxu0 %v7363_v28  ;;  %5347 = vmatprep.subr.bf16.mxu1 %v7365_v29  ;;  %v7440_v18 = vld [vmem:[#allocation5 + $0x268] ss:$16 sps:$4 sm:$0xff]   ;;  %v7445_v19 = vld [vmem:[#allocation5 + $0x284] ss:$16 sps:$4 sm:$0xff]   ;;  %v7448_v20 = vld [vmem:[#allocation5 + $0x28c] ss:$16 sps:$4 sm:$0xff]  }
  0x9b   :  { %v7443_v21 = vld [vmem:[#allocation5 + $0x280] ss:$16 sps:$4 sm:$0xff]   ;;  %v7446_v22 = vld [vmem:[#allocation5 + $0x288] ss:$16 sps:$4 sm:$0xff]   ;;  %v7451_v23 = vld [vmem:[#allocation5 + $0x2a4] ss:$16 sps:$4 sm:$0xff]  }
  0x9c   :  { %v7454_v24 = vld [vmem:[#allocation5 + $0x2ac] ss:$16 sps:$4 sm:$0xff]   ;;  %v7449_v25 = vld [vmem:[#allocation5 + $0x2a0] ss:$16 sps:$4 sm:$0xff]   ;;  %v7452_v26 = vld [vmem:[#allocation5 + $0x2a8] ss:$16 sps:$4 sm:$0xff]  }
  0x9d   :  { %4856 = vmatpush1.bf16.msra.mxu0 %v7367_v30  ;;  %5348 = vmatpush1.bf16.msra.mxu1 %v7368_v31  ;;  %v7457_v27 = vld [vmem:[#allocation5 + $0x2c4] ss:$16 sps:$4 sm:$0xff]   ;;  %v7460_v28 = vld [vmem:[#allocation5 + $0x2cc] ss:$16 sps:$4 sm:$0xff]   ;;  %v7455_v31 = vld [vmem:[#allocation5 + $0x2c0] ss:$16 sps:$4 sm:$0xff]  }
  0x9e   :  { %4857 = vmatprep.subr.bf16.mxu0 %v7369_v32  ;;  %5349 = vmatprep.subr.bf16.mxu1 %v7371_v33  ;;  %v8861_v29 = vld [vmem:[#allocation2 + $0x8] sm:$0xff]  ;;  %v7463_v33 = vld [vmem:[#allocation5 + $0x2e4] ss:$16 sps:$4 sm:$0xff]   ;;  %s8736_s6 = smov [#allocation14]  }
  0x9f   :  { %v6311_v30 = vcombine.high %v8861_v29, %v8861_v29  ;;  %v7458_v32 = vld [vmem:[#allocation5 + $0x2c8] ss:$16 sps:$4 sm:$0xff]   ;;  %v7484_v46 = vld [vmem:[#allocation5 + $0x34c] ss:$16 sps:$4 sm:$0xff]   ;;  %s6296_s13 = sshll.u32 %s8736_s6, 4  ;;  %s6297_s13 = int_to_ptr.vmem [resolvable:$true] %s6296_s13 }
  0xa0   :  { %v7482_v48 = vld [vmem:[#allocation5 + $0x348] ss:$16 sps:$4 sm:$0xff]   ;;  %s8691_s14 = scalar_lea.vmem %s6297_s13, 128  ;;  %p8696_p1 = scmp.lt.s32.totalorder %s6297_s13, %s6297_s13 }
  0xa1   :  { %4858 = vmatpush1.bf16.msra.mxu0 %v7373_v34  ;;  %5350 = vmatpush1.bf16.msra.mxu1 %v7374_v35  ;;  %v7466_v34 = vld [vmem:[#allocation5 + $0x2ec] ss:$16 sps:$4 sm:$0xff]   ;;  %v7461_v35 = vld [vmem:[#allocation5 + $0x2e0] ss:$16 sps:$4 sm:$0xff]   ;;  %p8692_p0 = scmp.ne.s32.totalorder %s6297_s13, %s8691_s14  ;;  %p8697_p2 = scmp.lt.s32.totalorder %s8691_s14, %s8691_s14 }
  0xa2   :  { %4859 = vmatprep.subr.bf16.mxu0 %v7375_v36  ;;  %5351 = vmatprep.subr.bf16.mxu1 %v7377_v37  ;;  %v7464_v36 = vld [vmem:[#allocation5 + $0x2e8] ss:$16 sps:$4 sm:$0xff]   ;;  %v7469_v37 = vld [vmem:[#allocation5 + $0x304] ss:$16 sps:$4 sm:$0xff]  }
  0xa3   :  { %p8698_p3 = por %p8697_p2, %p8696_p1 }
  0xa5   :  { %4860 = vmatpush1.bf16.msra.mxu0 %v7379_v38  ;;  %5352 = vmatpush1.bf16.msra.mxu1 %v7380_v39  ;;  %v7472_v38 = vld [vmem:[#allocation5 + $0x30c] ss:$16 sps:$4 sm:$0xff]   ;;  %v7467_v39 = vld [vmem:[#allocation5 + $0x300] ss:$16 sps:$4 sm:$0xff]   ;;  %p8699_p4 = pnand %p8698_p3, %p8692_p0 }
  0xa6   :  { %4861 = vmatprep.subr.bf16.mxu0 %v7381_v40  ;;  %5353 = vmatprep.subr.bf16.mxu1 %v7383_v41  ;;  %v7470_v40 = vld [vmem:[#allocation5 + $0x308] ss:$16 sps:$4 sm:$0xff]   ;;  %v7475_v41 = vld [vmem:[#allocation5 + $0x324] ss:$16 sps:$4 sm:$0xff]  }
  0xa9   :  { %4862 = vmatpush1.bf16.msra.mxu0 %v7385_v42  ;;  %5354 = vmatpush1.bf16.msra.mxu1 %v7386_v43  ;;  %v7478_v42 = vld [vmem:[#allocation5 + $0x32c] ss:$16 sps:$4 sm:$0xff]   ;;  %v7473_v43 = vld [vmem:[#allocation5 + $0x320] ss:$16 sps:$4 sm:$0xff]  }
  0xaa   :  { %4863 = vmatprep.subr.bf16.mxu0 %v7387_v44  ;;  %5355 = vmatprep.subr.bf16.mxu1 %v7389_v45  ;;  %v7476_v44 = vld [vmem:[#allocation5 + $0x328] ss:$16 sps:$4 sm:$0xff]   ;;  %v7481_v45 = vld [vmem:[#allocation5 + $0x344] ss:$16 sps:$4 sm:$0xff]  }
  0xad   :  { %4864 = vmatpush1.bf16.msra.mxu0 %v7391_v47  ;;  %5356 = vmatpush1.bf16.msra.mxu1 %v7392_v49  ;;  %v7479_v47 = vld [vmem:[#allocation5 + $0x340] ss:$16 sps:$4 sm:$0xff]   ;;  %v7487_v49 = vld [vmem:[#allocation5 + $0x364] ss:$16 sps:$4 sm:$0xff]  }
  0xae   :  { %4865 = vmatprep.subr.bf16.mxu0 %v7393_v50  ;;  %5357 = vmatprep.subr.bf16.mxu1 %v7395_v51  ;;  %v7490_v50 = vld [vmem:[#allocation5 + $0x36c] ss:$16 sps:$4 sm:$0xff]   ;;  %v7485_v51 = vld [vmem:[#allocation5 + $0x360] ss:$16 sps:$4 sm:$0xff]  }
  0xb1   :  { %4866 = vmatpush1.bf16.msra.mxu0 %v7397_v52  ;;  %5358 = vmatpush1.bf16.msra.mxu1 %v7398_v53  ;;  %v7488_v52 = vld [vmem:[#allocation5 + $0x368] ss:$16 sps:$4 sm:$0xff]   ;;  %v7493_v53 = vld [vmem:[#allocation5 + $0x384] ss:$16 sps:$4 sm:$0xff]  }
  0xb2   :  { %4867 = vmatprep.subr.bf16.mxu0 %v7399_v54  ;;  %5359 = vmatprep.subr.bf16.mxu1 %v7401_v55  ;;  %v7496_v54 = vld [vmem:[#allocation5 + $0x38c] ss:$16 sps:$4 sm:$0xff]   ;;  %v7491_v55 = vld [vmem:[#allocation5 + $0x380] ss:$16 sps:$4 sm:$0xff]  }
  0xb5   :  { %4868 = vmatpush1.bf16.msra.mxu0 %v7403_v56  ;;  %5360 = vmatpush1.bf16.msra.mxu1 %v7404_v57  ;;  %v7494_v56 = vld [vmem:[#allocation5 + $0x388] ss:$16 sps:$4 sm:$0xff]   ;;  %v7499_v57 = vld [vmem:[#allocation5 + $0x3a4] ss:$16 sps:$4 sm:$0xff]  }
  0xb6   :  { %4869 = vmatprep.subr.bf16.mxu0 %v7405_v58  ;;  %5361 = vmatprep.subr.bf16.mxu1 %v7407_v59  ;;  %v7502_v58 = vld [vmem:[#allocation5 + $0x3ac] ss:$16 sps:$4 sm:$0xff]   ;;  %v7497_v59 = vld [vmem:[#allocation5 + $0x3a0] ss:$16 sps:$4 sm:$0xff]  }
  0xb9   :  { %4870 = vmatpush1.bf16.msra.mxu0 %v7409_v60  ;;  %5362 = vmatpush1.bf16.msra.mxu1 %v7410_v61  ;;  %v7500_v60 = vld [vmem:[#allocation5 + $0x3a8] ss:$16 sps:$4 sm:$0xff]   ;;  %v7505_v61 = vld [vmem:[#allocation5 + $0x3c4] ss:$16 sps:$4 sm:$0xff]  }
  0xba   :  { %4871 = vmatprep.subr.bf16.mxu0 %v7411_v62  ;;  %5363 = vmatprep.subr.bf16.mxu1 %v7413_v63  ;;  %v7508_v62 = vld [vmem:[#allocation5 + $0x3cc] ss:$16 sps:$4 sm:$0xff]   ;;  %v7503_v63 = vld [vmem:[#allocation5 + $0x3c0] ss:$16 sps:$4 sm:$0xff]  }
  0xbd   :  { %4872 = vmatpush1.bf16.msra.mxu0 %v7415_v0  ;;  %5364 = vmatpush1.bf16.msra.mxu1 %v7416_v1  ;;  %v7506_v0 = vld [vmem:[#allocation5 + $0x3c8] ss:$16 sps:$4 sm:$0xff]   ;;  %v7511_v1 = vld [vmem:[#allocation5 + $0x3e4] ss:$16 sps:$4 sm:$0xff]  }
  0xbe   :  { %4882 = vmatprep.subr.bf16.mxu0 %v7421_v2  ;;  %5374 = vmatprep.subr.bf16.mxu1 %v7424_v3  ;;  %v7514_v2 = vld [vmem:[#allocation5 + $0x3ec] ss:$16 sps:$4 sm:$0xff]   ;;  %v7509_v3 = vld [vmem:[#allocation5 + $0x3e0] ss:$16 sps:$4 sm:$0xff]  }
  0xc0   :  { %4874 = vmatmul.mubr.bf16.vlgmr.msra.gmra.mrb[0].mxu0 %v6308_v4  ;;  %5366 = vmatmul.mubr.bf16.vlgmr.msra.gmra.mrb[0].mxu1 %v6308_v4  ;;  %v7512_v4 = vld [vmem:[#allocation5 + $0x3e8] ss:$16 sps:$4 sm:$0xff]  }
  0xc1   :  { %4883 = vmatpush1.bf16.msra.mxu0 %v7419_v5  ;;  %5375 = vmatpush1.bf16.msra.mxu1 %v7422_v6  ;;  %v7519_v5 = vld [vmem:[#allocation5 + $0x404] ss:$16 sps:$4 sm:$0xff]   ;;  %v7522_v6 = vld [vmem:[#allocation5 + $0x40c] ss:$16 sps:$4 sm:$0xff]  }
  0xc2   :  { %4884 = vmatprep.subr.bf16.mxu0 %v7427_v7  ;;  %5376 = vmatprep.subr.bf16.mxu1 %v7430_v8  ;;  %v6310_v7 = vcombine.low %v8861_v29, %v8861_v29  ;;  %v7517_v8 = vld [vmem:[#allocation5 + $0x400] ss:$16 sps:$4 sm:$0xff]   ;;  %v7552_v29 = vld [vmem:[#allocation5 + $0x4ac] ss:$16 sps:$4 sm:$0xff]  }
  0xc3   :  { %4914 = vmatprep.mubr.bf16.mxu0 %v6311_v30  ;;  %5406 = vmatprep.mubr.bf16.mxu1 %v6311_v30  ;;  %v7547_v30 = vld [vmem:[#allocation5 + $0x4a0] ss:$16 sps:$4 sm:$0xff]  }
  0xc5   :  { %4885 = vmatpush1.bf16.msra.mxu0 %v7425_v9  ;;  %5377 = vmatpush1.bf16.msra.mxu1 %v7428_v10  ;;  %v7520_v9 = vld [vmem:[#allocation5 + $0x408] ss:$16 sps:$4 sm:$0xff]   ;;  %v7525_v10 = vld [vmem:[#allocation5 + $0x424] ss:$16 sps:$4 sm:$0xff]  }
  0xc6   :  { %4886 = vmatprep.subr.bf16.mxu0 %v7433_v11  ;;  %5378 = vmatprep.subr.bf16.mxu1 %v7436_v12  ;;  %v8867_v11 = vld [vmem:[#allocation2 + $0x10] sm:$0xff]  ;;  %v7528_v12 = vld [vmem:[#allocation5 + $0x42c] ss:$16 sps:$4 sm:$0xff]  }
  0xc9   :  { %4887 = vmatpush1.bf16.msra.mxu0 %v7431_v13  ;;  %5379 = vmatpush1.bf16.msra.mxu1 %v7434_v14  ;;  %v6313_v13 = vcombine.high %v8867_v11, %v8867_v11  ;;  %v7523_v14 = vld [vmem:[#allocation5 + $0x420] ss:$16 sps:$4 sm:$0xff]  }
  0xca   :  { %4888 = vmatprep.subr.bf16.mxu0 %v7439_v15  ;;  %5380 = vmatprep.subr.bf16.mxu1 %v7442_v16  ;;  %v7526_v15 = vld [vmem:[#allocation5 + $0x428] ss:$16 sps:$4 sm:$0xff]   ;;  %v7531_v16 = vld [vmem:[#allocation5 + $0x444] ss:$16 sps:$4 sm:$0xff]  }
  0xcd   :  { %4889 = vmatpush1.bf16.msra.mxu0 %v7437_v17  ;;  %5381 = vmatpush1.bf16.msra.mxu1 %v7440_v18  ;;  %v7534_v17 = vld [vmem:[#allocation5 + $0x44c] ss:$16 sps:$4 sm:$0xff]   ;;  %v7529_v18 = vld [vmem:[#allocation5 + $0x440] ss:$16 sps:$4 sm:$0xff]  }
  0xce   :  { %4890 = vmatprep.subr.bf16.mxu0 %v7445_v19  ;;  %5382 = vmatprep.subr.bf16.mxu1 %v7448_v20  ;;  %v7532_v19 = vld [vmem:[#allocation5 + $0x448] ss:$16 sps:$4 sm:$0xff]   ;;  %v7537_v20 = vld [vmem:[#allocation5 + $0x464] ss:$16 sps:$4 sm:$0xff]  }
  0xd1   :  { %4891 = vmatpush1.bf16.msra.mxu0 %v7443_v21  ;;  %5383 = vmatpush1.bf16.msra.mxu1 %v7446_v22  ;;  %v7540_v21 = vld [vmem:[#allocation5 + $0x46c] ss:$16 sps:$4 sm:$0xff]   ;;  %v7535_v22 = vld [vmem:[#allocation5 + $0x460] ss:$16 sps:$4 sm:$0xff]  }
  0xd2   :  { %4892 = vmatprep.subr.bf16.mxu0 %v7451_v23  ;;  %5384 = vmatprep.subr.bf16.mxu1 %v7454_v24  ;;  %v7538_v23 = vld [vmem:[#allocation5 + $0x468] ss:$16 sps:$4 sm:$0xff]   ;;  %v7543_v24 = vld [vmem:[#allocation5 + $0x484] ss:$16 sps:$4 sm:$0xff]  }
  0xd5   :  { %4893 = vmatpush1.bf16.msra.mxu0 %v7449_v25  ;;  %5385 = vmatpush1.bf16.msra.mxu1 %v7452_v26  ;;  %v7546_v25 = vld [vmem:[#allocation5 + $0x48c] ss:$16 sps:$4 sm:$0xff]   ;;  %v7541_v26 = vld [vmem:[#allocation5 + $0x480] ss:$16 sps:$4 sm:$0xff]  }
  0xd6   :  { %4894 = vmatprep.subr.bf16.mxu0 %v7457_v27  ;;  %5386 = vmatprep.subr.bf16.mxu1 %v7460_v28  ;;  %v7544_v27 = vld [vmem:[#allocation5 + $0x488] ss:$16 sps:$4 sm:$0xff]   ;;  %v7549_v28 = vld [vmem:[#allocation5 + $0x4a4] ss:$16 sps:$4 sm:$0xff]  }
  0xd9   :  { %4895 = vmatpush1.bf16.msra.mxu0 %v7455_v31  ;;  %5387 = vmatpush1.bf16.msra.mxu1 %v7458_v32  ;;  %v7550_v31 = vld [vmem:[#allocation5 + $0x4a8] ss:$16 sps:$4 sm:$0xff]   ;;  %v7555_v32 = vld [vmem:[#allocation5 + $0x4c4] ss:$16 sps:$4 sm:$0xff]  }
  0xda   :  { %4896 = vmatprep.subr.bf16.mxu0 %v7463_v33  ;;  %5388 = vmatprep.subr.bf16.mxu1 %v7466_v34  ;;  %v7558_v33 = vld [vmem:[#allocation5 + $0x4cc] ss:$16 sps:$4 sm:$0xff]   ;;  %v7553_v34 = vld [vmem:[#allocation5 + $0x4c0] ss:$16 sps:$4 sm:$0xff]  }
  0xdd   :  { %4897 = vmatpush1.bf16.msra.mxu0 %v7461_v35  ;;  %5389 = vmatpush1.bf16.msra.mxu1 %v7464_v36  ;;  %v7556_v35 = vld [vmem:[#allocation5 + $0x4c8] ss:$16 sps:$4 sm:$0xff]   ;;  %v7561_v36 = vld [vmem:[#allocation5 + $0x4e4] ss:$16 sps:$4 sm:$0xff]  }
  0xde   :  { %4898 = vmatprep.subr.bf16.mxu0 %v7469_v37  ;;  %5390 = vmatprep.subr.bf16.mxu1 %v7472_v38  ;;  %v7564_v37 = vld [vmem:[#allocation5 + $0x4ec] ss:$16 sps:$4 sm:$0xff]   ;;  %v7559_v38 = vld [vmem:[#allocation5 + $0x4e0] ss:$16 sps:$4 sm:$0xff]  }
  0xe1   :  { %4899 = vmatpush1.bf16.msra.mxu0 %v7467_v39  ;;  %5391 = vmatpush1.bf16.msra.mxu1 %v7470_v40  ;;  %v7562_v39 = vld [vmem:[#allocation5 + $0x4e8] ss:$16 sps:$4 sm:$0xff]   ;;  %v7567_v40 = vld [vmem:[#allocation5 + $0x504] ss:$16 sps:$4 sm:$0xff]  }
  0xe2   :  { %4900 = vmatprep.subr.bf16.mxu0 %v7475_v41  ;;  %5392 = vmatprep.subr.bf16.mxu1 %v7478_v42  ;;  %v7570_v41 = vld [vmem:[#allocation5 + $0x50c] ss:$16 sps:$4 sm:$0xff]   ;;  %v7565_v42 = vld [vmem:[#allocation5 + $0x500] ss:$16 sps:$4 sm:$0xff]  }
  0xe5   :  { %4901 = vmatpush1.bf16.msra.mxu0 %v7473_v43  ;;  %5393 = vmatpush1.bf16.msra.mxu1 %v7476_v44  ;;  %v7568_v43 = vld [vmem:[#allocation5 + $0x508] ss:$16 sps:$4 sm:$0xff]   ;;  %v7573_v44 = vld [vmem:[#allocation5 + $0x524] ss:$16 sps:$4 sm:$0xff]  }
  0xe6   :  { %4902 = vmatprep.subr.bf16.mxu0 %v7481_v45  ;;  %5394 = vmatprep.subr.bf16.mxu1 %v7484_v46  ;;  %v7576_v45 = vld [vmem:[#allocation5 + $0x52c] ss:$16 sps:$4 sm:$0xff]   ;;  %v7571_v46 = vld [vmem:[#allocation5 + $0x520] ss:$16 sps:$4 sm:$0xff]  }
  0xe9   :  { %4903 = vmatpush1.bf16.msra.mxu0 %v7479_v47  ;;  %5395 = vmatpush1.bf16.msra.mxu1 %v7482_v48  ;;  %v7574_v47 = vld [vmem:[#allocation5 + $0x528] ss:$16 sps:$4 sm:$0xff]   ;;  %v7579_v48 = vld [vmem:[#allocation5 + $0x544] ss:$16 sps:$4 sm:$0xff]  }
  0xea   :  { %4904 = vmatprep.subr.bf16.mxu0 %v7487_v49  ;;  %5396 = vmatprep.subr.bf16.mxu1 %v7490_v50  ;;  %v7582_v49 = vld [vmem:[#allocation5 + $0x54c] ss:$16 sps:$4 sm:$0xff]   ;;  %v7577_v50 = vld [vmem:[#allocation5 + $0x540] ss:$16 sps:$4 sm:$0xff]  }
  0xed   :  { %4905 = vmatpush1.bf16.msra.mxu0 %v7485_v51  ;;  %5397 = vmatpush1.bf16.msra.mxu1 %v7488_v52  ;;  %v7580_v51 = vld [vmem:[#allocation5 + $0x548] ss:$16 sps:$4 sm:$0xff]   ;;  %v7585_v52 = vld [vmem:[#allocation5 + $0x564] ss:$16 sps:$4 sm:$0xff]  }
  0xee   :  { %4906 = vmatprep.subr.bf16.mxu0 %v7493_v53  ;;  %5398 = vmatprep.subr.bf16.mxu1 %v7496_v54  ;;  %v7588_v53 = vld [vmem:[#allocation5 + $0x56c] ss:$16 sps:$4 sm:$0xff]   ;;  %v7583_v54 = vld [vmem:[#allocation5 + $0x560] ss:$16 sps:$4 sm:$0xff]  }
  0xf1   :  { %4907 = vmatpush1.bf16.msra.mxu0 %v7491_v55  ;;  %5399 = vmatpush1.bf16.msra.mxu1 %v7494_v56  ;;  %v7586_v55 = vld [vmem:[#allocation5 + $0x568] ss:$16 sps:$4 sm:$0xff]   ;;  %v7591_v56 = vld [vmem:[#allocation5 + $0x584] ss:$16 sps:$4 sm:$0xff]  }
  0xf2   :  { %4908 = vmatprep.subr.bf16.mxu0 %v7499_v57  ;;  %5400 = vmatprep.subr.bf16.mxu1 %v7502_v58  ;;  %v7594_v57 = vld [vmem:[#allocation5 + $0x58c] ss:$16 sps:$4 sm:$0xff]   ;;  %v7589_v58 = vld [vmem:[#allocation5 + $0x580] ss:$16 sps:$4 sm:$0xff]  }
  0xf5   :  { %4909 = vmatpush1.bf16.msra.mxu0 %v7497_v59  ;;  %5401 = vmatpush1.bf16.msra.mxu1 %v7500_v60  ;;  %v7592_v59 = vld [vmem:[#allocation5 + $0x588] ss:$16 sps:$4 sm:$0xff]   ;;  %v7597_v60 = vld [vmem:[#allocation5 + $0x5a4] ss:$16 sps:$4 sm:$0xff]  }
  0xf6   :  { %4910 = vmatprep.subr.bf16.mxu0 %v7505_v61  ;;  %5402 = vmatprep.subr.bf16.mxu1 %v7508_v62  ;;  %v7600_v61 = vld [vmem:[#allocation5 + $0x5ac] ss:$16 sps:$4 sm:$0xff]   ;;  %v7595_v62 = vld [vmem:[#allocation5 + $0x5a0] ss:$16 sps:$4 sm:$0xff]  }
  0xf9   :  { %4911 = vmatpush1.bf16.msra.mxu0 %v7503_v63  ;;  %5403 = vmatpush1.bf16.msra.mxu1 %v7506_v0  ;;  %v7598_v63 = vld [vmem:[#allocation5 + $0x5a8] ss:$16 sps:$4 sm:$0xff]   ;;  %v7603_v0 = vld [vmem:[#allocation5 + $0x5c4] ss:$16 sps:$4 sm:$0xff]  }
  0xfa   :  { %4912 = vmatprep.subr.bf16.mxu0 %v7511_v1  ;;  %5404 = vmatprep.subr.bf16.mxu1 %v7514_v2  ;;  %v7606_v1 = vld [vmem:[#allocation5 + $0x5cc] ss:$16 sps:$4 sm:$0xff]   ;;  %v7601_v2 = vld [vmem:[#allocation5 + $0x5c0] ss:$16 sps:$4 sm:$0xff]  }
  0xfd   :  { %4913 = vmatpush1.bf16.msra.mxu0 %v7509_v3  ;;  %5405 = vmatpush1.bf16.msra.mxu1 %v7512_v4  ;;  %v7604_v3 = vld [vmem:[#allocation5 + $0x5c8] ss:$16 sps:$4 sm:$0xff]   ;;  %v7609_v4 = vld [vmem:[#allocation5 + $0x5e4] ss:$16 sps:$4 sm:$0xff]  }
  0xfe   :  { %4923 = vmatprep.subr.bf16.mxu0 %v7519_v5  ;;  %5415 = vmatprep.subr.bf16.mxu1 %v7522_v6  ;;  %v7612_v5 = vld [vmem:[#allocation5 + $0x5ec] ss:$16 sps:$4 sm:$0xff]   ;;  %v7607_v6 = vld [vmem:[#allocation5 + $0x5e0] ss:$16 sps:$4 sm:$0xff]  }
 0x100   :  { %4915 = vmatmul.mubr.bf16.vlgmr.msra.gmra.mrb[0].mxu0 %v6310_v7  ;;  %5407 = vmatmul.mubr.bf16.vlgmr.msra.gmra.mrb[0].mxu1 %v6310_v7  ;;  %v7610_v7 = vld [vmem:[#allocation5 + $0x5e8] ss:$16 sps:$4 sm:$0xff]  }
 0x101   :  { %4924 = vmatpush1.bf16.msra.mxu0 %v7517_v8  ;;  %5416 = vmatpush1.bf16.msra.mxu1 %v7520_v9  ;;  %v7617_v8 = vld [vmem:[#allocation5 + $0x604] ss:$16 sps:$4 sm:$0xff]   ;;  %v7620_v9 = vld [vmem:[#allocation5 + $0x60c] ss:$16 sps:$4 sm:$0xff]  }
 0x102   :  { %4925 = vmatprep.subr.bf16.mxu0 %v7525_v10  ;;  %5417 = vmatprep.subr.bf16.mxu1 %v7528_v12  ;;  %v7615_v10 = vld [vmem:[#allocation5 + $0x600] ss:$16 sps:$4 sm:$0xff]   ;;  %v6312_v12 = vcombine.low %v8867_v11, %v8867_v11  ;;  %v7632_v11 = vld [vmem:[#allocation5 + $0x64c] ss:$16 sps:$4 sm:$0xff]  }
 0x103   :  { %4955 = vmatprep.mubr.bf16.mxu0 %v6313_v13  ;;  %5447 = vmatprep.mubr.bf16.mxu1 %v6313_v13  ;;  %v7618_v13 = vld [vmem:[#allocation5 + $0x608] ss:$16 sps:$4 sm:$0xff]  }
 0x105   :  { %4926 = vmatpush1.bf16.msra.mxu0 %v7523_v14  ;;  %5418 = vmatpush1.bf16.msra.mxu1 %v7526_v15  ;;  %v8873_v14 = vld [vmem:[#allocation2 + $0x18] sm:$0xff]  ;;  %v7623_v15 = vld [vmem:[#allocation5 + $0x624] ss:$16 sps:$4 sm:$0xff]  }
 0x106   :  { %4927 = vmatprep.subr.bf16.mxu0 %v7531_v16  ;;  %5419 = vmatprep.subr.bf16.mxu1 %v7534_v17  ;;  %v7626_v16 = vld [vmem:[#allocation5 + $0x62c] ss:$16 sps:$4 sm:$0xff]   ;;  %v6315_v17 = vcombine.high %v8873_v14, %v8873_v14 }
 0x109   :  { %4928 = vmatpush1.bf16.msra.mxu0 %v7529_v18  ;;  %5420 = vmatpush1.bf16.msra.mxu1 %v7532_v19  ;;  %v7621_v18 = vld [vmem:[#allocation5 + $0x620] ss:$16 sps:$4 sm:$0xff]   ;;  %v7624_v19 = vld [vmem:[#allocation5 + $0x628] ss:$16 sps:$4 sm:$0xff]  }
 0x10a   :  { %4929 = vmatprep.subr.bf16.mxu0 %v7537_v20  ;;  %5421 = vmatprep.subr.bf16.mxu1 %v7540_v21  ;;  %v7629_v20 = vld [vmem:[#allocation5 + $0x644] ss:$16 sps:$4 sm:$0xff]   ;;  %v7627_v21 = vld [vmem:[#allocation5 + $0x640] ss:$16 sps:$4 sm:$0xff]  }
 0x10d   :  { %4930 = vmatpush1.bf16.msra.mxu0 %v7535_v22  ;;  %5422 = vmatpush1.bf16.msra.mxu1 %v7538_v23  ;;  %v7630_v22 = vld [vmem:[#allocation5 + $0x648] ss:$16 sps:$4 sm:$0xff]   ;;  %v7635_v23 = vld [vmem:[#allocation5 + $0x664] ss:$16 sps:$4 sm:$0xff]  }
 0x10e   :  { %4931 = vmatprep.subr.bf16.mxu0 %v7543_v24  ;;  %5423 = vmatprep.subr.bf16.mxu1 %v7546_v25  ;;  %v7638_v24 = vld [vmem:[#allocation5 + $0x66c] ss:$16 sps:$4 sm:$0xff]   ;;  %v7633_v25 = vld [vmem:[#allocation5 + $0x660] ss:$16 sps:$4 sm:$0xff]  }
 0x111   :  { %4932 = vmatpush1.bf16.msra.mxu0 %v7541_v26  ;;  %5424 = vmatpush1.bf16.msra.mxu1 %v7544_v27  ;;  %v7636_v26 = vld [vmem:[#allocation5 + $0x668] ss:$16 sps:$4 sm:$0xff]   ;;  %v7641_v27 = vld [vmem:[#allocation5 + $0x684] ss:$16 sps:$4 sm:$0xff]  }
 0x112   :  { %4933 = vmatprep.subr.bf16.mxu0 %v7549_v28  ;;  %5425 = vmatprep.subr.bf16.mxu1 %v7552_v29  ;;  %v7644_v28 = vld [vmem:[#allocation5 + $0x68c] ss:$16 sps:$4 sm:$0xff]   ;;  %v7639_v29 = vld [vmem:[#allocation5 + $0x680] ss:$16 sps:$4 sm:$0xff]  }
 0x115   :  { %4934 = vmatpush1.bf16.msra.mxu0 %v7547_v30  ;;  %5426 = vmatpush1.bf16.msra.mxu1 %v7550_v31  ;;  %v7642_v30 = vld [vmem:[#allocation5 + $0x688] ss:$16 sps:$4 sm:$0xff]   ;;  %v7647_v31 = vld [vmem:[#allocation5 + $0x6a4] ss:$16 sps:$4 sm:$0xff]  }
 0x116   :  { %4935 = vmatprep.subr.bf16.mxu0 %v7555_v32  ;;  %5427 = vmatprep.subr.bf16.mxu1 %v7558_v33  ;;  %v7650_v32 = vld [vmem:[#allocation5 + $0x6ac] ss:$16 sps:$4 sm:$0xff]   ;;  %v7645_v33 = vld [vmem:[#allocation5 + $0x6a0] ss:$16 sps:$4 sm:$0xff]  }
 0x119   :  { %4936 = vmatpush1.bf16.msra.mxu0 %v7553_v34  ;;  %5428 = vmatpush1.bf16.msra.mxu1 %v7556_v35  ;;  %v7648_v34 = vld [vmem:[#allocation5 + $0x6a8] ss:$16 sps:$4 sm:$0xff]   ;;  %v7653_v35 = vld [vmem:[#allocation5 + $0x6c4] ss:$16 sps:$4 sm:$0xff]  }
 0x11a   :  { %4937 = vmatprep.subr.bf16.mxu0 %v7561_v36  ;;  %5429 = vmatprep.subr.bf16.mxu1 %v7564_v37  ;;  %v7656_v36 = vld [vmem:[#allocation5 + $0x6cc] ss:$16 sps:$4 sm:$0xff]   ;;  %v7651_v37 = vld [vmem:[#allocation5 + $0x6c0] ss:$16 sps:$4 sm:$0xff]  }
 0x11d   :  { %4938 = vmatpush1.bf16.msra.mxu0 %v7559_v38  ;;  %5430 = vmatpush1.bf16.msra.mxu1 %v7562_v39  ;;  %v7654_v38 = vld [vmem:[#allocation5 + $0x6c8] ss:$16 sps:$4 sm:$0xff]   ;;  %v7659_v39 = vld [vmem:[#allocation5 + $0x6e4] ss:$16 sps:$4 sm:$0xff]  }
 0x11e   :  { %4939 = vmatprep.subr.bf16.mxu0 %v7567_v40  ;;  %5431 = vmatprep.subr.bf16.mxu1 %v7570_v41  ;;  %v7662_v40 = vld [vmem:[#allocation5 + $0x6ec] ss:$16 sps:$4 sm:$0xff]   ;;  %v7657_v41 = vld [vmem:[#allocation5 + $0x6e0] ss:$16 sps:$4 sm:$0xff]  }
 0x121   :  { %4940 = vmatpush1.bf16.msra.mxu0 %v7565_v42  ;;  %5432 = vmatpush1.bf16.msra.mxu1 %v7568_v43  ;;  %v7660_v42 = vld [vmem:[#allocation5 + $0x6e8] ss:$16 sps:$4 sm:$0xff]   ;;  %v7665_v43 = vld [vmem:[#allocation5 + $0x704] ss:$16 sps:$4 sm:$0xff]  }
 0x122   :  { %4941 = vmatprep.subr.bf16.mxu0 %v7573_v44  ;;  %5433 = vmatprep.subr.bf16.mxu1 %v7576_v45  ;;  %v7668_v44 = vld [vmem:[#allocation5 + $0x70c] ss:$16 sps:$4 sm:$0xff]   ;;  %v7663_v45 = vld [vmem:[#allocation5 + $0x700] ss:$16 sps:$4 sm:$0xff]  }
 0x125   :  { %4942 = vmatpush1.bf16.msra.mxu0 %v7571_v46  ;;  %5434 = vmatpush1.bf16.msra.mxu1 %v7574_v47  ;;  %v7666_v46 = vld [vmem:[#allocation5 + $0x708] ss:$16 sps:$4 sm:$0xff]   ;;  %v7671_v47 = vld [vmem:[#allocation5 + $0x724] ss:$16 sps:$4 sm:$0xff]  }
 0x126   :  { %4943 = vmatprep.subr.bf16.mxu0 %v7579_v48  ;;  %5435 = vmatprep.subr.bf16.mxu1 %v7582_v49  ;;  %v7674_v48 = vld [vmem:[#allocation5 + $0x72c] ss:$16 sps:$4 sm:$0xff]   ;;  %v7669_v49 = vld [vmem:[#allocation5 + $0x720] ss:$16 sps:$4 sm:$0xff]  }
 0x129   :  { %4944 = vmatpush1.bf16.msra.mxu0 %v7577_v50  ;;  %5436 = vmatpush1.bf16.msra.mxu1 %v7580_v51  ;;  %v7672_v50 = vld [vmem:[#allocation5 + $0x728] ss:$16 sps:$4 sm:$0xff]   ;;  %v7677_v51 = vld [vmem:[#allocation5 + $0x744] ss:$16 sps:$4 sm:$0xff]  }
 0x12a   :  { %4945 = vmatprep.subr.bf16.mxu0 %v7585_v52  ;;  %5437 = vmatprep.subr.bf16.mxu1 %v7588_v53  ;;  %v7680_v52 = vld [vmem:[#allocation5 + $0x74c] ss:$16 sps:$4 sm:$0xff]   ;;  %v7675_v53 = vld [vmem:[#allocation5 + $0x740] ss:$16 sps:$4 sm:$0xff]  }
 0x12d   :  { %4946 = vmatpush1.bf16.msra.mxu0 %v7583_v54  ;;  %5438 = vmatpush1.bf16.msra.mxu1 %v7586_v55  ;;  %v7678_v54 = vld [vmem:[#allocation5 + $0x748] ss:$16 sps:$4 sm:$0xff]   ;;  %v7683_v55 = vld [vmem:[#allocation5 + $0x764] ss:$16 sps:$4 sm:$0xff]  }
 0x12e   :  { %4947 = vmatprep.subr.bf16.mxu0 %v7591_v56  ;;  %5439 = vmatprep.subr.bf16.mxu1 %v7594_v57  ;;  %v7686_v56 = vld [vmem:[#allocation5 + $0x76c] ss:$16 sps:$4 sm:$0xff]   ;;  %v7681_v57 = vld [vmem:[#allocation5 + $0x760] ss:$16 sps:$4 sm:$0xff]  }
 0x131   :  { %4948 = vmatpush1.bf16.msra.mxu0 %v7589_v58  ;;  %5440 = vmatpush1.bf16.msra.mxu1 %v7592_v59  ;;  %v7684_v58 = vld [vmem:[#allocation5 + $0x768] ss:$16 sps:$4 sm:$0xff]   ;;  %v7689_v59 = vld [vmem:[#allocation5 + $0x784] ss:$16 sps:$4 sm:$0xff]  }
 0x132   :  { %4949 = vmatprep.subr.bf16.mxu0 %v7597_v60  ;;  %5441 = vmatprep.subr.bf16.mxu1 %v7600_v61  ;;  %v7692_v60 = vld [vmem:[#allocation5 + $0x78c] ss:$16 sps:$4 sm:$0xff]   ;;  %v7687_v61 = vld [vmem:[#allocation5 + $0x780] ss:$16 sps:$4 sm:$0xff]  }
 0x135   :  { %4950 = vmatpush1.bf16.msra.mxu0 %v7595_v62  ;;  %5442 = vmatpush1.bf16.msra.mxu1 %v7598_v63  ;;  %v7690_v62 = vld [vmem:[#allocation5 + $0x788] ss:$16 sps:$4 sm:$0xff]   ;;  %v7695_v63 = vld [vmem:[#allocation5 + $0x7a4] ss:$16 sps:$4 sm:$0xff]  }
 0x136   :  { %4951 = vmatprep.subr.bf16.mxu0 %v7603_v0  ;;  %5443 = vmatprep.subr.bf16.mxu1 %v7606_v1  ;;  %v7698_v0 = vld [vmem:[#allocation5 + $0x7ac] ss:$16 sps:$4 sm:$0xff]   ;;  %v7693_v1 = vld [vmem:[#allocation5 + $0x7a0] ss:$16 sps:$4 sm:$0xff]  }
 0x139   :  { %4952 = vmatpush1.bf16.msra.mxu0 %v7601_v2  ;;  %5444 = vmatpush1.bf16.msra.mxu1 %v7604_v3  ;;  %v7696_v2 = vld [vmem:[#allocation5 + $0x7a8] ss:$16 sps:$4 sm:$0xff]   ;;  %v7701_v3 = vld [vmem:[#allocation5 + $0x7c4] ss:$16 sps:$4 sm:$0xff]  }
 0x13a   :  { %4953 = vmatprep.subr.bf16.mxu0 %v7609_v4  ;;  %5445 = vmatprep.subr.bf16.mxu1 %v7612_v5  ;;  %v7704_v4 = vld [vmem:[#allocation5 + $0x7cc] ss:$16 sps:$4 sm:$0xff]   ;;  %v7699_v5 = vld [vmem:[#allocation5 + $0x7c0] ss:$16 sps:$4 sm:$0xff]  }
 0x13d   :  { %4954 = vmatpush1.bf16.msra.mxu0 %v7607_v6  ;;  %5446 = vmatpush1.bf16.msra.mxu1 %v7610_v7  ;;  %v7702_v6 = vld [vmem:[#allocation5 + $0x7c8] ss:$16 sps:$4 sm:$0xff]   ;;  %v7707_v7 = vld [vmem:[#allocation5 + $0x7e4] ss:$16 sps:$4 sm:$0xff]  }
 0x13e   :  { %4964 = vmatprep.subr.bf16.mxu0 %v7617_v8  ;;  %5456 = vmatprep.subr.bf16.mxu1 %v7620_v9  ;;  %v7710_v8 = vld [vmem:[#allocation5 + $0x7ec] ss:$16 sps:$4 sm:$0xff]   ;;  %v7705_v9 = vld [vmem:[#allocation5 + $0x7e0] ss:$16 sps:$4 sm:$0xff]  }
 0x140   :  { %4956 = vmatmul.mubr.bf16.vlgmr.msra.gmra.mrb[0].mxu0 %v6312_v12  ;;  %5448 = vmatmul.mubr.bf16.vlgmr.msra.gmra.mrb[0].mxu1 %v6312_v12  ;;  %v7715_v12 = vld [vmem:[#allocation5 + $0x804] ss:$16 sps:$4 sm:$0xff]  }
 0x141   :  { %4965 = vmatpush1.bf16.msra.mxu0 %v7615_v10  ;;  %5457 = vmatpush1.bf16.msra.mxu1 %v7618_v13  ;;  %v7708_v10 = vld [vmem:[#allocation5 + $0x7e8] ss:$16 sps:$4 sm:$0xff]   ;;  %v7718_v13 = vld [vmem:[#allocation5 + $0x80c] ss:$16 sps:$4 sm:$0xff]  }
 0x142   :  { %4966 = vmatprep.subr.bf16.mxu0 %v7623_v15  ;;  %5458 = vmatprep.subr.bf16.mxu1 %v7626_v16  ;;  %v7713_v15 = vld [vmem:[#allocation5 + $0x800] ss:$16 sps:$4 sm:$0xff]   ;;  %v6314_v16 = vcombine.low %v8873_v14, %v8873_v14  ;;  %v7727_v14 = vld [vmem:[#allocation5 + $0x844] ss:$16 sps:$4 sm:$0xff]  }
 0x143   :  { %4996 = vmatprep.mubr.bf16.mxu0 %v6315_v17  ;;  %5488 = vmatprep.mubr.bf16.mxu1 %v6315_v17  ;;  %v8879_v17 = vld [vmem:[#allocation2 + $0x20] sm:$0xff] }
 0x145   :  { %4967 = vmatpush1.bf16.msra.mxu0 %v7621_v18  ;;  %5459 = vmatpush1.bf16.msra.mxu1 %v7624_v19  ;;  %v7716_v18 = vld [vmem:[#allocation5 + $0x808] ss:$16 sps:$4 sm:$0xff]   ;;  %v7721_v19 = vld [vmem:[#allocation5 + $0x824] ss:$16 sps:$4 sm:$0xff]  }
 0x146   :  { %4968 = vmatprep.subr.bf16.mxu0 %v7629_v20  ;;  %5460 = vmatprep.subr.bf16.mxu1 %v7632_v11  ;;  %v7724_v20 = vld [vmem:[#allocation5 + $0x82c] ss:$16 sps:$4 sm:$0xff]   ;;  %v6317_v11 = vcombine.high %v8879_v17, %v8879_v17 }
 0x149   :  { %4969 = vmatpush1.bf16.msra.mxu0 %v7627_v21  ;;  %5461 = vmatpush1.bf16.msra.mxu1 %v7630_v22  ;;  %v7719_v21 = vld [vmem:[#allocation5 + $0x820] ss:$16 sps:$4 sm:$0xff]   ;;  %v7722_v22 = vld [vmem:[#allocation5 + $0x828] ss:$16 sps:$4 sm:$0xff]  }
 0x14a   :  { %4970 = vmatprep.subr.bf16.mxu0 %v7635_v23  ;;  %5462 = vmatprep.subr.bf16.mxu1 %v7638_v24  ;;  %v7730_v23 = vld [vmem:[#allocation5 + $0x84c] ss:$16 sps:$4 sm:$0xff]   ;;  %v7725_v24 = vld [vmem:[#allocation5 + $0x840] ss:$16 sps:$4 sm:$0xff]  }
 0x14d   :  { %4971 = vmatpush1.bf16.msra.mxu0 %v7633_v25  ;;  %5463 = vmatpush1.bf16.msra.mxu1 %v7636_v26  ;;  %v7728_v25 = vld [vmem:[#allocation5 + $0x848] ss:$16 sps:$4 sm:$0xff]   ;;  %v7733_v26 = vld [vmem:[#allocation5 + $0x864] ss:$16 sps:$4 sm:$0xff]  }
 0x14e   :  { %4972 = vmatprep.subr.bf16.mxu0 %v7641_v27  ;;  %5464 = vmatprep.subr.bf16.mxu1 %v7644_v28  ;;  %v7736_v27 = vld [vmem:[#allocation5 + $0x86c] ss:$16 sps:$4 sm:$0xff]   ;;  %v7731_v28 = vld [vmem:[#allocation5 + $0x860] ss:$16 sps:$4 sm:$0xff]  }
 0x151   :  { %4973 = vmatpush1.bf16.msra.mxu0 %v7639_v29  ;;  %5465 = vmatpush1.bf16.msra.mxu1 %v7642_v30  ;;  %v7734_v29 = vld [vmem:[#allocation5 + $0x868] ss:$16 sps:$4 sm:$0xff]   ;;  %v7739_v30 = vld [vmem:[#allocation5 + $0x884] ss:$16 sps:$4 sm:$0xff]  }
 0x152   :  { %4974 = vmatprep.subr.bf16.mxu0 %v7647_v31  ;;  %5466 = vmatprep.subr.bf16.mxu1 %v7650_v32  ;;  %v7742_v31 = vld [vmem:[#allocation5 + $0x88c] ss:$16 sps:$4 sm:$0xff]   ;;  %v7737_v32 = vld [vmem:[#allocation5 + $0x880] ss:$16 sps:$4 sm:$0xff]  }
 0x155   :  { %4975 = vmatpush1.bf16.msra.mxu0 %v7645_v33  ;;  %5467 = vmatpush1.bf16.msra.mxu1 %v7648_v34  ;;  %v7740_v33 = vld [vmem:[#allocation5 + $0x888] ss:$16 sps:$4 sm:$0xff]   ;;  %v7745_v34 = vld [vmem:[#allocation5 + $0x8a4] ss:$16 sps:$4 sm:$0xff]  }
 0x156   :  { %4976 = vmatprep.subr.bf16.mxu0 %v7653_v35  ;;  %5468 = vmatprep.subr.bf16.mxu1 %v7656_v36  ;;  %v7748_v35 = vld [vmem:[#allocation5 + $0x8ac] ss:$16 sps:$4 sm:$0xff]   ;;  %v7743_v36 = vld [vmem:[#allocation5 + $0x8a0] ss:$16 sps:$4 sm:$0xff]  }
 0x159   :  { %4977 = vmatpush1.bf16.msra.mxu0 %v7651_v37  ;;  %5469 = vmatpush1.bf16.msra.mxu1 %v7654_v38  ;;  %v7746_v37 = vld [vmem:[#allocation5 + $0x8a8] ss:$16 sps:$4 sm:$0xff]   ;;  %v7751_v38 = vld [vmem:[#allocation5 + $0x8c4] ss:$16 sps:$4 sm:$0xff]  }
 0x15a   :  { %4978 = vmatprep.subr.bf16.mxu0 %v7659_v39  ;;  %5470 = vmatprep.subr.bf16.mxu1 %v7662_v40  ;;  %v7754_v39 = vld [vmem:[#allocation5 + $0x8cc] ss:$16 sps:$4 sm:$0xff]   ;;  %v7749_v40 = vld [vmem:[#allocation5 + $0x8c0] ss:$16 sps:$4 sm:$0xff]  }
 0x15d   :  { %4979 = vmatpush1.bf16.msra.mxu0 %v7657_v41  ;;  %5471 = vmatpush1.bf16.msra.mxu1 %v7660_v42  ;;  %v7752_v41 = vld [vmem:[#allocation5 + $0x8c8] ss:$16 sps:$4 sm:$0xff]   ;;  %v7757_v42 = vld [vmem:[#allocation5 + $0x8e4] ss:$16 sps:$4 sm:$0xff]  }
 0x15e   :  { %4980 = vmatprep.subr.bf16.mxu0 %v7665_v43  ;;  %5472 = vmatprep.subr.bf16.mxu1 %v7668_v44  ;;  %v7760_v43 = vld [vmem:[#allocation5 + $0x8ec] ss:$16 sps:$4 sm:$0xff]   ;;  %v7755_v44 = vld [vmem:[#allocation5 + $0x8e0] ss:$16 sps:$4 sm:$0xff]  }
 0x161   :  { %4981 = vmatpush1.bf16.msra.mxu0 %v7663_v45  ;;  %5473 = vmatpush1.bf16.msra.mxu1 %v7666_v46  ;;  %v7758_v45 = vld [vmem:[#allocation5 + $0x8e8] ss:$16 sps:$4 sm:$0xff]   ;;  %v7763_v46 = vld [vmem:[#allocation5 + $0x904] ss:$16 sps:$4 sm:$0xff]  }
 0x162   :  { %4982 = vmatprep.subr.bf16.mxu0 %v7671_v47  ;;  %5474 = vmatprep.subr.bf16.mxu1 %v7674_v48  ;;  %v7766_v47 = vld [vmem:[#allocation5 + $0x90c] ss:$16 sps:$4 sm:$0xff]   ;;  %v7761_v48 = vld [vmem:[#allocation5 + $0x900] ss:$16 sps:$4 sm:$0xff]  }
 0x165   :  { %4983 = vmatpush1.bf16.msra.mxu0 %v7669_v49  ;;  %5475 = vmatpush1.bf16.msra.mxu1 %v7672_v50  ;;  %v7764_v49 = vld [vmem:[#allocation5 + $0x908] ss:$16 sps:$4 sm:$0xff]   ;;  %v7769_v50 = vld [vmem:[#allocation5 + $0x924] ss:$16 sps:$4 sm:$0xff]  }
 0x166   :  { %4984 = vmatprep.subr.bf16.mxu0 %v7677_v51  ;;  %5476 = vmatprep.subr.bf16.mxu1 %v7680_v52  ;;  %v7772_v51 = vld [vmem:[#allocation5 + $0x92c] ss:$16 sps:$4 sm:$0xff]   ;;  %v7767_v52 = vld [vmem:[#allocation5 + $0x920] ss:$16 sps:$4 sm:$0xff]  }
 0x169   :  { %4985 = vmatpush1.bf16.msra.mxu0 %v7675_v53  ;;  %5477 = vmatpush1.bf16.msra.mxu1 %v7678_v54  ;;  %v7770_v53 = vld [vmem:[#allocation5 + $0x928] ss:$16 sps:$4 sm:$0xff]   ;;  %v7775_v54 = vld [vmem:[#allocation5 + $0x944] ss:$16 sps:$4 sm:$0xff]  }
 0x16a   :  { %4986 = vmatprep.subr.bf16.mxu0 %v7683_v55  ;;  %5478 = vmatprep.subr.bf16.mxu1 %v7686_v56  ;;  %v7778_v55 = vld [vmem:[#allocation5 + $0x94c] ss:$16 sps:$4 sm:$0xff]   ;;  %v7773_v56 = vld [vmem:[#allocation5 + $0x940] ss:$16 sps:$4 sm:$0xff]  }
 0x16d   :  { %4987 = vmatpush1.bf16.msra.mxu0 %v7681_v57  ;;  %5479 = vmatpush1.bf16.msra.mxu1 %v7684_v58  ;;  %v7776_v57 = vld [vmem:[#allocation5 + $0x948] ss:$16 sps:$4 sm:$0xff]   ;;  %v7781_v58 = vld [vmem:[#allocation5 + $0x964] ss:$16 sps:$4 sm:$0xff]  }
 0x16e   :  { %4988 = vmatprep.subr.bf16.mxu0 %v7689_v59  ;;  %5480 = vmatprep.subr.bf16.mxu1 %v7692_v60  ;;  %v7784_v59 = vld [vmem:[#allocation5 + $0x96c] ss:$16 sps:$4 sm:$0xff]   ;;  %v7779_v60 = vld [vmem:[#allocation5 + $0x960] ss:$16 sps:$4 sm:$0xff]  }
 0x171   :  { %4989 = vmatpush1.bf16.msra.mxu0 %v7687_v61  ;;  %5481 = vmatpush1.bf16.msra.mxu1 %v7690_v62  ;;  %v7782_v61 = vld [vmem:[#allocation5 + $0x968] ss:$16 sps:$4 sm:$0xff]   ;;  %v7787_v62 = vld [vmem:[#allocation5 + $0x984] ss:$16 sps:$4 sm:$0xff]  }
 0x172   :  { %4990 = vmatprep.subr.bf16.mxu0 %v7695_v63  ;;  %5482 = vmatprep.subr.bf16.mxu1 %v7698_v0  ;;  %v7790_v63 = vld [vmem:[#allocation5 + $0x98c] ss:$16 sps:$4 sm:$0xff]   ;;  %v7785_v0 = vld [vmem:[#allocation5 + $0x980] ss:$16 sps:$4 sm:$0xff]  }
 0x175   :  { %4991 = vmatpush1.bf16.msra.mxu0 %v7693_v1  ;;  %5483 = vmatpush1.bf16.msra.mxu1 %v7696_v2  ;;  %v7788_v1 = vld [vmem:[#allocation5 + $0x988] ss:$16 sps:$4 sm:$0xff]   ;;  %v7793_v2 = vld [vmem:[#allocation5 + $0x9a4] ss:$16 sps:$4 sm:$0xff]  }
 0x176   :  { %4992 = vmatprep.subr.bf16.mxu0 %v7701_v3  ;;  %5484 = vmatprep.subr.bf16.mxu1 %v7704_v4  ;;  %v7796_v3 = vld [vmem:[#allocation5 + $0x9ac] ss:$16 sps:$4 sm:$0xff]   ;;  %v7791_v4 = vld [vmem:[#allocation5 + $0x9a0] ss:$16 sps:$4 sm:$0xff]  }
 0x179   :  { %4993 = vmatpush1.bf16.msra.mxu0 %v7699_v5  ;;  %5485 = vmatpush1.bf16.msra.mxu1 %v7702_v6  ;;  %v7794_v5 = vld [vmem:[#allocation5 + $0x9a8] ss:$16 sps:$4 sm:$0xff]   ;;  %v7799_v6 = vld [vmem:[#allocation5 + $0x9c4] ss:$16 sps:$4 sm:$0xff]  }
 0x17a   :  { %4994 = vmatprep.subr.bf16.mxu0 %v7707_v7  ;;  %5486 = vmatprep.subr.bf16.mxu1 %v7710_v8  ;;  %v7802_v7 = vld [vmem:[#allocation5 + $0x9cc] ss:$16 sps:$4 sm:$0xff]   ;;  %v7797_v8 = vld [vmem:[#allocation5 + $0x9c0] ss:$16 sps:$4 sm:$0xff]  }
 0x17d   :  { %4995 = vmatpush1.bf16.msra.mxu0 %v7705_v9  ;;  %5487 = vmatpush1.bf16.msra.mxu1 %v7708_v10  ;;  %v7800_v9 = vld [vmem:[#allocation5 + $0x9c8] ss:$16 sps:$4 sm:$0xff]   ;;  %v7805_v10 = vld [vmem:[#allocation5 + $0x9e4] ss:$16 sps:$4 sm:$0xff]  }
 0x17e   :  { %5005 = vmatprep.subr.bf16.mxu0 %v7715_v12  ;;  %5497 = vmatprep.subr.bf16.mxu1 %v7718_v13  ;;  %v7808_v12 = vld [vmem:[#allocation5 + $0x9ec] ss:$16 sps:$4 sm:$0xff]   ;;  %v7803_v13 = vld [vmem:[#allocation5 + $0x9e0] ss:$16 sps:$4 sm:$0xff]  }
 0x180   :  { %4997 = vmatmul.mubr.bf16.vlgmr.msra.gmra.mrb[0].mxu0 %v6314_v16  ;;  %5489 = vmatmul.mubr.bf16.vlgmr.msra.gmra.mrb[0].mxu1 %v6314_v16  ;;  %v7813_v16 = vld [vmem:[#allocation5 + $0xa04] ss:$16 sps:$4 sm:$0xff]  }
 0x181   :  { %5006 = vmatpush1.bf16.msra.mxu0 %v7713_v15  ;;  %5498 = vmatpush1.bf16.msra.mxu1 %v7716_v18  ;;  %v7806_v15 = vld [vmem:[#allocation5 + $0x9e8] ss:$16 sps:$4 sm:$0xff]   ;;  %v7816_v18 = vld [vmem:[#allocation5 + $0xa0c] ss:$16 sps:$4 sm:$0xff]  }
 0x182   :  { %5007 = vmatprep.subr.bf16.mxu0 %v7721_v19  ;;  %5499 = vmatprep.subr.bf16.mxu1 %v7724_v20  ;;  %v8883_v19 = vld [vmem:[#allocation2 + $0x28] sm:$0xff]  ;;  %v6316_v20 = vcombine.low %v8879_v17, %v8879_v17  ;;  %v7825_v17 = vld [vmem:[#allocation5 + $0xa44] ss:$16 sps:$4 sm:$0xff]  }
 0x183   :  { %5037 = vmatprep.mubr.bf16.mxu0 %v6317_v11  ;;  %5529 = vmatprep.mubr.bf16.mxu1 %v6317_v11  ;;  %v7811_v11 = vld [vmem:[#allocation5 + $0xa00] ss:$16 sps:$4 sm:$0xff]  }
 0x185   :  { %5008 = vmatpush1.bf16.msra.mxu0 %v7719_v21  ;;  %5500 = vmatpush1.bf16.msra.mxu1 %v7722_v22  ;;  %v7814_v21 = vld [vmem:[#allocation5 + $0xa08] ss:$16 sps:$4 sm:$0xff]   ;;  %v7819_v22 = vld [vmem:[#allocation5 + $0xa24] ss:$16 sps:$4 sm:$0xff]  }
 0x186   :  { %5009 = vmatprep.subr.bf16.mxu0 %v7727_v14  ;;  %5501 = vmatprep.subr.bf16.mxu1 %v7730_v23  ;;  %v7822_v14 = vld [vmem:[#allocation5 + $0xa2c] ss:$16 sps:$4 sm:$0xff]   ;;  %v6319_v23 = vcombine.high %v8883_v19, %v8883_v19 }
 0x189   :  { %5010 = vmatpush1.bf16.msra.mxu0 %v7725_v24  ;;  %5502 = vmatpush1.bf16.msra.mxu1 %v7728_v25  ;;  %v7817_v24 = vld [vmem:[#allocation5 + $0xa20] ss:$16 sps:$4 sm:$0xff]   ;;  %v7820_v25 = vld [vmem:[#allocation5 + $0xa28] ss:$16 sps:$4 sm:$0xff]  }
 0x18a   :  { %5011 = vmatprep.subr.bf16.mxu0 %v7733_v26  ;;  %5503 = vmatprep.subr.bf16.mxu1 %v7736_v27  ;;  %v7828_v26 = vld [vmem:[#allocation5 + $0xa4c] ss:$16 sps:$4 sm:$0xff]   ;;  %v7823_v27 = vld [vmem:[#allocation5 + $0xa40] ss:$16 sps:$4 sm:$0xff]  }
 0x18d   :  { %5012 = vmatpush1.bf16.msra.mxu0 %v7731_v28  ;;  %5504 = vmatpush1.bf16.msra.mxu1 %v7734_v29  ;;  %v7826_v28 = vld [vmem:[#allocation5 + $0xa48] ss:$16 sps:$4 sm:$0xff]   ;;  %v7831_v29 = vld [vmem:[#allocation5 + $0xa64] ss:$16 sps:$4 sm:$0xff]  }
 0x18e   :  { %5013 = vmatprep.subr.bf16.mxu0 %v7739_v30  ;;  %5505 = vmatprep.subr.bf16.mxu1 %v7742_v31  ;;  %v7834_v30 = vld [vmem:[#allocation5 + $0xa6c] ss:$16 sps:$4 sm:$0xff]   ;;  %v7829_v31 = vld [vmem:[#allocation5 + $0xa60] ss:$16 sps:$4 sm:$0xff]  }
 0x191   :  { %5014 = vmatpush1.bf16.msra.mxu0 %v7737_v32  ;;  %5506 = vmatpush1.bf16.msra.mxu1 %v7740_v33  ;;  %v7832_v32 = vld [vmem:[#allocation5 + $0xa68] ss:$16 sps:$4 sm:$0xff]   ;;  %v7837_v33 = vld [vmem:[#allocation5 + $0xa84] ss:$16 sps:$4 sm:$0xff]  }
 0x192   :  { %5015 = vmatprep.subr.bf16.mxu0 %v7745_v34  ;;  %5507 = vmatprep.subr.bf16.mxu1 %v7748_v35  ;;  %v7840_v34 = vld [vmem:[#allocation5 + $0xa8c] ss:$16 sps:$4 sm:$0xff]   ;;  %v7835_v35 = vld [vmem:[#allocation5 + $0xa80] ss:$16 sps:$4 sm:$0xff]  }
 0x195   :  { %5016 = vmatpush1.bf16.msra.mxu0 %v7743_v36  ;;  %5508 = vmatpush1.bf16.msra.mxu1 %v7746_v37  ;;  %v7838_v36 = vld [vmem:[#allocation5 + $0xa88] ss:$16 sps:$4 sm:$0xff]   ;;  %v7843_v37 = vld [vmem:[#allocation5 + $0xaa4] ss:$16 sps:$4 sm:$0xff]  }
 0x196   :  { %5017 = vmatprep.subr.bf16.mxu0 %v7751_v38  ;;  %5509 = vmatprep.subr.bf16.mxu1 %v7754_v39  ;;  %v7846_v38 = vld [vmem:[#allocation5 + $0xaac] ss:$16 sps:$4 sm:$0xff]   ;;  %v7841_v39 = vld [vmem:[#allocation5 + $0xaa0] ss:$16 sps:$4 sm:$0xff]  }
 0x199   :  { %5018 = vmatpush1.bf16.msra.mxu0 %v7749_v40  ;;  %5510 = vmatpush1.bf16.msra.mxu1 %v7752_v41  ;;  %v7844_v40 = vld [vmem:[#allocation5 + $0xaa8] ss:$16 sps:$4 sm:$0xff]   ;;  %v7849_v41 = vld [vmem:[#allocation5 + $0xac4] ss:$16 sps:$4 sm:$0xff]  }
 0x19a   :  { %5019 = vmatprep.subr.bf16.mxu0 %v7757_v42  ;;  %5511 = vmatprep.subr.bf16.mxu1 %v7760_v43  ;;  %v7852_v42 = vld [vmem:[#allocation5 + $0xacc] ss:$16 sps:$4 sm:$0xff]   ;;  %v7847_v43 = vld [vmem:[#allocation5 + $0xac0] ss:$16 sps:$4 sm:$0xff]  }
 0x19d   :  { %5020 = vmatpush1.bf16.msra.mxu0 %v7755_v44  ;;  %5512 = vmatpush1.bf16.msra.mxu1 %v7758_v45  ;;  %v7850_v44 = vld [vmem:[#allocation5 + $0xac8] ss:$16 sps:$4 sm:$0xff]   ;;  %v7855_v45 = vld [vmem:[#allocation5 + $0xae4] ss:$16 sps:$4 sm:$0xff]  }
 0x19e   :  { %5021 = vmatprep.subr.bf16.mxu0 %v7763_v46  ;;  %5513 = vmatprep.subr.bf16.mxu1 %v7766_v47  ;;  %v7858_v46 = vld [vmem:[#allocation5 + $0xaec] ss:$16 sps:$4 sm:$0xff]   ;;  %v7853_v47 = vld [vmem:[#allocation5 + $0xae0] ss:$16 sps:$4 sm:$0xff]  }
 0x1a1   :  { %5022 = vmatpush1.bf16.msra.mxu0 %v7761_v48  ;;  %5514 = vmatpush1.bf16.msra.mxu1 %v7764_v49  ;;  %v7856_v48 = vld [vmem:[#allocation5 + $0xae8] ss:$16 sps:$4 sm:$0xff]   ;;  %v7861_v49 = vld [vmem:[#allocation5 + $0xb04] ss:$16 sps:$4 sm:$0xff]  }
 0x1a2   :  { %5023 = vmatprep.subr.bf16.mxu0 %v7769_v50  ;;  %5515 = vmatprep.subr.bf16.mxu1 %v7772_v51  ;;  %v7864_v50 = vld [vmem:[#allocation5 + $0xb0c] ss:$16 sps:$4 sm:$0xff]   ;;  %v7859_v51 = vld [vmem:[#allocation5 + $0xb00] ss:$16 sps:$4 sm:$0xff]  }
 0x1a5   :  { %5024 = vmatpush1.bf16.msra.mxu0 %v7767_v52  ;;  %5516 = vmatpush1.bf16.msra.mxu1 %v7770_v53  ;;  %v7862_v52 = vld [vmem:[#allocation5 + $0xb08] ss:$16 sps:$4 sm:$0xff]   ;;  %v7867_v53 = vld [vmem:[#allocation5 + $0xb24] ss:$16 sps:$4 sm:$0xff]  }
 0x1a6   :  { %5025 = vmatprep.subr.bf16.mxu0 %v7775_v54  ;;  %5517 = vmatprep.subr.bf16.mxu1 %v7778_v55  ;;  %v7870_v54 = vld [vmem:[#allocation5 + $0xb2c] ss:$16 sps:$4 sm:$0xff]   ;;  %v7865_v55 = vld [vmem:[#allocation5 + $0xb20] ss:$16 sps:$4 sm:$0xff]  }
 0x1a9   :  { %5026 = vmatpush1.bf16.msra.mxu0 %v7773_v56  ;;  %5518 = vmatpush1.bf16.msra.mxu1 %v7776_v57  ;;  %v7868_v56 = vld [vmem:[#allocation5 + $0xb28] ss:$16 sps:$4 sm:$0xff]   ;;  %v7873_v57 = vld [vmem:[#allocation5 + $0xb44] ss:$16 sps:$4 sm:$0xff]  }
 0x1aa   :  { %5027 = vmatprep.subr.bf16.mxu0 %v7781_v58  ;;  %5519 = vmatprep.subr.bf16.mxu1 %v7784_v59  ;;  %v7876_v58 = vld [vmem:[#allocation5 + $0xb4c] ss:$16 sps:$4 sm:$0xff]   ;;  %v7871_v59 = vld [vmem:[#allocation5 + $0xb40] ss:$16 sps:$4 sm:$0xff]  }
 0x1ad   :  { %5028 = vmatpush1.bf16.msra.mxu0 %v7779_v60  ;;  %5520 = vmatpush1.bf16.msra.mxu1 %v7782_v61  ;;  %v7874_v60 = vld [vmem:[#allocation5 + $0xb48] ss:$16 sps:$4 sm:$0xff]   ;;  %v7879_v61 = vld [vmem:[#allocation5 + $0xb64] ss:$16 sps:$4 sm:$0xff]  }
 0x1ae   :  { %5029 = vmatprep.subr.bf16.mxu0 %v7787_v62  ;;  %5521 = vmatprep.subr.bf16.mxu1 %v7790_v63  ;;  %v7882_v62 = vld [vmem:[#allocation5 + $0xb6c] ss:$16 sps:$4 sm:$0xff]   ;;  %v7877_v63 = vld [vmem:[#allocation5 + $0xb60] ss:$16 sps:$4 sm:$0xff]  }
 0x1b1   :  { %5030 = vmatpush1.bf16.msra.mxu0 %v7785_v0  ;;  %5522 = vmatpush1.bf16.msra.mxu1 %v7788_v1  ;;  %v7880_v0 = vld [vmem:[#allocation5 + $0xb68] ss:$16 sps:$4 sm:$0xff]   ;;  %v7885_v1 = vld [vmem:[#allocation5 + $0xb84] ss:$16 sps:$4 sm:$0xff]  }
 0x1b2   :  { %5031 = vmatprep.subr.bf16.mxu0 %v7793_v2  ;;  %5523 = vmatprep.subr.bf16.mxu1 %v7796_v3  ;;  %v7888_v2 = vld [vmem:[#allocation5 + $0xb8c] ss:$16 sps:$4 sm:$0xff]   ;;  %v7883_v3 = vld [vmem:[#allocation5 + $0xb80] ss:$16 sps:$4 sm:$0xff]  }
 0x1b5   :  { %5032 = vmatpush1.bf16.msra.mxu0 %v7791_v4  ;;  %5524 = vmatpush1.bf16.msra.mxu1 %v7794_v5  ;;  %v7886_v4 = vld [vmem:[#allocation5 + $0xb88] ss:$16 sps:$4 sm:$0xff]   ;;  %v7891_v5 = vld [vmem:[#allocation5 + $0xba4] ss:$16 sps:$4 sm:$0xff]  }
 0x1b6   :  { %5033 = vmatprep.subr.bf16.mxu0 %v7799_v6  ;;  %5525 = vmatprep.subr.bf16.mxu1 %v7802_v7  ;;  %v7894_v6 = vld [vmem:[#allocation5 + $0xbac] ss:$16 sps:$4 sm:$0xff]   ;;  %v7889_v7 = vld [vmem:[#allocation5 + $0xba0] ss:$16 sps:$4 sm:$0xff]  }
 0x1b9   :  { %5034 = vmatpush1.bf16.msra.mxu0 %v7797_v8  ;;  %5526 = vmatpush1.bf16.msra.mxu1 %v7800_v9  ;;  %v7892_v8 = vld [vmem:[#allocation5 + $0xba8] ss:$16 sps:$4 sm:$0xff]   ;;  %v7897_v9 = vld [vmem:[#allocation5 + $0xbc4] ss:$16 sps:$4 sm:$0xff]  }
 0x1ba   :  { %5035 = vmatprep.subr.bf16.mxu0 %v7805_v10  ;;  %5527 = vmatprep.subr.bf16.mxu1 %v7808_v12  ;;  %v7900_v10 = vld [vmem:[#allocation5 + $0xbcc] ss:$16 sps:$4 sm:$0xff]   ;;  %v7895_v12 = vld [vmem:[#allocation5 + $0xbc0] ss:$16 sps:$4 sm:$0xff]  }
 0x1bd   :  { %5036 = vmatpush1.bf16.msra.mxu0 %v7803_v13  ;;  %5528 = vmatpush1.bf16.msra.mxu1 %v7806_v15  ;;  %v7898_v13 = vld [vmem:[#allocation5 + $0xbc8] ss:$16 sps:$4 sm:$0xff]   ;;  %v7903_v15 = vld [vmem:[#allocation5 + $0xbe4] ss:$16 sps:$4 sm:$0xff]  }
 0x1be   :  { %5046 = vmatprep.subr.bf16.mxu0 %v7813_v16  ;;  %5538 = vmatprep.subr.bf16.mxu1 %v7816_v18  ;;  %v7906_v16 = vld [vmem:[#allocation5 + $0xbec] ss:$16 sps:$4 sm:$0xff]   ;;  %v7901_v18 = vld [vmem:[#allocation5 + $0xbe0] ss:$16 sps:$4 sm:$0xff]  }
 0x1c0   :  { %5038 = vmatmul.mubr.bf16.vlgmr.msra.gmra.mrb[0].mxu0 %v6316_v20  ;;  %5530 = vmatmul.mubr.bf16.vlgmr.msra.gmra.mrb[0].mxu1 %v6316_v20  ;;  %v7904_v20 = vld [vmem:[#allocation5 + $0xbe8] ss:$16 sps:$4 sm:$0xff]  }
 0x1c1   :  { %5047 = vmatpush1.bf16.msra.mxu0 %v7811_v11  ;;  %5539 = vmatpush1.bf16.msra.mxu1 %v7814_v21  ;;  %v7911_v11 = vld [vmem:[#allocation5 + $0xc04] ss:$16 sps:$4 sm:$0xff]   ;;  %v7914_v21 = vld [vmem:[#allocation5 + $0xc0c] ss:$16 sps:$4 sm:$0xff]  }
 0x1c2   :  { %5048 = vmatprep.subr.bf16.mxu0 %v7819_v22  ;;  %5540 = vmatprep.subr.bf16.mxu1 %v7822_v14  ;;  %v8889_v22 = vld [vmem:[#allocation2 + $0x30] sm:$0xff]  ;;  %v6318_v14 = vcombine.low %v8883_v19, %v8883_v19 }
 0x1c3   :  { %5078 = vmatprep.mubr.bf16.mxu0 %v6319_v23  ;;  %5570 = vmatprep.mubr.bf16.mxu1 %v6319_v23  ;;  %v7909_v23 = vld [vmem:[#allocation5 + $0xc00] ss:$16 sps:$4 sm:$0xff]   ;;  %v7923_v19 = vld [vmem:[#allocation5 + $0xc44] ss:$16 sps:$4 sm:$0xff]  }
 0x1c5   :  { %5049 = vmatpush1.bf16.msra.mxu0 %v7817_v24  ;;  %5541 = vmatpush1.bf16.msra.mxu1 %v7820_v25  ;;  %v7912_v24 = vld [vmem:[#allocation5 + $0xc08] ss:$16 sps:$4 sm:$0xff]   ;;  %v7917_v25 = vld [vmem:[#allocation5 + $0xc24] ss:$16 sps:$4 sm:$0xff]  }
 0x1c6   :  { %5050 = vmatprep.subr.bf16.mxu0 %v7825_v17  ;;  %5542 = vmatprep.subr.bf16.mxu1 %v7828_v26  ;;  %v7920_v17 = vld [vmem:[#allocation5 + $0xc2c] ss:$16 sps:$4 sm:$0xff]   ;;  %v6321_v26 = vcombine.high %v8889_v22, %v8889_v22 }
 0x1c9   :  { %5051 = vmatpush1.bf16.msra.mxu0 %v7823_v27  ;;  %5543 = vmatpush1.bf16.msra.mxu1 %v7826_v28  ;;  %v7915_v27 = vld [vmem:[#allocation5 + $0xc20] ss:$16 sps:$4 sm:$0xff]   ;;  %v7918_v28 = vld [vmem:[#allocation5 + $0xc28] ss:$16 sps:$4 sm:$0xff]  }
 0x1ca   :  { %5052 = vmatprep.subr.bf16.mxu0 %v7831_v29  ;;  %5544 = vmatprep.subr.bf16.mxu1 %v7834_v30  ;;  %v7926_v29 = vld [vmem:[#allocation5 + $0xc4c] ss:$16 sps:$4 sm:$0xff]   ;;  %v7921_v30 = vld [vmem:[#allocation5 + $0xc40] ss:$16 sps:$4 sm:$0xff]  }
 0x1cd   :  { %5053 = vmatpush1.bf16.msra.mxu0 %v7829_v31  ;;  %5545 = vmatpush1.bf16.msra.mxu1 %v7832_v32  ;;  %v7924_v31 = vld [vmem:[#allocation5 + $0xc48] ss:$16 sps:$4 sm:$0xff]   ;;  %v7929_v32 = vld [vmem:[#allocation5 + $0xc64] ss:$16 sps:$4 sm:$0xff]  }
 0x1ce   :  { %5054 = vmatprep.subr.bf16.mxu0 %v7837_v33  ;;  %5546 = vmatprep.subr.bf16.mxu1 %v7840_v34  ;;  %v7932_v33 = vld [vmem:[#allocation5 + $0xc6c] ss:$16 sps:$4 sm:$0xff]   ;;  %v7927_v34 = vld [vmem:[#allocation5 + $0xc60] ss:$16 sps:$4 sm:$0xff]  }
 0x1d1   :  { %5055 = vmatpush1.bf16.msra.mxu0 %v7835_v35  ;;  %5547 = vmatpush1.bf16.msra.mxu1 %v7838_v36  ;;  %v7930_v35 = vld [vmem:[#allocation5 + $0xc68] ss:$16 sps:$4 sm:$0xff]   ;;  %v7935_v36 = vld [vmem:[#allocation5 + $0xc84] ss:$16 sps:$4 sm:$0xff]  }
 0x1d2   :  { %5056 = vmatprep.subr.bf16.mxu0 %v7843_v37  ;;  %5548 = vmatprep.subr.bf16.mxu1 %v7846_v38  ;;  %v7938_v37 = vld [vmem:[#allocation5 + $0xc8c] ss:$16 sps:$4 sm:$0xff]   ;;  %v7933_v38 = vld [vmem:[#allocation5 + $0xc80] ss:$16 sps:$4 sm:$0xff]  }
 0x1d5   :  { %5057 = vmatpush1.bf16.msra.mxu0 %v7841_v39  ;;  %5549 = vmatpush1.bf16.msra.mxu1 %v7844_v40  ;;  %v7936_v39 = vld [vmem:[#allocation5 + $0xc88] ss:$16 sps:$4 sm:$0xff]   ;;  %v7941_v40 = vld [vmem:[#allocation5 + $0xca4] ss:$16 sps:$4 sm:$0xff]  }
 0x1d6   :  { %5058 = vmatprep.subr.bf16.mxu0 %v7849_v41  ;;  %5550 = vmatprep.subr.bf16.mxu1 %v7852_v42  ;;  %v7944_v41 = vld [vmem:[#allocation5 + $0xcac] ss:$16 sps:$4 sm:$0xff]   ;;  %v7939_v42 = vld [vmem:[#allocation5 + $0xca0] ss:$16 sps:$4 sm:$0xff]  }
 0x1d9   :  { %5059 = vmatpush1.bf16.msra.mxu0 %v7847_v43  ;;  %5551 = vmatpush1.bf16.msra.mxu1 %v7850_v44  ;;  %v7942_v43 = vld [vmem:[#allocation5 + $0xca8] ss:$16 sps:$4 sm:$0xff]   ;;  %v7947_v44 = vld [vmem:[#allocation5 + $0xcc4] ss:$16 sps:$4 sm:$0xff]  }
 0x1da   :  { %5060 = vmatprep.subr.bf16.mxu0 %v7855_v45  ;;  %5552 = vmatprep.subr.bf16.mxu1 %v7858_v46  ;;  %v7950_v45 = vld [vmem:[#allocation5 + $0xccc] ss:$16 sps:$4 sm:$0xff]   ;;  %v7945_v46 = vld [vmem:[#allocation5 + $0xcc0] ss:$16 sps:$4 sm:$0xff]  }
 0x1dd   :  { %5061 = vmatpush1.bf16.msra.mxu0 %v7853_v47  ;;  %5553 = vmatpush1.bf16.msra.mxu1 %v7856_v48  ;;  %v7948_v47 = vld [vmem:[#allocation5 + $0xcc8] ss:$16 sps:$4 sm:$0xff]   ;;  %v7953_v48 = vld [vmem:[#allocation5 + $0xce4] ss:$16 sps:$4 sm:$0xff]  }
 0x1de   :  { %5062 = vmatprep.subr.bf16.mxu0 %v7861_v49  ;;  %5554 = vmatprep.subr.bf16.mxu1 %v7864_v50  ;;  %v7956_v49 = vld [vmem:[#allocation5 + $0xcec] ss:$16 sps:$4 sm:$0xff]   ;;  %v7951_v50 = vld [vmem:[#allocation5 + $0xce0] ss:$16 sps:$4 sm:$0xff]  }
 0x1e1   :  { %5063 = vmatpush1.bf16.msra.mxu0 %v7859_v51  ;;  %5555 = vmatpush1.bf16.msra.mxu1 %v7862_v52  ;;  %v7954_v51 = vld [vmem:[#allocation5 + $0xce8] ss:$16 sps:$4 sm:$0xff]   ;;  %v7959_v52 = vld [vmem:[#allocation5 + $0xd04] ss:$16 sps:$4 sm:$0xff]  }
 0x1e2   :  { %5064 = vmatprep.subr.bf16.mxu0 %v7867_v53  ;;  %5556 = vmatprep.subr.bf16.mxu1 %v7870_v54  ;;  %v7962_v53 = vld [vmem:[#allocation5 + $0xd0c] ss:$16 sps:$4 sm:$0xff]   ;;  %v7957_v54 = vld [vmem:[#allocation5 + $0xd00] ss:$16 sps:$4 sm:$0xff]  }
 0x1e5   :  { %5065 = vmatpush1.bf16.msra.mxu0 %v7865_v55  ;;  %5557 = vmatpush1.bf16.msra.mxu1 %v7868_v56  ;;  %v7960_v55 = vld [vmem:[#allocation5 + $0xd08] ss:$16 sps:$4 sm:$0xff]   ;;  %v7965_v56 = vld [vmem:[#allocation5 + $0xd24] ss:$16 sps:$4 sm:$0xff]  }
 0x1e6   :  { %5066 = vmatprep.subr.bf16.mxu0 %v7873_v57  ;;  %5558 = vmatprep.subr.bf16.mxu1 %v7876_v58  ;;  %v7968_v57 = vld [vmem:[#allocation5 + $0xd2c] ss:$16 sps:$4 sm:$0xff]   ;;  %v7963_v58 = vld [vmem:[#allocation5 + $0xd20] ss:$16 sps:$4 sm:$0xff]  }
 0x1e9   :  { %5067 = vmatpush1.bf16.msra.mxu0 %v7871_v59  ;;  %5559 = vmatpush1.bf16.msra.mxu1 %v7874_v60  ;;  %v7966_v59 = vld [vmem:[#allocation5 + $0xd28] ss:$16 sps:$4 sm:$0xff]   ;;  %v7971_v60 = vld [vmem:[#allocation5 + $0xd44] ss:$16 sps:$4 sm:$0xff]  }
 0x1ea   :  { %5068 = vmatprep.subr.bf16.mxu0 %v7879_v61  ;;  %5560 = vmatprep.subr.bf16.mxu1 %v7882_v62  ;;  %v7974_v61 = vld [vmem:[#allocation5 + $0xd4c] ss:$16 sps:$4 sm:$0xff]   ;;  %v7969_v62 = vld [vmem:[#allocation5 + $0xd40] ss:$16 sps:$4 sm:$0xff]  }
 0x1ed   :  { %5069 = vmatpush1.bf16.msra.mxu0 %v7877_v63  ;;  %5561 = vmatpush1.bf16.msra.mxu1 %v7880_v0  ;;  %v7972_v63 = vld [vmem:[#allocation5 + $0xd48] ss:$16 sps:$4 sm:$0xff]   ;;  %v7977_v0 = vld [vmem:[#allocation5 + $0xd64] ss:$16 sps:$4 sm:$0xff]  }
 0x1ee   :  { %5070 = vmatprep.subr.bf16.mxu0 %v7885_v1  ;;  %5562 = vmatprep.subr.bf16.mxu1 %v7888_v2  ;;  %v7980_v1 = vld [vmem:[#allocation5 + $0xd6c] ss:$16 sps:$4 sm:$0xff]   ;;  %v7975_v2 = vld [vmem:[#allocation5 + $0xd60] ss:$16 sps:$4 sm:$0xff]  }
 0x1f1   :  { %5071 = vmatpush1.bf16.msra.mxu0 %v7883_v3  ;;  %5563 = vmatpush1.bf16.msra.mxu1 %v7886_v4  ;;  %v7978_v3 = vld [vmem:[#allocation5 + $0xd68] ss:$16 sps:$4 sm:$0xff]   ;;  %v7983_v4 = vld [vmem:[#allocation5 + $0xd84] ss:$16 sps:$4 sm:$0xff]  }
 0x1f2   :  { %5072 = vmatprep.subr.bf16.mxu0 %v7891_v5  ;;  %5564 = vmatprep.subr.bf16.mxu1 %v7894_v6  ;;  %v7986_v5 = vld [vmem:[#allocation5 + $0xd8c] ss:$16 sps:$4 sm:$0xff]   ;;  %v7981_v6 = vld [vmem:[#allocation5 + $0xd80] ss:$16 sps:$4 sm:$0xff]  }
 0x1f5   :  { %5073 = vmatpush1.bf16.msra.mxu0 %v7889_v7  ;;  %5565 = vmatpush1.bf16.msra.mxu1 %v7892_v8  ;;  %v7984_v7 = vld [vmem:[#allocation5 + $0xd88] ss:$16 sps:$4 sm:$0xff]   ;;  %v7989_v8 = vld [vmem:[#allocation5 + $0xda4] ss:$16 sps:$4 sm:$0xff]  }
 0x1f6   :  { %5074 = vmatprep.subr.bf16.mxu0 %v7897_v9  ;;  %5566 = vmatprep.subr.bf16.mxu1 %v7900_v10  ;;  %v7992_v9 = vld [vmem:[#allocation5 + $0xdac] ss:$16 sps:$4 sm:$0xff]   ;;  %v7987_v10 = vld [vmem:[#allocation5 + $0xda0] ss:$16 sps:$4 sm:$0xff]  }
 0x1f9   :  { %5075 = vmatpush1.bf16.msra.mxu0 %v7895_v12  ;;  %5567 = vmatpush1.bf16.msra.mxu1 %v7898_v13  ;;  %v7990_v12 = vld [vmem:[#allocation5 + $0xda8] ss:$16 sps:$4 sm:$0xff]   ;;  %v7995_v13 = vld [vmem:[#allocation5 + $0xdc4] ss:$16 sps:$4 sm:$0xff]  }
 0x1fa   :  { %5076 = vmatprep.subr.bf16.mxu0 %v7903_v15  ;;  %5568 = vmatprep.subr.bf16.mxu1 %v7906_v16  ;;  %v7998_v15 = vld [vmem:[#allocation5 + $0xdcc] ss:$16 sps:$4 sm:$0xff]   ;;  %v7993_v16 = vld [vmem:[#allocation5 + $0xdc0] ss:$16 sps:$4 sm:$0xff]  }
 0x1fd   :  { %5077 = vmatpush1.bf16.msra.mxu0 %v7901_v18  ;;  %5569 = vmatpush1.bf16.msra.mxu1 %v7904_v20  ;;  %v7996_v18 = vld [vmem:[#allocation5 + $0xdc8] ss:$16 sps:$4 sm:$0xff]   ;;  %v8001_v20 = vld [vmem:[#allocation5 + $0xde4] ss:$16 sps:$4 sm:$0xff]  }
 0x1fe   :  { %5087 = vmatprep.subr.bf16.mxu0 %v7911_v11  ;;  %5579 = vmatprep.subr.bf16.mxu1 %v7914_v21  ;;  %v8004_v11 = vld [vmem:[#allocation5 + $0xdec] ss:$16 sps:$4 sm:$0xff]   ;;  %v7999_v21 = vld [vmem:[#allocation5 + $0xde0] ss:$16 sps:$4 sm:$0xff]  }
 0x200   :  { %5079 = vmatmul.mubr.bf16.vlgmr.msra.gmra.mrb[0].mxu0 %v6318_v14  ;;  %5571 = vmatmul.mubr.bf16.vlgmr.msra.gmra.mrb[0].mxu1 %v6318_v14  ;;  %v8002_v14 = vld [vmem:[#allocation5 + $0xde8] ss:$16 sps:$4 sm:$0xff]  }
 0x201   :  { %5088 = vmatpush1.bf16.msra.mxu0 %v7909_v23  ;;  %5580 = vmatpush1.bf16.msra.mxu1 %v7912_v24  ;;  %v8009_v23 = vld [vmem:[#allocation5 + $0xe04] ss:$16 sps:$4 sm:$0xff]   ;;  %v8012_v24 = vld [vmem:[#allocation5 + $0xe0c] ss:$16 sps:$4 sm:$0xff]  }
 0x202   :  { %5089 = vmatprep.subr.bf16.mxu0 %v7917_v25  ;;  %5581 = vmatprep.subr.bf16.mxu1 %v7920_v17  ;;  %v8895_v25 = vld [vmem:[#allocation2 + $0x38] sm:$0xff]  ;;  %v6320_v17 = vcombine.low %v8889_v22, %v8889_v22  ;;  %v8021_v22 = vld [vmem:[#allocation5 + $0xe44] ss:$16 sps:$4 sm:$0xff]  }
 0x203   :  { %5119 = vmatprep.mubr.bf16.mxu0 %v6321_v26  ;;  %5611 = vmatprep.mubr.bf16.mxu1 %v6321_v26  ;;  %v8007_v26 = vld [vmem:[#allocation5 + $0xe00] ss:$16 sps:$4 sm:$0xff]  }
 0x205   :  { %5090 = vmatpush1.bf16.msra.mxu0 %v7915_v27  ;;  %5582 = vmatpush1.bf16.msra.mxu1 %v7918_v28  ;;  %v8010_v27 = vld [vmem:[#allocation5 + $0xe08] ss:$16 sps:$4 sm:$0xff]   ;;  %v8015_v28 = vld [vmem:[#allocation5 + $0xe24] ss:$16 sps:$4 sm:$0xff]  }
 0x206   :  { %5091 = vmatprep.subr.bf16.mxu0 %v7923_v19  ;;  %5583 = vmatprep.subr.bf16.mxu1 %v7926_v29  ;;  %v8018_v19 = vld [vmem:[#allocation5 + $0xe2c] ss:$16 sps:$4 sm:$0xff]   ;;  %v6323_v29 = vcombine.high %v8895_v25, %v8895_v25 }
 0x209   :  { %5092 = vmatpush1.bf16.msra.mxu0 %v7921_v30  ;;  %5584 = vmatpush1.bf16.msra.mxu1 %v7924_v31  ;;  %v8013_v30 = vld [vmem:[#allocation5 + $0xe20] ss:$16 sps:$4 sm:$0xff]   ;;  %v8016_v31 = vld [vmem:[#allocation5 + $0xe28] ss:$16 sps:$4 sm:$0xff]  }
 0x20a   :  { %5093 = vmatprep.subr.bf16.mxu0 %v7929_v32  ;;  %5585 = vmatprep.subr.bf16.mxu1 %v7932_v33  ;;  %v8024_v32 = vld [vmem:[#allocation5 + $0xe4c] ss:$16 sps:$4 sm:$0xff]   ;;  %v8019_v33 = vld [vmem:[#allocation5 + $0xe40] ss:$16 sps:$4 sm:$0xff]  }
 0x20d   :  { %5094 = vmatpush1.bf16.msra.mxu0 %v7927_v34  ;;  %5586 = vmatpush1.bf16.msra.mxu1 %v7930_v35  ;;  %v8022_v34 = vld [vmem:[#allocation5 + $0xe48] ss:$16 sps:$4 sm:$0xff]   ;;  %v8027_v35 = vld [vmem:[#allocation5 + $0xe64] ss:$16 sps:$4 sm:$0xff]  }
 0x20e   :  { %5095 = vmatprep.subr.bf16.mxu0 %v7935_v36  ;;  %5587 = vmatprep.subr.bf16.mxu1 %v7938_v37  ;;  %v8030_v36 = vld [vmem:[#allocation5 + $0xe6c] ss:$16 sps:$4 sm:$0xff]   ;;  %v8025_v37 = vld [vmem:[#allocation5 + $0xe60] ss:$16 sps:$4 sm:$0xff]  }
 0x211   :  { %5096 = vmatpush1.bf16.msra.mxu0 %v7933_v38  ;;  %5588 = vmatpush1.bf16.msra.mxu1 %v7936_v39  ;;  %v8028_v38 = vld [vmem:[#allocation5 + $0xe68] ss:$16 sps:$4 sm:$0xff]   ;;  %v8033_v39 = vld [vmem:[#allocation5 + $0xe84] ss:$16 sps:$4 sm:$0xff]  }
 0x212   :  { %5097 = vmatprep.subr.bf16.mxu0 %v7941_v40  ;;  %5589 = vmatprep.subr.bf16.mxu1 %v7944_v41  ;;  %v8036_v40 = vld [vmem:[#allocation5 + $0xe8c] ss:$16 sps:$4 sm:$0xff]   ;;  %v8031_v41 = vld [vmem:[#allocation5 + $0xe80] ss:$16 sps:$4 sm:$0xff]  }
 0x215   :  { %5098 = vmatpush1.bf16.msra.mxu0 %v7939_v42  ;;  %5590 = vmatpush1.bf16.msra.mxu1 %v7942_v43  ;;  %v8034_v42 = vld [vmem:[#allocation5 + $0xe88] ss:$16 sps:$4 sm:$0xff]   ;;  %v8039_v43 = vld [vmem:[#allocation5 + $0xea4] ss:$16 sps:$4 sm:$0xff]  }
 0x216   :  { %5099 = vmatprep.subr.bf16.mxu0 %v7947_v44  ;;  %5591 = vmatprep.subr.bf16.mxu1 %v7950_v45  ;;  %v8042_v44 = vld [vmem:[#allocation5 + $0xeac] ss:$16 sps:$4 sm:$0xff]   ;;  %v8037_v45 = vld [vmem:[#allocation5 + $0xea0] ss:$16 sps:$4 sm:$0xff]  }
 0x219   :  { %5100 = vmatpush1.bf16.msra.mxu0 %v7945_v46  ;;  %5592 = vmatpush1.bf16.msra.mxu1 %v7948_v47  ;;  %v8040_v46 = vld [vmem:[#allocation5 + $0xea8] ss:$16 sps:$4 sm:$0xff]   ;;  %v8045_v47 = vld [vmem:[#allocation5 + $0xec4] ss:$16 sps:$4 sm:$0xff]  }
 0x21a   :  { %5101 = vmatprep.subr.bf16.mxu0 %v7953_v48  ;;  %5593 = vmatprep.subr.bf16.mxu1 %v7956_v49  ;;  %v8048_v48 = vld [vmem:[#allocation5 + $0xecc] ss:$16 sps:$4 sm:$0xff]   ;;  %v8043_v49 = vld [vmem:[#allocation5 + $0xec0] ss:$16 sps:$4 sm:$0xff]  }
 0x21d   :  { %5102 = vmatpush1.bf16.msra.mxu0 %v7951_v50  ;;  %5594 = vmatpush1.bf16.msra.mxu1 %v7954_v51  ;;  %v8046_v50 = vld [vmem:[#allocation5 + $0xec8] ss:$16 sps:$4 sm:$0xff]   ;;  %v8051_v51 = vld [vmem:[#allocation5 + $0xee4] ss:$16 sps:$4 sm:$0xff]  }
 0x21e   :  { %5103 = vmatprep.subr.bf16.mxu0 %v7959_v52  ;;  %5595 = vmatprep.subr.bf16.mxu1 %v7962_v53  ;;  %v8054_v52 = vld [vmem:[#allocation5 + $0xeec] ss:$16 sps:$4 sm:$0xff]   ;;  %v8049_v53 = vld [vmem:[#allocation5 + $0xee0] ss:$16 sps:$4 sm:$0xff]  }
 0x221   :  { %5104 = vmatpush1.bf16.msra.mxu0 %v7957_v54  ;;  %5596 = vmatpush1.bf16.msra.mxu1 %v7960_v55  ;;  %v8052_v54 = vld [vmem:[#allocation5 + $0xee8] ss:$16 sps:$4 sm:$0xff]   ;;  %v8057_v55 = vld [vmem:[#allocation5 + $0xf04] ss:$16 sps:$4 sm:$0xff]  }
 0x222   :  { %5105 = vmatprep.subr.bf16.mxu0 %v7965_v56  ;;  %5597 = vmatprep.subr.bf16.mxu1 %v7968_v57  ;;  %v8060_v56 = vld [vmem:[#allocation5 + $0xf0c] ss:$16 sps:$4 sm:$0xff]   ;;  %v8055_v57 = vld [vmem:[#allocation5 + $0xf00] ss:$16 sps:$4 sm:$0xff]  }
 0x225   :  { %5106 = vmatpush1.bf16.msra.mxu0 %v7963_v58  ;;  %5598 = vmatpush1.bf16.msra.mxu1 %v7966_v59  ;;  %v8058_v58 = vld [vmem:[#allocation5 + $0xf08] ss:$16 sps:$4 sm:$0xff]   ;;  %v8063_v59 = vld [vmem:[#allocation5 + $0xf24] ss:$16 sps:$4 sm:$0xff]  }
 0x226   :  { %5107 = vmatprep.subr.bf16.mxu0 %v7971_v60  ;;  %5599 = vmatprep.subr.bf16.mxu1 %v7974_v61  ;;  %v8066_v60 = vld [vmem:[#allocation5 + $0xf2c] ss:$16 sps:$4 sm:$0xff]   ;;  %v8061_v61 = vld [vmem:[#allocation5 + $0xf20] ss:$16 sps:$4 sm:$0xff]  }
 0x229   :  { %5108 = vmatpush1.bf16.msra.mxu0 %v7969_v62  ;;  %5600 = vmatpush1.bf16.msra.mxu1 %v7972_v63  ;;  %v8064_v62 = vld [vmem:[#allocation5 + $0xf28] ss:$16 sps:$4 sm:$0xff]   ;;  %v8069_v63 = vld [vmem:[#allocation5 + $0xf44] ss:$16 sps:$4 sm:$0xff]  }
 0x22a   :  { %5109 = vmatprep.subr.bf16.mxu0 %v7977_v0  ;;  %5601 = vmatprep.subr.bf16.mxu1 %v7980_v1  ;;  %v8072_v0 = vld [vmem:[#allocation5 + $0xf4c] ss:$16 sps:$4 sm:$0xff]   ;;  %v8067_v1 = vld [vmem:[#allocation5 + $0xf40] ss:$16 sps:$4 sm:$0xff]  }
 0x22d   :  { %5110 = vmatpush1.bf16.msra.mxu0 %v7975_v2  ;;  %5602 = vmatpush1.bf16.msra.mxu1 %v7978_v3  ;;  %v8070_v2 = vld [vmem:[#allocation5 + $0xf48] ss:$16 sps:$4 sm:$0xff]   ;;  %v8075_v3 = vld [vmem:[#allocation5 + $0xf64] ss:$16 sps:$4 sm:$0xff]  }
 0x22e   :  { %5111 = vmatprep.subr.bf16.mxu0 %v7983_v4  ;;  %5603 = vmatprep.subr.bf16.mxu1 %v7986_v5  ;;  %v8078_v4 = vld [vmem:[#allocation5 + $0xf6c] ss:$16 sps:$4 sm:$0xff]   ;;  %v8073_v5 = vld [vmem:[#allocation5 + $0xf60] ss:$16 sps:$4 sm:$0xff]  }
 0x231   :  { %5112 = vmatpush1.bf16.msra.mxu0 %v7981_v6  ;;  %5604 = vmatpush1.bf16.msra.mxu1 %v7984_v7  ;;  %v8076_v6 = vld [vmem:[#allocation5 + $0xf68] ss:$16 sps:$4 sm:$0xff]   ;;  %v8081_v7 = vld [vmem:[#allocation5 + $0xf84] ss:$16 sps:$4 sm:$0xff]  }
 0x232   :  { %5113 = vmatprep.subr.bf16.mxu0 %v7989_v8  ;;  %5605 = vmatprep.subr.bf16.mxu1 %v7992_v9  ;;  %v8084_v8 = vld [vmem:[#allocation5 + $0xf8c] ss:$16 sps:$4 sm:$0xff]   ;;  %v8079_v9 = vld [vmem:[#allocation5 + $0xf80] ss:$16 sps:$4 sm:$0xff]  }
 0x235   :  { %5114 = vmatpush1.bf16.msra.mxu0 %v7987_v10  ;;  %5606 = vmatpush1.bf16.msra.mxu1 %v7990_v12  ;;  %v8082_v10 = vld [vmem:[#allocation5 + $0xf88] ss:$16 sps:$4 sm:$0xff]   ;;  %v8087_v12 = vld [vmem:[#allocation5 + $0xfa4] ss:$16 sps:$4 sm:$0xff]  }
 0x236   :  { %5115 = vmatprep.subr.bf16.mxu0 %v7995_v13  ;;  %5607 = vmatprep.subr.bf16.mxu1 %v7998_v15  ;;  %v8090_v13 = vld [vmem:[#allocation5 + $0xfac] ss:$16 sps:$4 sm:$0xff]   ;;  %v8085_v15 = vld [vmem:[#allocation5 + $0xfa0] ss:$16 sps:$4 sm:$0xff]  }
 0x239   :  { %5116 = vmatpush1.bf16.msra.mxu0 %v7993_v16  ;;  %5608 = vmatpush1.bf16.msra.mxu1 %v7996_v18  ;;  %v8088_v16 = vld [vmem:[#allocation5 + $0xfa8] ss:$16 sps:$4 sm:$0xff]   ;;  %v8093_v18 = vld [vmem:[#allocation5 + $0xfc4] ss:$16 sps:$4 sm:$0xff]  }
 0x23a   :  { %5117 = vmatprep.subr.bf16.mxu0 %v8001_v20  ;;  %5609 = vmatprep.subr.bf16.mxu1 %v8004_v11  ;;  %v8096_v20 = vld [vmem:[#allocation5 + $0xfcc] ss:$16 sps:$4 sm:$0xff]   ;;  %v8091_v11 = vld [vmem:[#allocation5 + $0xfc0] ss:$16 sps:$4 sm:$0xff]  }
 0x23d   :  { %5118 = vmatpush1.bf16.msra.mxu0 %v7999_v21  ;;  %5610 = vmatpush1.bf16.msra.mxu1 %v8002_v14  ;;  %v8094_v21 = vld [vmem:[#allocation5 + $0xfc8] ss:$16 sps:$4 sm:$0xff]   ;;  %v8099_v14 = vld [vmem:[#allocation5 + $0xfe4] ss:$16 sps:$4 sm:$0xff]  }
 0x23e   :  { %5128 = vmatprep.subr.bf16.mxu0 %v8009_v23  ;;  %5620 = vmatprep.subr.bf16.mxu1 %v8012_v24  ;;  %v8102_v23 = vld [vmem:[#allocation5 + $0xfec] ss:$16 sps:$4 sm:$0xff]   ;;  %v8097_v24 = vld [vmem:[#allocation5 + $0xfe0] ss:$16 sps:$4 sm:$0xff]  }
 0x240   :  { %5120 = vmatmul.mubr.bf16.vlgmr.msra.gmra.mrb[0].mxu0 %v6320_v17  ;;  %5612 = vmatmul.mubr.bf16.vlgmr.msra.gmra.mrb[0].mxu1 %v6320_v17  ;;  %v8100_v17 = vld [vmem:[#allocation5 + $0xfe8] ss:$16 sps:$4 sm:$0xff]  }
 0x241   :  { %5129 = vmatpush1.bf16.msra.mxu0 %v8007_v26  ;;  %5621 = vmatpush1.bf16.msra.mxu1 %v8010_v27  ;;  %v8107_v26 = vld [vmem:[#allocation5 + $0x1004] ss:$16 sps:$4 sm:$0xff]   ;;  %v8110_v27 = vld [vmem:[#allocation5 + $0x100c] ss:$16 sps:$4 sm:$0xff]  }
 0x242   :  { %5130 = vmatprep.subr.bf16.mxu0 %v8015_v28  ;;  %5622 = vmatprep.subr.bf16.mxu1 %v8018_v19  ;;  %v6322_v28 = vcombine.low %v8895_v25, %v8895_v25  ;;  %v8903_v19 = vld [vmem:[#allocation2 + $0x40] sm:$0xff] }
 0x243   :  { %5160 = vmatprep.mubr.bf16.mxu0 %v6323_v29  ;;  %5652 = vmatprep.mubr.bf16.mxu1 %v6323_v29  ;;  %v8105_v29 = vld [vmem:[#allocation5 + $0x1000] ss:$16 sps:$4 sm:$0xff]   ;;  %v8119_v25 = vld [vmem:[#allocation5 + $0x1044] ss:$16 sps:$4 sm:$0xff]  }
 0x245   :  { %5131 = vmatpush1.bf16.msra.mxu0 %v8013_v30  ;;  %5623 = vmatpush1.bf16.msra.mxu1 %v8016_v31  ;;  %v8108_v30 = vld [vmem:[#allocation5 + $0x1008] ss:$16 sps:$4 sm:$0xff]   ;;  %v8113_v31 = vld [vmem:[#allocation5 + $0x1024] ss:$16 sps:$4 sm:$0xff]  }
 0x246   :  { %5132 = vmatprep.subr.bf16.mxu0 %v8021_v22  ;;  %5624 = vmatprep.subr.bf16.mxu1 %v8024_v32  ;;  %v8116_v22 = vld [vmem:[#allocation5 + $0x102c] ss:$16 sps:$4 sm:$0xff]   ;;  %v6325_v32 = vcombine.high %v8903_v19, %v8903_v19 }
 0x249   :  { %5133 = vmatpush1.bf16.msra.mxu0 %v8019_v33  ;;  %5625 = vmatpush1.bf16.msra.mxu1 %v8022_v34  ;;  %v8111_v33 = vld [vmem:[#allocation5 + $0x1020] ss:$16 sps:$4 sm:$0xff]   ;;  %v8114_v34 = vld [vmem:[#allocation5 + $0x1028] ss:$16 sps:$4 sm:$0xff]  }
 0x24a   :  { %5134 = vmatprep.subr.bf16.mxu0 %v8027_v35  ;;  %5626 = vmatprep.subr.bf16.mxu1 %v8030_v36  ;;  %v8122_v35 = vld [vmem:[#allocation5 + $0x104c] ss:$16 sps:$4 sm:$0xff]   ;;  %v8117_v36 = vld [vmem:[#allocation5 + $0x1040] ss:$16 sps:$4 sm:$0xff]  }
 0x24d   :  { %5135 = vmatpush1.bf16.msra.mxu0 %v8025_v37  ;;  %5627 = vmatpush1.bf16.msra.mxu1 %v8028_v38  ;;  %v8120_v37 = vld [vmem:[#allocation5 + $0x1048] ss:$16 sps:$4 sm:$0xff]   ;;  %v8125_v38 = vld [vmem:[#allocation5 + $0x1064] ss:$16 sps:$4 sm:$0xff]  }
 0x24e   :  { %5136 = vmatprep.subr.bf16.mxu0 %v8033_v39  ;;  %5628 = vmatprep.subr.bf16.mxu1 %v8036_v40  ;;  %v8128_v39 = vld [vmem:[#allocation5 + $0x106c] ss:$16 sps:$4 sm:$0xff]   ;;  %v8123_v40 = vld [vmem:[#allocation5 + $0x1060] ss:$16 sps:$4 sm:$0xff]  }
 0x251   :  { %5137 = vmatpush1.bf16.msra.mxu0 %v8031_v41  ;;  %5629 = vmatpush1.bf16.msra.mxu1 %v8034_v42  ;;  %v8126_v41 = vld [vmem:[#allocation5 + $0x1068] ss:$16 sps:$4 sm:$0xff]   ;;  %v8131_v42 = vld [vmem:[#allocation5 + $0x1084] ss:$16 sps:$4 sm:$0xff]  }
 0x252   :  { %5138 = vmatprep.subr.bf16.mxu0 %v8039_v43  ;;  %5630 = vmatprep.subr.bf16.mxu1 %v8042_v44  ;;  %v8134_v43 = vld [vmem:[#allocation5 + $0x108c] ss:$16 sps:$4 sm:$0xff]   ;;  %v8129_v44 = vld [vmem:[#allocation5 + $0x1080] ss:$16 sps:$4 sm:$0xff]  }
 0x255   :  { %5139 = vmatpush1.bf16.msra.mxu0 %v8037_v45  ;;  %5631 = vmatpush1.bf16.msra.mxu1 %v8040_v46  ;;  %v8132_v45 = vld [vmem:[#allocation5 + $0x1088] ss:$16 sps:$4 sm:$0xff]   ;;  %v8137_v46 = vld [vmem:[#allocation5 + $0x10a4] ss:$16 sps:$4 sm:$0xff]  }
 0x256   :  { %5140 = vmatprep.subr.bf16.mxu0 %v8045_v47  ;;  %5632 = vmatprep.subr.bf16.mxu1 %v8048_v48  ;;  %v8140_v47 = vld [vmem:[#allocation5 + $0x10ac] ss:$16 sps:$4 sm:$0xff]   ;;  %v8135_v48 = vld [vmem:[#allocation5 + $0x10a0] ss:$16 sps:$4 sm:$0xff]  }
 0x259   :  { %5141 = vmatpush1.bf16.msra.mxu0 %v8043_v49  ;;  %5633 = vmatpush1.bf16.msra.mxu1 %v8046_v50  ;;  %v8138_v49 = vld [vmem:[#allocation5 + $0x10a8] ss:$16 sps:$4 sm:$0xff]   ;;  %v8143_v50 = vld [vmem:[#allocation5 + $0x10c4] ss:$16 sps:$4 sm:$0xff]  }
 0x25a   :  { %5142 = vmatprep.subr.bf16.mxu0 %v8051_v51  ;;  %5634 = vmatprep.subr.bf16.mxu1 %v8054_v52  ;;  %v8146_v51 = vld [vmem:[#allocation5 + $0x10cc] ss:$16 sps:$4 sm:$0xff]   ;;  %v8141_v52 = vld [vmem:[#allocation5 + $0x10c0] ss:$16 sps:$4 sm:$0xff]  }
 0x25d   :  { %5143 = vmatpush1.bf16.msra.mxu0 %v8049_v53  ;;  %5635 = vmatpush1.bf16.msra.mxu1 %v8052_v54  ;;  %v8144_v53 = vld [vmem:[#allocation5 + $0x10c8] ss:$16 sps:$4 sm:$0xff]   ;;  %v8149_v54 = vld [vmem:[#allocation5 + $0x10e4] ss:$16 sps:$4 sm:$0xff]  }
 0x25e   :  { %5144 = vmatprep.subr.bf16.mxu0 %v8057_v55  ;;  %5636 = vmatprep.subr.bf16.mxu1 %v8060_v56  ;;  %v8152_v55 = vld [vmem:[#allocation5 + $0x10ec] ss:$16 sps:$4 sm:$0xff]   ;;  %v8147_v56 = vld [vmem:[#allocation5 + $0x10e0] ss:$16 sps:$4 sm:$0xff]  }
 0x261   :  { %5145 = vmatpush1.bf16.msra.mxu0 %v8055_v57  ;;  %5637 = vmatpush1.bf16.msra.mxu1 %v8058_v58  ;;  %v8150_v57 = vld [vmem:[#allocation5 + $0x10e8] ss:$16 sps:$4 sm:$0xff]   ;;  %v8155_v58 = vld [vmem:[#allocation5 + $0x1104] ss:$16 sps:$4 sm:$0xff]  }
 0x262   :  { %5146 = vmatprep.subr.bf16.mxu0 %v8063_v59  ;;  %5638 = vmatprep.subr.bf16.mxu1 %v8066_v60  ;;  %v8158_v59 = vld [vmem:[#allocation5 + $0x110c] ss:$16 sps:$4 sm:$0xff]   ;;  %v8153_v60 = vld [vmem:[#allocation5 + $0x1100] ss:$16 sps:$4 sm:$0xff]  }
 0x265   :  { %5147 = vmatpush1.bf16.msra.mxu0 %v8061_v61  ;;  %5639 = vmatpush1.bf16.msra.mxu1 %v8064_v62  ;;  %v8156_v61 = vld [vmem:[#allocation5 + $0x1108] ss:$16 sps:$4 sm:$0xff]   ;;  %v8161_v62 = vld [vmem:[#allocation5 + $0x1124] ss:$16 sps:$4 sm:$0xff]  }
 0x266   :  { %5148 = vmatprep.subr.bf16.mxu0 %v8069_v63  ;;  %5640 = vmatprep.subr.bf16.mxu1 %v8072_v0  ;;  %v8164_v63 = vld [vmem:[#allocation5 + $0x112c] ss:$16 sps:$4 sm:$0xff]   ;;  %v8159_v0 = vld [vmem:[#allocation5 + $0x1120] ss:$16 sps:$4 sm:$0xff]  }
 0x269   :  { %5149 = vmatpush1.bf16.msra.mxu0 %v8067_v1  ;;  %5641 = vmatpush1.bf16.msra.mxu1 %v8070_v2  ;;  %v8162_v1 = vld [vmem:[#allocation5 + $0x1128] ss:$16 sps:$4 sm:$0xff]   ;;  %v8167_v2 = vld [vmem:[#allocation5 + $0x1144] ss:$16 sps:$4 sm:$0xff]  }
 0x26a   :  { %5150 = vmatprep.subr.bf16.mxu0 %v8075_v3  ;;  %5642 = vmatprep.subr.bf16.mxu1 %v8078_v4  ;;  %v8170_v3 = vld [vmem:[#allocation5 + $0x114c] ss:$16 sps:$4 sm:$0xff]   ;;  %v8165_v4 = vld [vmem:[#allocation5 + $0x1140] ss:$16 sps:$4 sm:$0xff]  }
 0x26d   :  { %5151 = vmatpush1.bf16.msra.mxu0 %v8073_v5  ;;  %5643 = vmatpush1.bf16.msra.mxu1 %v8076_v6  ;;  %v8168_v5 = vld [vmem:[#allocation5 + $0x1148] ss:$16 sps:$4 sm:$0xff]   ;;  %v8173_v6 = vld [vmem:[#allocation5 + $0x1164] ss:$16 sps:$4 sm:$0xff]  }
 0x26e   :  { %5152 = vmatprep.subr.bf16.mxu0 %v8081_v7  ;;  %5644 = vmatprep.subr.bf16.mxu1 %v8084_v8  ;;  %v8176_v7 = vld [vmem:[#allocation5 + $0x116c] ss:$16 sps:$4 sm:$0xff]   ;;  %v8171_v8 = vld [vmem:[#allocation5 + $0x1160] ss:$16 sps:$4 sm:$0xff]  }
 0x271   :  { %5153 = vmatpush1.bf16.msra.mxu0 %v8079_v9  ;;  %5645 = vmatpush1.bf16.msra.mxu1 %v8082_v10  ;;  %v8174_v9 = vld [vmem:[#allocation5 + $0x1168] ss:$16 sps:$4 sm:$0xff]   ;;  %v8179_v10 = vld [vmem:[#allocation5 + $0x1184] ss:$16 sps:$4 sm:$0xff]  }
 0x272   :  { %5154 = vmatprep.subr.bf16.mxu0 %v8087_v12  ;;  %5646 = vmatprep.subr.bf16.mxu1 %v8090_v13  ;;  %v8182_v12 = vld [vmem:[#allocation5 + $0x118c] ss:$16 sps:$4 sm:$0xff]   ;;  %v8177_v13 = vld [vmem:[#allocation5 + $0x1180] ss:$16 sps:$4 sm:$0xff]  }
 0x275   :  { %5155 = vmatpush1.bf16.msra.mxu0 %v8085_v15  ;;  %5647 = vmatpush1.bf16.msra.mxu1 %v8088_v16  ;;  %v8180_v15 = vld [vmem:[#allocation5 + $0x1188] ss:$16 sps:$4 sm:$0xff]   ;;  %v8185_v16 = vld [vmem:[#allocation5 + $0x11a4] ss:$16 sps:$4 sm:$0xff]  }
 0x276   :  { %5156 = vmatprep.subr.bf16.mxu0 %v8093_v18  ;;  %5648 = vmatprep.subr.bf16.mxu1 %v8096_v20  ;;  %v8188_v18 = vld [vmem:[#allocation5 + $0x11ac] ss:$16 sps:$4 sm:$0xff]   ;;  %v8183_v20 = vld [vmem:[#allocation5 + $0x11a0] ss:$16 sps:$4 sm:$0xff]  }
 0x279   :  { %5157 = vmatpush1.bf16.msra.mxu0 %v8091_v11  ;;  %5649 = vmatpush1.bf16.msra.mxu1 %v8094_v21  ;;  %v8186_v11 = vld [vmem:[#allocation5 + $0x11a8] ss:$16 sps:$4 sm:$0xff]   ;;  %v8191_v21 = vld [vmem:[#allocation5 + $0x11c4] ss:$16 sps:$4 sm:$0xff]  }
 0x27a   :  { %5158 = vmatprep.subr.bf16.mxu0 %v8099_v14  ;;  %5650 = vmatprep.subr.bf16.mxu1 %v8102_v23  ;;  %v8194_v14 = vld [vmem:[#allocation5 + $0x11cc] ss:$16 sps:$4 sm:$0xff]   ;;  %v8189_v23 = vld [vmem:[#allocation5 + $0x11c0] ss:$16 sps:$4 sm:$0xff]  }
 0x27d   :  { %5159 = vmatpush1.bf16.msra.mxu0 %v8097_v24  ;;  %5651 = vmatpush1.bf16.msra.mxu1 %v8100_v17  ;;  %v8192_v24 = vld [vmem:[#allocation5 + $0x11c8] ss:$16 sps:$4 sm:$0xff]   ;;  %v8197_v17 = vld [vmem:[#allocation5 + $0x11e4] ss:$16 sps:$4 sm:$0xff]  }
 0x27e   :  { %5169 = vmatprep.subr.bf16.mxu0 %v8107_v26  ;;  %5661 = vmatprep.subr.bf16.mxu1 %v8110_v27  ;;  %v8200_v26 = vld [vmem:[#allocation5 + $0x11ec] ss:$16 sps:$4 sm:$0xff]   ;;  %v8195_v27 = vld [vmem:[#allocation5 + $0x11e0] ss:$16 sps:$4 sm:$0xff]  }
 0x280   :  { %5161 = vmatmul.mubr.bf16.vlgmr.msra.gmra.mrb[0].mxu0 %v6322_v28  ;;  %5653 = vmatmul.mubr.bf16.vlgmr.msra.gmra.mrb[0].mxu1 %v6322_v28  ;;  %v8198_v28 = vld [vmem:[#allocation5 + $0x11e8] ss:$16 sps:$4 sm:$0xff]  }
 0x281   :  { %5170 = vmatpush1.bf16.msra.mxu0 %v8105_v29  ;;  %5662 = vmatpush1.bf16.msra.mxu1 %v8108_v30  ;;  %v8205_v29 = vld [vmem:[#allocation5 + $0x1204] ss:$16 sps:$4 sm:$0xff]   ;;  %v8208_v30 = vld [vmem:[#allocation5 + $0x120c] ss:$16 sps:$4 sm:$0xff]  }
 0x282   :  { %5171 = vmatprep.subr.bf16.mxu0 %v8113_v31  ;;  %5663 = vmatprep.subr.bf16.mxu1 %v8116_v22  ;;  %v6324_v31 = vcombine.low %v8903_v19, %v8903_v19  ;;  %v8909_v22 = vld [vmem:[#allocation2 + $0x48] sm:$0xff]  ;;  %v8217_v19 = vld [vmem:[#allocation5 + $0x1244] ss:$16 sps:$4 sm:$0xff]  }
 0x283   :  { %5201 = vmatprep.mubr.bf16.mxu0 %v6325_v32  ;;  %5693 = vmatprep.mubr.bf16.mxu1 %v6325_v32  ;;  %v8203_v32 = vld [vmem:[#allocation5 + $0x1200] ss:$16 sps:$4 sm:$0xff]  }
 0x285   :  { %5172 = vmatpush1.bf16.msra.mxu0 %v8111_v33  ;;  %5664 = vmatpush1.bf16.msra.mxu1 %v8114_v34  ;;  %v8206_v33 = vld [vmem:[#allocation5 + $0x1208] ss:$16 sps:$4 sm:$0xff]   ;;  %v8211_v34 = vld [vmem:[#allocation5 + $0x1224] ss:$16 sps:$4 sm:$0xff]  }
 0x286   :  { %5173 = vmatprep.subr.bf16.mxu0 %v8119_v25  ;;  %5665 = vmatprep.subr.bf16.mxu1 %v8122_v35  ;;  %v8214_v25 = vld [vmem:[#allocation5 + $0x122c] ss:$16 sps:$4 sm:$0xff]   ;;  %v6327_v35 = vcombine.high %v8909_v22, %v8909_v22 }
 0x289   :  { %5174 = vmatpush1.bf16.msra.mxu0 %v8117_v36  ;;  %5666 = vmatpush1.bf16.msra.mxu1 %v8120_v37  ;;  %v8209_v36 = vld [vmem:[#allocation5 + $0x1220] ss:$16 sps:$4 sm:$0xff]   ;;  %v8212_v37 = vld [vmem:[#allocation5 + $0x1228] ss:$16 sps:$4 sm:$0xff]  }
 0x28a   :  { %5175 = vmatprep.subr.bf16.mxu0 %v8125_v38  ;;  %5667 = vmatprep.subr.bf16.mxu1 %v8128_v39  ;;  %v8220_v38 = vld [vmem:[#allocation5 + $0x124c] ss:$16 sps:$4 sm:$0xff]   ;;  %v8215_v39 = vld [vmem:[#allocation5 + $0x1240] ss:$16 sps:$4 sm:$0xff]  }
 0x28d   :  { %5176 = vmatpush1.bf16.msra.mxu0 %v8123_v40  ;;  %5668 = vmatpush1.bf16.msra.mxu1 %v8126_v41  ;;  %v8218_v40 = vld [vmem:[#allocation5 + $0x1248] ss:$16 sps:$4 sm:$0xff]   ;;  %v8223_v41 = vld [vmem:[#allocation5 + $0x1264] ss:$16 sps:$4 sm:$0xff]  }
 0x28e   :  { %5177 = vmatprep.subr.bf16.mxu0 %v8131_v42  ;;  %5669 = vmatprep.subr.bf16.mxu1 %v8134_v43  ;;  %v8226_v42 = vld [vmem:[#allocation5 + $0x126c] ss:$16 sps:$4 sm:$0xff]   ;;  %v8221_v43 = vld [vmem:[#allocation5 + $0x1260] ss:$16 sps:$4 sm:$0xff]  }
 0x291   :  { %5178 = vmatpush1.bf16.msra.mxu0 %v8129_v44  ;;  %5670 = vmatpush1.bf16.msra.mxu1 %v8132_v45  ;;  %v8224_v44 = vld [vmem:[#allocation5 + $0x1268] ss:$16 sps:$4 sm:$0xff]   ;;  %v8229_v45 = vld [vmem:[#allocation5 + $0x1284] ss:$16 sps:$4 sm:$0xff]  }
 0x292   :  { %5179 = vmatprep.subr.bf16.mxu0 %v8137_v46  ;;  %5671 = vmatprep.subr.bf16.mxu1 %v8140_v47  ;;  %v8232_v46 = vld [vmem:[#allocation5 + $0x128c] ss:$16 sps:$4 sm:$0xff]   ;;  %v8227_v47 = vld [vmem:[#allocation5 + $0x1280] ss:$16 sps:$4 sm:$0xff]  }
 0x295   :  { %5180 = vmatpush1.bf16.msra.mxu0 %v8135_v48  ;;  %5672 = vmatpush1.bf16.msra.mxu1 %v8138_v49  ;;  %v8230_v48 = vld [vmem:[#allocation5 + $0x1288] ss:$16 sps:$4 sm:$0xff]   ;;  %v8235_v49 = vld [vmem:[#allocation5 + $0x12a4] ss:$16 sps:$4 sm:$0xff]  }
 0x296   :  { %5181 = vmatprep.subr.bf16.mxu0 %v8143_v50  ;;  %5673 = vmatprep.subr.bf16.mxu1 %v8146_v51  ;;  %v8238_v50 = vld [vmem:[#allocation5 + $0x12ac] ss:$16 sps:$4 sm:$0xff]   ;;  %v8233_v51 = vld [vmem:[#allocation5 + $0x12a0] ss:$16 sps:$4 sm:$0xff]  }
 0x299   :  { %5182 = vmatpush1.bf16.msra.mxu0 %v8141_v52  ;;  %5674 = vmatpush1.bf16.msra.mxu1 %v8144_v53  ;;  %v8236_v52 = vld [vmem:[#allocation5 + $0x12a8] ss:$16 sps:$4 sm:$0xff]   ;;  %v8241_v53 = vld [vmem:[#allocation5 + $0x12c4] ss:$16 sps:$4 sm:$0xff]  }
 0x29a   :  { %5183 = vmatprep.subr.bf16.mxu0 %v8149_v54  ;;  %5675 = vmatprep.subr.bf16.mxu1 %v8152_v55  ;;  %v8244_v54 = vld [vmem:[#allocation5 + $0x12cc] ss:$16 sps:$4 sm:$0xff]   ;;  %v8239_v55 = vld [vmem:[#allocation5 + $0x12c0] ss:$16 sps:$4 sm:$0xff]  }
 0x29d   :  { %5184 = vmatpush1.bf16.msra.mxu0 %v8147_v56  ;;  %5676 = vmatpush1.bf16.msra.mxu1 %v8150_v57  ;;  %v8242_v56 = vld [vmem:[#allocation5 + $0x12c8] ss:$16 sps:$4 sm:$0xff]   ;;  %v8247_v57 = vld [vmem:[#allocation5 + $0x12e4] ss:$16 sps:$4 sm:$0xff]  }
 0x29e   :  { %5185 = vmatprep.subr.bf16.mxu0 %v8155_v58  ;;  %5677 = vmatprep.subr.bf16.mxu1 %v8158_v59  ;;  %v8250_v58 = vld [vmem:[#allocation5 + $0x12ec] ss:$16 sps:$4 sm:$0xff]   ;;  %v8245_v59 = vld [vmem:[#allocation5 + $0x12e0] ss:$16 sps:$4 sm:$0xff]  }
 0x2a1   :  { %5186 = vmatpush1.bf16.msra.mxu0 %v8153_v60  ;;  %5678 = vmatpush1.bf16.msra.mxu1 %v8156_v61  ;;  %v8248_v60 = vld [vmem:[#allocation5 + $0x12e8] ss:$16 sps:$4 sm:$0xff]   ;;  %v8253_v61 = vld [vmem:[#allocation5 + $0x1304] ss:$16 sps:$4 sm:$0xff]  }
 0x2a2   :  { %5187 = vmatprep.subr.bf16.mxu0 %v8161_v62  ;;  %5679 = vmatprep.subr.bf16.mxu1 %v8164_v63  ;;  %v8256_v62 = vld [vmem:[#allocation5 + $0x130c] ss:$16 sps:$4 sm:$0xff]   ;;  %v8251_v63 = vld [vmem:[#allocation5 + $0x1300] ss:$16 sps:$4 sm:$0xff]  }
 0x2a5   :  { %5188 = vmatpush1.bf16.msra.mxu0 %v8159_v0  ;;  %5680 = vmatpush1.bf16.msra.mxu1 %v8162_v1  ;;  %v8254_v0 = vld [vmem:[#allocation5 + $0x1308] ss:$16 sps:$4 sm:$0xff]   ;;  %v8259_v1 = vld [vmem:[#allocation5 + $0x1324] ss:$16 sps:$4 sm:$0xff]  }
 0x2a6   :  { %5189 = vmatprep.subr.bf16.mxu0 %v8167_v2  ;;  %5681 = vmatprep.subr.bf16.mxu1 %v8170_v3  ;;  %v8262_v2 = vld [vmem:[#allocation5 + $0x132c] ss:$16 sps:$4 sm:$0xff]   ;;  %v8257_v3 = vld [vmem:[#allocation5 + $0x1320] ss:$16 sps:$4 sm:$0xff]  }
 0x2a9   :  { %5190 = vmatpush1.bf16.msra.mxu0 %v8165_v4  ;;  %5682 = vmatpush1.bf16.msra.mxu1 %v8168_v5  ;;  %v8260_v4 = vld [vmem:[#allocation5 + $0x1328] ss:$16 sps:$4 sm:$0xff]   ;;  %v8265_v5 = vld [vmem:[#allocation5 + $0x1344] ss:$16 sps:$4 sm:$0xff]  }
 0x2aa   :  { %5191 = vmatprep.subr.bf16.mxu0 %v8173_v6  ;;  %5683 = vmatprep.subr.bf16.mxu1 %v8176_v7  ;;  %v8268_v6 = vld [vmem:[#allocation5 + $0x134c] ss:$16 sps:$4 sm:$0xff]   ;;  %v8263_v7 = vld [vmem:[#allocation5 + $0x1340] ss:$16 sps:$4 sm:$0xff]  }
 0x2ad   :  { %5192 = vmatpush1.bf16.msra.mxu0 %v8171_v8  ;;  %5684 = vmatpush1.bf16.msra.mxu1 %v8174_v9  ;;  %v8266_v8 = vld [vmem:[#allocation5 + $0x1348] ss:$16 sps:$4 sm:$0xff]   ;;  %v8271_v9 = vld [vmem:[#allocation5 + $0x1364] ss:$16 sps:$4 sm:$0xff]  }
 0x2ae   :  { %5193 = vmatprep.subr.bf16.mxu0 %v8179_v10  ;;  %5685 = vmatprep.subr.bf16.mxu1 %v8182_v12  ;;  %v8274_v10 = vld [vmem:[#allocation5 + $0x136c] ss:$16 sps:$4 sm:$0xff]   ;;  %v8269_v12 = vld [vmem:[#allocation5 + $0x1360] ss:$16 sps:$4 sm:$0xff]  }
 0x2b1   :  { %5194 = vmatpush1.bf16.msra.mxu0 %v8177_v13  ;;  %5686 = vmatpush1.bf16.msra.mxu1 %v8180_v15  ;;  %v8272_v13 = vld [vmem:[#allocation5 + $0x1368] ss:$16 sps:$4 sm:$0xff]   ;;  %v8277_v15 = vld [vmem:[#allocation5 + $0x1384] ss:$16 sps:$4 sm:$0xff]  }
 0x2b2   :  { %5195 = vmatprep.subr.bf16.mxu0 %v8185_v16  ;;  %5687 = vmatprep.subr.bf16.mxu1 %v8188_v18  ;;  %v8280_v16 = vld [vmem:[#allocation5 + $0x138c] ss:$16 sps:$4 sm:$0xff]   ;;  %v8275_v18 = vld [vmem:[#allocation5 + $0x1380] ss:$16 sps:$4 sm:$0xff]  }
 0x2b5   :  { %5196 = vmatpush1.bf16.msra.mxu0 %v8183_v20  ;;  %5688 = vmatpush1.bf16.msra.mxu1 %v8186_v11  ;;  %v8278_v20 = vld [vmem:[#allocation5 + $0x1388] ss:$16 sps:$4 sm:$0xff]   ;;  %v8283_v11 = vld [vmem:[#allocation5 + $0x13a4] ss:$16 sps:$4 sm:$0xff]  }
 0x2b6   :  { %5197 = vmatprep.subr.bf16.mxu0 %v8191_v21  ;;  %5689 = vmatprep.subr.bf16.mxu1 %v8194_v14  ;;  %v8286_v21 = vld [vmem:[#allocation5 + $0x13ac] ss:$16 sps:$4 sm:$0xff]   ;;  %v8281_v14 = vld [vmem:[#allocation5 + $0x13a0] ss:$16 sps:$4 sm:$0xff]  }
 0x2b9   :  { %5198 = vmatpush1.bf16.msra.mxu0 %v8189_v23  ;;  %5690 = vmatpush1.bf16.msra.mxu1 %v8192_v24  ;;  %v8284_v23 = vld [vmem:[#allocation5 + $0x13a8] ss:$16 sps:$4 sm:$0xff]   ;;  %v8289_v24 = vld [vmem:[#allocation5 + $0x13c4] ss:$16 sps:$4 sm:$0xff]  }
 0x2ba   :  { %5199 = vmatprep.subr.bf16.mxu0 %v8197_v17  ;;  %5691 = vmatprep.subr.bf16.mxu1 %v8200_v26  ;;  %v8292_v17 = vld [vmem:[#allocation5 + $0x13cc] ss:$16 sps:$4 sm:$0xff]   ;;  %v8287_v26 = vld [vmem:[#allocation5 + $0x13c0] ss:$16 sps:$4 sm:$0xff]  }
 0x2bd   :  { %5200 = vmatpush1.bf16.msra.mxu0 %v8195_v27  ;;  %5692 = vmatpush1.bf16.msra.mxu1 %v8198_v28  ;;  %v8290_v27 = vld [vmem:[#allocation5 + $0x13c8] ss:$16 sps:$4 sm:$0xff]   ;;  %v8295_v28 = vld [vmem:[#allocation5 + $0x13e4] ss:$16 sps:$4 sm:$0xff]  }
 0x2be   :  { %5210 = vmatprep.subr.bf16.mxu0 %v8205_v29  ;;  %5702 = vmatprep.subr.bf16.mxu1 %v8208_v30  ;;  %v8298_v29 = vld [vmem:[#allocation5 + $0x13ec] ss:$16 sps:$4 sm:$0xff]   ;;  %v8293_v30 = vld [vmem:[#allocation5 + $0x13e0] ss:$16 sps:$4 sm:$0xff]  }
 0x2c0   :  { %5202 = vmatmul.mubr.bf16.vlgmr.msra.gmra.mrb[0].mxu0 %v6324_v31  ;;  %5694 = vmatmul.mubr.bf16.vlgmr.msra.gmra.mrb[0].mxu1 %v6324_v31  ;;  %v8296_v31 = vld [vmem:[#allocation5 + $0x13e8] ss:$16 sps:$4 sm:$0xff]  }
 0x2c1   :  { %5211 = vmatpush1.bf16.msra.mxu0 %v8203_v32  ;;  %5703 = vmatpush1.bf16.msra.mxu1 %v8206_v33  ;;  %v8303_v32 = vld [vmem:[#allocation5 + $0x1404] ss:$16 sps:$4 sm:$0xff]   ;;  %v8306_v33 = vld [vmem:[#allocation5 + $0x140c] ss:$16 sps:$4 sm:$0xff]  }
 0x2c2   :  { %5212 = vmatprep.subr.bf16.mxu0 %v8211_v34  ;;  %5704 = vmatprep.subr.bf16.mxu1 %v8214_v25  ;;  %v6326_v34 = vcombine.low %v8909_v22, %v8909_v22  ;;  %v8915_v25 = vld [vmem:[#allocation2 + $0x50] sm:$0xff] }
 0x2c3   :  { %5242 = vmatprep.mubr.bf16.mxu0 %v6327_v35  ;;  %5734 = vmatprep.mubr.bf16.mxu1 %v6327_v35  ;;  %v8301_v35 = vld [vmem:[#allocation5 + $0x1400] ss:$16 sps:$4 sm:$0xff]   ;;  %v8315_v22 = vld [vmem:[#allocation5 + $0x1444] ss:$16 sps:$4 sm:$0xff]  }
 0x2c5   :  { %5213 = vmatpush1.bf16.msra.mxu0 %v8209_v36  ;;  %5705 = vmatpush1.bf16.msra.mxu1 %v8212_v37  ;;  %v8304_v36 = vld [vmem:[#allocation5 + $0x1408] ss:$16 sps:$4 sm:$0xff]   ;;  %v8309_v37 = vld [vmem:[#allocation5 + $0x1424] ss:$16 sps:$4 sm:$0xff]  }
 0x2c6   :  { %5214 = vmatprep.subr.bf16.mxu0 %v8217_v19  ;;  %5706 = vmatprep.subr.bf16.mxu1 %v8220_v38  ;;  %v8312_v19 = vld [vmem:[#allocation5 + $0x142c] ss:$16 sps:$4 sm:$0xff]   ;;  %v6329_v38 = vcombine.high %v8915_v25, %v8915_v25 }
 0x2c9   :  { %5215 = vmatpush1.bf16.msra.mxu0 %v8215_v39  ;;  %5707 = vmatpush1.bf16.msra.mxu1 %v8218_v40  ;;  %v8307_v39 = vld [vmem:[#allocation5 + $0x1420] ss:$16 sps:$4 sm:$0xff]   ;;  %v8310_v40 = vld [vmem:[#allocation5 + $0x1428] ss:$16 sps:$4 sm:$0xff]  }
 0x2ca   :  { %5216 = vmatprep.subr.bf16.mxu0 %v8223_v41  ;;  %5708 = vmatprep.subr.bf16.mxu1 %v8226_v42  ;;  %v8318_v41 = vld [vmem:[#allocation5 + $0x144c] ss:$16 sps:$4 sm:$0xff]   ;;  %v8313_v42 = vld [vmem:[#allocation5 + $0x1440] ss:$16 sps:$4 sm:$0xff]  }
 0x2cd   :  { %5217 = vmatpush1.bf16.msra.mxu0 %v8221_v43  ;;  %5709 = vmatpush1.bf16.msra.mxu1 %v8224_v44  ;;  %v8316_v43 = vld [vmem:[#allocation5 + $0x1448] ss:$16 sps:$4 sm:$0xff]   ;;  %v8321_v44 = vld [vmem:[#allocation5 + $0x1464] ss:$16 sps:$4 sm:$0xff]  }
 0x2ce   :  { %5218 = vmatprep.subr.bf16.mxu0 %v8229_v45  ;;  %5710 = vmatprep.subr.bf16.mxu1 %v8232_v46  ;;  %v8324_v45 = vld [vmem:[#allocation5 + $0x146c] ss:$16 sps:$4 sm:$0xff]   ;;  %v8319_v46 = vld [vmem:[#allocation5 + $0x1460] ss:$16 sps:$4 sm:$0xff]  }
 0x2d1   :  { %5219 = vmatpush1.bf16.msra.mxu0 %v8227_v47  ;;  %5711 = vmatpush1.bf16.msra.mxu1 %v8230_v48  ;;  %v8322_v47 = vld [vmem:[#allocation5 + $0x1468] ss:$16 sps:$4 sm:$0xff]   ;;  %v8327_v48 = vld [vmem:[#allocation5 + $0x1484] ss:$16 sps:$4 sm:$0xff]  }
 0x2d2   :  { %5220 = vmatprep.subr.bf16.mxu0 %v8235_v49  ;;  %5712 = vmatprep.subr.bf16.mxu1 %v8238_v50  ;;  %v8330_v49 = vld [vmem:[#allocation5 + $0x148c] ss:$16 sps:$4 sm:$0xff]   ;;  %v8325_v50 = vld [vmem:[#allocation5 + $0x1480] ss:$16 sps:$4 sm:$0xff]  }
 0x2d5   :  { %5221 = vmatpush1.bf16.msra.mxu0 %v8233_v51  ;;  %5713 = vmatpush1.bf16.msra.mxu1 %v8236_v52  ;;  %v8328_v51 = vld [vmem:[#allocation5 + $0x1488] ss:$16 sps:$4 sm:$0xff]   ;;  %v8333_v52 = vld [vmem:[#allocation5 + $0x14a4] ss:$16 sps:$4 sm:$0xff]  }
 0x2d6   :  { %5222 = vmatprep.subr.bf16.mxu0 %v8241_v53  ;;  %5714 = vmatprep.subr.bf16.mxu1 %v8244_v54  ;;  %v8336_v53 = vld [vmem:[#allocation5 + $0x14ac] ss:$16 sps:$4 sm:$0xff]   ;;  %v8331_v54 = vld [vmem:[#allocation5 + $0x14a0] ss:$16 sps:$4 sm:$0xff]  }
 0x2d9   :  { %5223 = vmatpush1.bf16.msra.mxu0 %v8239_v55  ;;  %5715 = vmatpush1.bf16.msra.mxu1 %v8242_v56  ;;  %v8334_v55 = vld [vmem:[#allocation5 + $0x14a8] ss:$16 sps:$4 sm:$0xff]   ;;  %v8339_v56 = vld [vmem:[#allocation5 + $0x14c4] ss:$16 sps:$4 sm:$0xff]  }
 0x2da   :  { %5224 = vmatprep.subr.bf16.mxu0 %v8247_v57  ;;  %5716 = vmatprep.subr.bf16.mxu1 %v8250_v58  ;;  %v8342_v57 = vld [vmem:[#allocation5 + $0x14cc] ss:$16 sps:$4 sm:$0xff]   ;;  %v8337_v58 = vld [vmem:[#allocation5 + $0x14c0] ss:$16 sps:$4 sm:$0xff]  }
 0x2dd   :  { %5225 = vmatpush1.bf16.msra.mxu0 %v8245_v59  ;;  %5717 = vmatpush1.bf16.msra.mxu1 %v8248_v60  ;;  %v8340_v59 = vld [vmem:[#allocation5 + $0x14c8] ss:$16 sps:$4 sm:$0xff]   ;;  %v8345_v60 = vld [vmem:[#allocation5 + $0x14e4] ss:$16 sps:$4 sm:$0xff]  }
 0x2de   :  { %5226 = vmatprep.subr.bf16.mxu0 %v8253_v61  ;;  %5718 = vmatprep.subr.bf16.mxu1 %v8256_v62  ;;  %v8348_v61 = vld [vmem:[#allocation5 + $0x14ec] ss:$16 sps:$4 sm:$0xff]   ;;  %v8343_v62 = vld [vmem:[#allocation5 + $0x14e0] ss:$16 sps:$4 sm:$0xff]  }
 0x2e1   :  { %5227 = vmatpush1.bf16.msra.mxu0 %v8251_v63  ;;  %5719 = vmatpush1.bf16.msra.mxu1 %v8254_v0  ;;  %v8346_v63 = vld [vmem:[#allocation5 + $0x14e8] ss:$16 sps:$4 sm:$0xff]   ;;  %v8351_v0 = vld [vmem:[#allocation5 + $0x1504] ss:$16 sps:$4 sm:$0xff]  }
 0x2e2   :  { %5228 = vmatprep.subr.bf16.mxu0 %v8259_v1  ;;  %5720 = vmatprep.subr.bf16.mxu1 %v8262_v2  ;;  %v8354_v1 = vld [vmem:[#allocation5 + $0x150c] ss:$16 sps:$4 sm:$0xff]   ;;  %v8349_v2 = vld [vmem:[#allocation5 + $0x1500] ss:$16 sps:$4 sm:$0xff]  }
 0x2e5   :  { %5229 = vmatpush1.bf16.msra.mxu0 %v8257_v3  ;;  %5721 = vmatpush1.bf16.msra.mxu1 %v8260_v4  ;;  %v8352_v3 = vld [vmem:[#allocation5 + $0x1508] ss:$16 sps:$4 sm:$0xff]   ;;  %v8357_v4 = vld [vmem:[#allocation5 + $0x1524] ss:$16 sps:$4 sm:$0xff]  }
 0x2e6   :  { %5230 = vmatprep.subr.bf16.mxu0 %v8265_v5  ;;  %5722 = vmatprep.subr.bf16.mxu1 %v8268_v6  ;;  %v8360_v5 = vld [vmem:[#allocation5 + $0x152c] ss:$16 sps:$4 sm:$0xff]   ;;  %v8355_v6 = vld [vmem:[#allocation5 + $0x1520] ss:$16 sps:$4 sm:$0xff]  }
 0x2e9   :  { %5231 = vmatpush1.bf16.msra.mxu0 %v8263_v7  ;;  %5723 = vmatpush1.bf16.msra.mxu1 %v8266_v8  ;;  %v8358_v7 = vld [vmem:[#allocation5 + $0x1528] ss:$16 sps:$4 sm:$0xff]   ;;  %v8363_v8 = vld [vmem:[#allocation5 + $0x1544] ss:$16 sps:$4 sm:$0xff]  }
 0x2ea   :  { %5232 = vmatprep.subr.bf16.mxu0 %v8271_v9  ;;  %5724 = vmatprep.subr.bf16.mxu1 %v8274_v10  ;;  %v8366_v9 = vld [vmem:[#allocation5 + $0x154c] ss:$16 sps:$4 sm:$0xff]   ;;  %v8361_v10 = vld [vmem:[#allocation5 + $0x1540] ss:$16 sps:$4 sm:$0xff]  }
 0x2ed   :  { %5233 = vmatpush1.bf16.msra.mxu0 %v8269_v12  ;;  %5725 = vmatpush1.bf16.msra.mxu1 %v8272_v13  ;;  %v8364_v12 = vld [vmem:[#allocation5 + $0x1548] ss:$16 sps:$4 sm:$0xff]   ;;  %v8369_v13 = vld [vmem:[#allocation5 + $0x1564] ss:$16 sps:$4 sm:$0xff]  }
 0x2ee   :  { %5234 = vmatprep.subr.bf16.mxu0 %v8277_v15  ;;  %5726 = vmatprep.subr.bf16.mxu1 %v8280_v16  ;;  %v8372_v15 = vld [vmem:[#allocation5 + $0x156c] ss:$16 sps:$4 sm:$0xff]   ;;  %v8367_v16 = vld [vmem:[#allocation5 + $0x1560] ss:$16 sps:$4 sm:$0xff]  }
 0x2f1   :  { %5235 = vmatpush1.bf16.msra.mxu0 %v8275_v18  ;;  %5727 = vmatpush1.bf16.msra.mxu1 %v8278_v20  ;;  %v8370_v18 = vld [vmem:[#allocation5 + $0x1568] ss:$16 sps:$4 sm:$0xff]   ;;  %v8375_v20 = vld [vmem:[#allocation5 + $0x1584] ss:$16 sps:$4 sm:$0xff]  }
 0x2f2   :  { %5236 = vmatprep.subr.bf16.mxu0 %v8283_v11  ;;  %5728 = vmatprep.subr.bf16.mxu1 %v8286_v21  ;;  %v8378_v11 = vld [vmem:[#allocation5 + $0x158c] ss:$16 sps:$4 sm:$0xff]   ;;  %v8373_v21 = vld [vmem:[#allocation5 + $0x1580] ss:$16 sps:$4 sm:$0xff]  }
 0x2f5   :  { %5237 = vmatpush1.bf16.msra.mxu0 %v8281_v14  ;;  %5729 = vmatpush1.bf16.msra.mxu1 %v8284_v23  ;;  %v8376_v14 = vld [vmem:[#allocation5 + $0x1588] ss:$16 sps:$4 sm:$0xff]   ;;  %v8381_v23 = vld [vmem:[#allocation5 + $0x15a4] ss:$16 sps:$4 sm:$0xff]  }
 0x2f6   :  { %5238 = vmatprep.subr.bf16.mxu0 %v8289_v24  ;;  %5730 = vmatprep.subr.bf16.mxu1 %v8292_v17  ;;  %v8384_v24 = vld [vmem:[#allocation5 + $0x15ac] ss:$16 sps:$4 sm:$0xff]   ;;  %v8379_v17 = vld [vmem:[#allocation5 + $0x15a0] ss:$16 sps:$4 sm:$0xff]  }
 0x2f9   :  { %5239 = vmatpush1.bf16.msra.mxu0 %v8287_v26  ;;  %5731 = vmatpush1.bf16.msra.mxu1 %v8290_v27  ;;  %v8382_v26 = vld [vmem:[#allocation5 + $0x15a8] ss:$16 sps:$4 sm:$0xff]   ;;  %v8387_v27 = vld [vmem:[#allocation5 + $0x15c4] ss:$16 sps:$4 sm:$0xff]  }
 0x2fa   :  { %5240 = vmatprep.subr.bf16.mxu0 %v8295_v28  ;;  %5732 = vmatprep.subr.bf16.mxu1 %v8298_v29  ;;  %v8390_v28 = vld [vmem:[#allocation5 + $0x15cc] ss:$16 sps:$4 sm:$0xff]   ;;  %v8385_v29 = vld [vmem:[#allocation5 + $0x15c0] ss:$16 sps:$4 sm:$0xff]  }
 0x2fd   :  { %5241 = vmatpush1.bf16.msra.mxu0 %v8293_v30  ;;  %5733 = vmatpush1.bf16.msra.mxu1 %v8296_v31  ;;  %v8388_v30 = vld [vmem:[#allocation5 + $0x15c8] ss:$16 sps:$4 sm:$0xff]   ;;  %v8393_v31 = vld [vmem:[#allocation5 + $0x15e4] ss:$16 sps:$4 sm:$0xff]  }
 0x2fe   :  { %5251 = vmatprep.subr.bf16.mxu0 %v8303_v32  ;;  %5743 = vmatprep.subr.bf16.mxu1 %v8306_v33  ;;  %v8396_v32 = vld [vmem:[#allocation5 + $0x15ec] ss:$16 sps:$4 sm:$0xff]   ;;  %v8391_v33 = vld [vmem:[#allocation5 + $0x15e0] ss:$16 sps:$4 sm:$0xff]  }
 0x300   :  { %5243 = vmatmul.mubr.bf16.vlgmr.msra.gmra.mrb[0].mxu0 %v6326_v34  ;;  %5735 = vmatmul.mubr.bf16.vlgmr.msra.gmra.mrb[0].mxu1 %v6326_v34  ;;  %v8394_v34 = vld [vmem:[#allocation5 + $0x15e8] ss:$16 sps:$4 sm:$0xff]  }
 0x301   :  { %5252 = vmatpush1.bf16.msra.mxu0 %v8301_v35  ;;  %5744 = vmatpush1.bf16.msra.mxu1 %v8304_v36  ;;  %v8401_v35 = vld [vmem:[#allocation5 + $0x1604] ss:$16 sps:$4 sm:$0xff]   ;;  %v8404_v36 = vld [vmem:[#allocation5 + $0x160c] ss:$16 sps:$4 sm:$0xff]  }
 0x302   :  { %5253 = vmatprep.subr.bf16.mxu0 %v8309_v37  ;;  %5745 = vmatprep.subr.bf16.mxu1 %v8312_v19  ;;  %v6328_v37 = vcombine.low %v8915_v25, %v8915_v25  ;;  %v8921_v19 = vld [vmem:[#allocation2 + $0x58] sm:$0xff]  ;;  %v8413_v25 = vld [vmem:[#allocation5 + $0x1644] ss:$16 sps:$4 sm:$0xff]  }
 0x303   :  { %5283 = vmatprep.mubr.bf16.mxu0 %v6329_v38  ;;  %5775 = vmatprep.mubr.bf16.mxu1 %v6329_v38  ;;  %v8399_v38 = vld [vmem:[#allocation5 + $0x1600] ss:$16 sps:$4 sm:$0xff]  }
 0x305   :  { %5254 = vmatpush1.bf16.msra.mxu0 %v8307_v39  ;;  %5746 = vmatpush1.bf16.msra.mxu1 %v8310_v40  ;;  %v8402_v39 = vld [vmem:[#allocation5 + $0x1608] ss:$16 sps:$4 sm:$0xff]   ;;  %v8407_v40 = vld [vmem:[#allocation5 + $0x1624] ss:$16 sps:$4 sm:$0xff]  }
 0x306   :  { %5255 = vmatprep.subr.bf16.mxu0 %v8315_v22  ;;  %5747 = vmatprep.subr.bf16.mxu1 %v8318_v41  ;;  %v8410_v22 = vld [vmem:[#allocation5 + $0x162c] ss:$16 sps:$4 sm:$0xff]   ;;  %v6331_v41 = vcombine.high %v8921_v19, %v8921_v19 }
 0x309   :  { %5256 = vmatpush1.bf16.msra.mxu0 %v8313_v42  ;;  %5748 = vmatpush1.bf16.msra.mxu1 %v8316_v43  ;;  %v8405_v42 = vld [vmem:[#allocation5 + $0x1620] ss:$16 sps:$4 sm:$0xff]   ;;  %v8408_v43 = vld [vmem:[#allocation5 + $0x1628] ss:$16 sps:$4 sm:$0xff]  }
 0x30a   :  { %5257 = vmatprep.subr.bf16.mxu0 %v8321_v44  ;;  %5749 = vmatprep.subr.bf16.mxu1 %v8324_v45  ;;  %v8416_v44 = vld [vmem:[#allocation5 + $0x164c] ss:$16 sps:$4 sm:$0xff]   ;;  %v8411_v45 = vld [vmem:[#allocation5 + $0x1640] ss:$16 sps:$4 sm:$0xff]  }
 0x30d   :  { %5258 = vmatpush1.bf16.msra.mxu0 %v8319_v46  ;;  %5750 = vmatpush1.bf16.msra.mxu1 %v8322_v47  ;;  %v8414_v46 = vld [vmem:[#allocation5 + $0x1648] ss:$16 sps:$4 sm:$0xff]   ;;  %v8419_v47 = vld [vmem:[#allocation5 + $0x1664] ss:$16 sps:$4 sm:$0xff]  }
 0x30e   :  { %5259 = vmatprep.subr.bf16.mxu0 %v8327_v48  ;;  %5751 = vmatprep.subr.bf16.mxu1 %v8330_v49  ;;  %v8422_v48 = vld [vmem:[#allocation5 + $0x166c] ss:$16 sps:$4 sm:$0xff]   ;;  %v8417_v49 = vld [vmem:[#allocation5 + $0x1660] ss:$16 sps:$4 sm:$0xff]  }
 0x311   :  { %5260 = vmatpush1.bf16.msra.mxu0 %v8325_v50  ;;  %5752 = vmatpush1.bf16.msra.mxu1 %v8328_v51  ;;  %v8420_v50 = vld [vmem:[#allocation5 + $0x1668] ss:$16 sps:$4 sm:$0xff]   ;;  %v8425_v51 = vld [vmem:[#allocation5 + $0x1684] ss:$16 sps:$4 sm:$0xff]  }
 0x312   :  { %5261 = vmatprep.subr.bf16.mxu0 %v8333_v52  ;;  %5753 = vmatprep.subr.bf16.mxu1 %v8336_v53  ;;  %v8428_v52 = vld [vmem:[#allocation5 + $0x168c] ss:$16 sps:$4 sm:$0xff]   ;;  %v8423_v53 = vld [vmem:[#allocation5 + $0x1680] ss:$16 sps:$4 sm:$0xff]  }
 0x315   :  { %5262 = vmatpush1.bf16.msra.mxu0 %v8331_v54  ;;  %5754 = vmatpush1.bf16.msra.mxu1 %v8334_v55  ;;  %v8426_v54 = vld [vmem:[#allocation5 + $0x1688] ss:$16 sps:$4 sm:$0xff]   ;;  %v8431_v55 = vld [vmem:[#allocation5 + $0x16a4] ss:$16 sps:$4 sm:$0xff]  }
 0x316   :  { %5263 = vmatprep.subr.bf16.mxu0 %v8339_v56  ;;  %5755 = vmatprep.subr.bf16.mxu1 %v8342_v57  ;;  %v8434_v56 = vld [vmem:[#allocation5 + $0x16ac] ss:$16 sps:$4 sm:$0xff]   ;;  %v8429_v57 = vld [vmem:[#allocation5 + $0x16a0] ss:$16 sps:$4 sm:$0xff]  }
 0x319   :  { %5264 = vmatpush1.bf16.msra.mxu0 %v8337_v58  ;;  %5756 = vmatpush1.bf16.msra.mxu1 %v8340_v59  ;;  %v8432_v58 = vld [vmem:[#allocation5 + $0x16a8] ss:$16 sps:$4 sm:$0xff]   ;;  %v8437_v59 = vld [vmem:[#allocation5 + $0x16c4] ss:$16 sps:$4 sm:$0xff]  }
 0x31a   :  { %5265 = vmatprep.subr.bf16.mxu0 %v8345_v60  ;;  %5757 = vmatprep.subr.bf16.mxu1 %v8348_v61  ;;  %v8440_v60 = vld [vmem:[#allocation5 + $0x16cc] ss:$16 sps:$4 sm:$0xff]   ;;  %v8435_v61 = vld [vmem:[#allocation5 + $0x16c0] ss:$16 sps:$4 sm:$0xff]  }
 0x31d   :  { %5266 = vmatpush1.bf16.msra.mxu0 %v8343_v62  ;;  %5758 = vmatpush1.bf16.msra.mxu1 %v8346_v63  ;;  %v8438_v62 = vld [vmem:[#allocation5 + $0x16c8] ss:$16 sps:$4 sm:$0xff]   ;;  %v8443_v63 = vld [vmem:[#allocation5 + $0x16e4] ss:$16 sps:$4 sm:$0xff]  }
 0x31e   :  { %5267 = vmatprep.subr.bf16.mxu0 %v8351_v0  ;;  %5759 = vmatprep.subr.bf16.mxu1 %v8354_v1  ;;  %v8446_v0 = vld [vmem:[#allocation5 + $0x16ec] ss:$16 sps:$4 sm:$0xff]   ;;  %v8441_v1 = vld [vmem:[#allocation5 + $0x16e0] ss:$16 sps:$4 sm:$0xff]  }
 0x321   :  { %5268 = vmatpush1.bf16.msra.mxu0 %v8349_v2  ;;  %5760 = vmatpush1.bf16.msra.mxu1 %v8352_v3  ;;  %v8444_v2 = vld [vmem:[#allocation5 + $0x16e8] ss:$16 sps:$4 sm:$0xff]   ;;  %v8449_v3 = vld [vmem:[#allocation5 + $0x1704] ss:$16 sps:$4 sm:$0xff]  }
 0x322   :  { %5269 = vmatprep.subr.bf16.mxu0 %v8357_v4  ;;  %5761 = vmatprep.subr.bf16.mxu1 %v8360_v5  ;;  %v8452_v4 = vld [vmem:[#allocation5 + $0x170c] ss:$16 sps:$4 sm:$0xff]   ;;  %v8447_v5 = vld [vmem:[#allocation5 + $0x1700] ss:$16 sps:$4 sm:$0xff]  }
 0x325   :  { %5270 = vmatpush1.bf16.msra.mxu0 %v8355_v6  ;;  %5762 = vmatpush1.bf16.msra.mxu1 %v8358_v7  ;;  %v8450_v6 = vld [vmem:[#allocation5 + $0x1708] ss:$16 sps:$4 sm:$0xff]   ;;  %v8455_v7 = vld [vmem:[#allocation5 + $0x1724] ss:$16 sps:$4 sm:$0xff]  }
 0x326   :  { %5271 = vmatprep.subr.bf16.mxu0 %v8363_v8  ;;  %5763 = vmatprep.subr.bf16.mxu1 %v8366_v9  ;;  %v8458_v8 = vld [vmem:[#allocation5 + $0x172c] ss:$16 sps:$4 sm:$0xff]   ;;  %v8453_v9 = vld [vmem:[#allocation5 + $0x1720] ss:$16 sps:$4 sm:$0xff]  }
 0x329   :  { %5272 = vmatpush1.bf16.msra.mxu0 %v8361_v10  ;;  %5764 = vmatpush1.bf16.msra.mxu1 %v8364_v12  ;;  %v8456_v10 = vld [vmem:[#allocation5 + $0x1728] ss:$16 sps:$4 sm:$0xff]   ;;  %v8461_v12 = vld [vmem:[#allocation5 + $0x1744] ss:$16 sps:$4 sm:$0xff]  }
 0x32a   :  { %5273 = vmatprep.subr.bf16.mxu0 %v8369_v13  ;;  %5765 = vmatprep.subr.bf16.mxu1 %v8372_v15  ;;  %v8464_v13 = vld [vmem:[#allocation5 + $0x174c] ss:$16 sps:$4 sm:$0xff]   ;;  %v8459_v15 = vld [vmem:[#allocation5 + $0x1740] ss:$16 sps:$4 sm:$0xff]  }
 0x32d   :  { %5274 = vmatpush1.bf16.msra.mxu0 %v8367_v16  ;;  %5766 = vmatpush1.bf16.msra.mxu1 %v8370_v18  ;;  %v8462_v16 = vld [vmem:[#allocation5 + $0x1748] ss:$16 sps:$4 sm:$0xff]   ;;  %v8467_v18 = vld [vmem:[#allocation5 + $0x1764] ss:$16 sps:$4 sm:$0xff]  }
 0x32e   :  { %5275 = vmatprep.subr.bf16.mxu0 %v8375_v20  ;;  %5767 = vmatprep.subr.bf16.mxu1 %v8378_v11  ;;  %v8470_v20 = vld [vmem:[#allocation5 + $0x176c] ss:$16 sps:$4 sm:$0xff]   ;;  %v8465_v11 = vld [vmem:[#allocation5 + $0x1760] ss:$16 sps:$4 sm:$0xff]  }
 0x331   :  { %5276 = vmatpush1.bf16.msra.mxu0 %v8373_v21  ;;  %5768 = vmatpush1.bf16.msra.mxu1 %v8376_v14  ;;  %v8468_v21 = vld [vmem:[#allocation5 + $0x1768] ss:$16 sps:$4 sm:$0xff]   ;;  %v8473_v14 = vld [vmem:[#allocation5 + $0x1784] ss:$16 sps:$4 sm:$0xff]  }
 0x332   :  { %5277 = vmatprep.subr.bf16.mxu0 %v8381_v23  ;;  %5769 = vmatprep.subr.bf16.mxu1 %v8384_v24  ;;  %v8476_v23 = vld [vmem:[#allocation5 + $0x178c] ss:$16 sps:$4 sm:$0xff]   ;;  %v8471_v24 = vld [vmem:[#allocation5 + $0x1780] ss:$16 sps:$4 sm:$0xff]  }
 0x335   :  { %5278 = vmatpush1.bf16.msra.mxu0 %v8379_v17  ;;  %5770 = vmatpush1.bf16.msra.mxu1 %v8382_v26  ;;  %v8474_v17 = vld [vmem:[#allocation5 + $0x1788] ss:$16 sps:$4 sm:$0xff]   ;;  %v8479_v26 = vld [vmem:[#allocation5 + $0x17a4] ss:$16 sps:$4 sm:$0xff]  }
 0x336   :  { %5279 = vmatprep.subr.bf16.mxu0 %v8387_v27  ;;  %5771 = vmatprep.subr.bf16.mxu1 %v8390_v28  ;;  %v8482_v27 = vld [vmem:[#allocation5 + $0x17ac] ss:$16 sps:$4 sm:$0xff]   ;;  %v8477_v28 = vld [vmem:[#allocation5 + $0x17a0] ss:$16 sps:$4 sm:$0xff]  }
 0x339   :  { %5280 = vmatpush1.bf16.msra.mxu0 %v8385_v29  ;;  %5772 = vmatpush1.bf16.msra.mxu1 %v8388_v30  ;;  %v8480_v29 = vld [vmem:[#allocation5 + $0x17a8] ss:$16 sps:$4 sm:$0xff]   ;;  %v8485_v30 = vld [vmem:[#allocation5 + $0x17c4] ss:$16 sps:$4 sm:$0xff]  }
 0x33a   :  { %5281 = vmatprep.subr.bf16.mxu0 %v8393_v31  ;;  %5773 = vmatprep.subr.bf16.mxu1 %v8396_v32  ;;  %v8488_v31 = vld [vmem:[#allocation5 + $0x17cc] ss:$16 sps:$4 sm:$0xff]   ;;  %v8483_v32 = vld [vmem:[#allocation5 + $0x17c0] ss:$16 sps:$4 sm:$0xff]  }
 0x33d   :  { %5282 = vmatpush1.bf16.msra.mxu0 %v8391_v33  ;;  %5774 = vmatpush1.bf16.msra.mxu1 %v8394_v34  ;;  %v8486_v33 = vld [vmem:[#allocation5 + $0x17c8] ss:$16 sps:$4 sm:$0xff]   ;;  %v8491_v34 = vld [vmem:[#allocation5 + $0x17e4] ss:$16 sps:$4 sm:$0xff]  }
 0x33e   :  { %5292 = vmatprep.subr.bf16.mxu0 %v8401_v35  ;;  %5784 = vmatprep.subr.bf16.mxu1 %v8404_v36  ;;  %v8494_v35 = vld [vmem:[#allocation5 + $0x17ec] ss:$16 sps:$4 sm:$0xff]   ;;  %v8489_v36 = vld [vmem:[#allocation5 + $0x17e0] ss:$16 sps:$4 sm:$0xff]  }
 0x340   :  { %5284 = vmatmul.mubr.bf16.vlgmr.msra.gmra.mrb[0].mxu0 %v6328_v37  ;;  %5776 = vmatmul.mubr.bf16.vlgmr.msra.gmra.mrb[0].mxu1 %v6328_v37  ;;  %v8492_v37 = vld [vmem:[#allocation5 + $0x17e8] ss:$16 sps:$4 sm:$0xff]  }
 0x341   :  { %5293 = vmatpush1.bf16.msra.mxu0 %v8399_v38  ;;  %5785 = vmatpush1.bf16.msra.mxu1 %v8402_v39  ;;  %v8497_v38 = vld [vmem:[#allocation8 + $0x40] sm:$0xff]  }
 0x342   :  { %5294 = vmatprep.subr.bf16.mxu0 %v8407_v40  ;;  %5786 = vmatprep.subr.bf16.mxu1 %v8410_v22  ;;  %v8498_v39 = vld [vmem:[#allocation8 + $0xc0] sm:$0xff]   ;;  %v6330_v40 = vcombine.low %v8921_v19, %v8921_v19  ;;  %v8507_v19 = vld [vmem:[#allocation8 + $0x10] sm:$0xff]  }
 0x343   :  { %5324 = vmatprep.mubr.bf16.mxu0 %v6331_v41  ;;  %5816 = vmatprep.mubr.bf16.mxu1 %v6331_v41  ;;  %v8499_v22 = vld [vmem:[#allocation8] sm:$0xff]  }
 0x344   :  { %v8500_v41 = vld [vmem:[#allocation8 + $0x80] sm:$0xff]  }
 0x345   :  { %5295 = vmatpush1.bf16.msra.mxu0 %v8405_v42  ;;  %5787 = vmatpush1.bf16.msra.mxu1 %v8408_v43  ;;  %v8501_v42 = vld [vmem:[#allocation8 + $0x48] sm:$0xff]  }
 0x346   :  { %5296 = vmatprep.subr.bf16.mxu0 %v8413_v25  ;;  %5788 = vmatprep.subr.bf16.mxu1 %v8416_v44  ;;  %v8502_v43 = vld [vmem:[#allocation8 + $0xc8] sm:$0xff]  }
 0x347   :  { %v8503_v25 = vld [vmem:[#allocation8 + $0x8] sm:$0xff]  }
 0x348   :  { %v8504_v44 = vld [vmem:[#allocation8 + $0x88] sm:$0xff]  }
 0x349   :  { %5297 = vmatpush1.bf16.msra.mxu0 %v8411_v45  ;;  %5789 = vmatpush1.bf16.msra.mxu1 %v8414_v46  ;;  %v8505_v45 = vld [vmem:[#allocation8 + $0x50] sm:$0xff]  }
 0x34a   :  { %5298 = vmatprep.subr.bf16.mxu0 %v8419_v47  ;;  %5790 = vmatprep.subr.bf16.mxu1 %v8422_v48  ;;  %v8506_v46 = vld [vmem:[#allocation8 + $0xd0] sm:$0xff]   ;;  %v8509_v48 = vld [vmem:[#allocation8 + $0x58] sm:$0xff]  }
 0x34b   :  { %v8508_v47 = vld [vmem:[#allocation8 + $0x90] sm:$0xff]  }
 0x34d   :  { %5299 = vmatpush1.bf16.msra.mxu0 %v8417_v49  ;;  %5791 = vmatpush1.bf16.msra.mxu1 %v8420_v50  ;;  %v8510_v49 = vld [vmem:[#allocation8 + $0xd8] sm:$0xff]  }
 0x34e   :  { %5300 = vmatprep.subr.bf16.mxu0 %v8425_v51  ;;  %5792 = vmatprep.subr.bf16.mxu1 %v8428_v52  ;;  %v8511_v50 = vld [vmem:[#allocation8 + $0x18] sm:$0xff]   ;;  %v8513_v52 = vld [vmem:[#allocation8 + $0x60] sm:$0xff]  }
 0x34f   :  { %v8512_v51 = vld [vmem:[#allocation8 + $0x98] sm:$0xff]  }
 0x351   :  { %5301 = vmatpush1.bf16.msra.mxu0 %v8423_v53  ;;  %5793 = vmatpush1.bf16.msra.mxu1 %v8426_v54  ;;  %v8514_v53 = vld [vmem:[#allocation8 + $0xe0] sm:$0xff]  }
 0x352   :  { %5302 = vmatprep.subr.bf16.mxu0 %v8431_v55  ;;  %5794 = vmatprep.subr.bf16.mxu1 %v8434_v56  ;;  %v8515_v54 = vld [vmem:[#allocation8 + $0x20] sm:$0xff]   ;;  %v8517_v56 = vld [vmem:[#allocation8 + $0x68] sm:$0xff]  }
 0x353   :  { %v8516_v55 = vld [vmem:[#allocation8 + $0xa0] sm:$0xff]  }
 0x355   :  { %5303 = vmatpush1.bf16.msra.mxu0 %v8429_v57  ;;  %5795 = vmatpush1.bf16.msra.mxu1 %v8432_v58  ;;  %v8518_v57 = vld [vmem:[#allocation8 + $0xe8] sm:$0xff]  }
 0x356   :  { %5304 = vmatprep.subr.bf16.mxu0 %v8437_v59  ;;  %5796 = vmatprep.subr.bf16.mxu1 %v8440_v60  ;;  %v8519_v58 = vld [vmem:[#allocation8 + $0x28] sm:$0xff]   ;;  %v8521_v60 = vld [vmem:[#allocation8 + $0x70] sm:$0xff]  }
 0x357   :  { %v8520_v59 = vld [vmem:[#allocation8 + $0xa8] sm:$0xff]  }
 0x359   :  { %5305 = vmatpush1.bf16.msra.mxu0 %v8435_v61  ;;  %5797 = vmatpush1.bf16.msra.mxu1 %v8438_v62  ;;  %v8522_v61 = vld [vmem:[#allocation8 + $0xf0] sm:$0xff]  }
 0x35a   :  { %5306 = vmatprep.subr.bf16.mxu0 %v8443_v63  ;;  %5798 = vmatprep.subr.bf16.mxu1 %v8446_v0  ;;  %v8523_v62 = vld [vmem:[#allocation8 + $0x30] sm:$0xff]   ;;  %v8525_v0 = vld [vmem:[#allocation8 + $0x78] sm:$0xff]  }
 0x35b   :  { %v8524_v63 = vld [vmem:[#allocation8 + $0xb0] sm:$0xff]  }
 0x35d   :  { %5307 = vmatpush1.bf16.msra.mxu0 %v8441_v1  ;;  %5799 = vmatpush1.bf16.msra.mxu1 %v8444_v2  ;;  %v8526_v1 = vld [vmem:[#allocation8 + $0xf8] sm:$0xff]  }
 0x35e   :  { %5308 = vmatprep.subr.bf16.mxu0 %v8449_v3  ;;  %5800 = vmatprep.subr.bf16.mxu1 %v8452_v4  ;;  %v8527_v2 = vld [vmem:[#allocation8 + $0x38] sm:$0xff]   ;;  %v8734_v4 = vmov 0.0  }
 0x35f   :  { %v8528_v3 = vld [vmem:[#allocation8 + $0xb8] sm:$0xff]  }
 0x361   :  { %5309 = vmatpush1.bf16.msra.mxu0 %v8447_v5  ;;  %5801 = vmatpush1.bf16.msra.mxu1 %v8450_v6  ;;  %v897_v5 = vlaneseq }
 0x362   :  { %5310 = vmatprep.subr.bf16.mxu0 %v8455_v7  ;;  %5802 = vmatprep.subr.bf16.mxu1 %v8458_v8 }
 0x363   :  { %v898_v6 = vshrl.u32 %v897_v5, 7 }
 0x365   :  { %5311 = vmatpush1.bf16.msra.mxu0 %v8453_v9  ;;  %5803 = vmatpush1.bf16.msra.mxu1 %v8456_v10  ;;  %v899_v7 = vsub.s32 0, %v898_v6  ;;  %v907_v8 = vsub.s32 2, %v898_v6  ;;  %v895_v9 = vld [vmem:[#allocation7] sm:$0xf]  ;;  %v903_v10 = vsub.s32 1, %v898_v6 }
 0x366   :  { %5312 = vmatprep.subr.bf16.mxu0 %v8461_v12  ;;  %5804 = vmatprep.subr.bf16.mxu1 %v8464_v13  ;;  %v911_v12 = vsub.s32 3, %v898_v6 }
 0x367   :  { %v900_v13 = vrot.slane %v895_v9, %v899_v7 }
 0x369   :  { %5313 = vmatpush1.bf16.msra.mxu0 %v8459_v15  ;;  %5805 = vmatpush1.bf16.msra.mxu1 %v8462_v16  ;;  %v908_v15 = vrot.slane %v895_v9, %v907_v8  ;;  %v904_v16 = vrot.slane %v895_v9, %v903_v10 }
 0x36a   :  { %5314 = vmatprep.subr.bf16.mxu0 %v8467_v18  ;;  %5806 = vmatprep.subr.bf16.mxu1 %v8470_v20  ;;  %v912_v18 = vrot.slane %v895_v9, %v911_v12 }
 0x36d   :  { %5315 = vmatpush1.bf16.msra.mxu0 %v8465_v11  ;;  %5807 = vmatpush1.bf16.msra.mxu1 %v8468_v21 }
 0x36e   :  { %5316 = vmatprep.subr.bf16.mxu0 %v8473_v14  ;;  %5808 = vmatprep.subr.bf16.mxu1 %v8476_v23 }
 0x371   :  { %5317 = vmatpush1.bf16.msra.mxu0 %v8471_v24  ;;  %5809 = vmatpush1.bf16.msra.mxu1 %v8474_v17 }
 0x372   :  { %5318 = vmatprep.subr.bf16.mxu0 %v8479_v26  ;;  %5810 = vmatprep.subr.bf16.mxu1 %v8482_v27 }
 0x375   :  { %5319 = vmatpush1.bf16.msra.mxu0 %v8477_v28  ;;  %5811 = vmatpush1.bf16.msra.mxu1 %v8480_v29 }
 0x376   :  { %5320 = vmatprep.subr.bf16.mxu0 %v8485_v30  ;;  %5812 = vmatprep.subr.bf16.mxu1 %v8488_v31 }
 0x379   :  { %5321 = vmatpush1.bf16.msra.mxu0 %v8483_v32  ;;  %5813 = vmatpush1.bf16.msra.mxu1 %v8486_v33 }
 0x37a   :  { %5322 = vmatprep.subr.bf16.mxu0 %v8491_v34  ;;  %5814 = vmatprep.subr.bf16.mxu1 %v8494_v35 }
 0x37d   :  { %5323 = vmatpush1.bf16.msra.mxu0 %v8489_v36  ;;  %5815 = vmatpush1.bf16.msra.mxu1 %v8492_v37  ;;  %v8529_v37 = vld [vmem:[#allocation11] sm:$0xff]  }
 0x37e   :  { %7142 = vmatprep.subr.bf16.mxu0 %v8497_v38  ;;  %7164 = vmatprep.subr.bf16.mxu1 %v8498_v39 }
 0x380   :  { %5325 = vmatmul.mubr.bf16.vlgmr.msra.gmra.mrb[0].mxu0 %v6330_v40  ;;  %5817 = vmatmul.mubr.bf16.vlgmr.msra.gmra.mrb[0].mxu1 %v6330_v40  ;;  %v8530_v40 = vld [vmem:[#allocation11 + $0x8] sm:$0xff]  }
 0x381   :  { %7143 = vmatpush3.bf16.msra.mxu0 %v8499_v22  ;;  %7165 = vmatpush3.bf16.msra.mxu1 %v8500_v41  ;;  %v8531_v22 = vld [vmem:[#allocation11 + $0x10] sm:$0xff]   ;;  %v8532_v41 = vld [vmem:[#allocation11 + $0x18] sm:$0xff]  }
 0x382   :  { %7144 = vmatprep.subr.bf16.mxu0 %v8501_v42  ;;  %7166 = vmatprep.subr.bf16.mxu1 %v8502_v43  ;;  %v8533_v42 = vld [vmem:[#allocation11 + $0x20] sm:$0xff]   ;;  %v8534_v43 = vld [vmem:[#allocation11 + $0x28] sm:$0xff]  }
 0x385   :  { %7145 = vmatpush3.bf16.msra.mxu0 %v8503_v25  ;;  %7167 = vmatpush3.bf16.msra.mxu1 %v8504_v44  ;;  %v8535_v25 = vld [vmem:[#allocation11 + $0x30] sm:$0xff]   ;;  %v8536_v44 = vld [vmem:[#allocation11 + $0x38] sm:$0xff]  }
 0x386   :  { %7146 = vmatprep.subr.bf16.mxu0 %v8505_v45  ;;  %7168 = vmatprep.subr.bf16.mxu1 %v8506_v46 }
 0x389   :  { %7147 = vmatpush3.bf16.msra.mxu0 %v8507_v19  ;;  %7169 = vmatpush3.bf16.msra.mxu1 %v8508_v47  ;;  %v7100_v19 = vld [vmem:[#allocation10] ss:$0 sm:$0xff] }
 0x38a   :  { %7148 = vmatprep.subr.bf16.mxu0 %v8509_v48  ;;  %7170 = vmatprep.subr.bf16.mxu1 %v8510_v49 }
 0x38d   :  { %7149 = vmatpush3.bf16.msra.mxu0 %v8511_v50  ;;  %7171 = vmatpush3.bf16.msra.mxu1 %v8512_v51 }
 0x38e   :  { %7150 = vmatprep.subr.bf16.mxu0 %v8513_v52  ;;  %7172 = vmatprep.subr.bf16.mxu1 %v8514_v53 }
 0x391   :  { %7151 = vmatpush3.bf16.msra.mxu0 %v8515_v54  ;;  %7173 = vmatpush3.bf16.msra.mxu1 %v8516_v55 }
 0x392   :  { %7152 = vmatprep.subr.bf16.mxu0 %v8517_v56  ;;  %7174 = vmatprep.subr.bf16.mxu1 %v8518_v57 }
 0x395   :  { %7153 = vmatpush3.bf16.msra.mxu0 %v8519_v58  ;;  %7175 = vmatpush3.bf16.msra.mxu1 %v8520_v59  ;;  %v7133_v59 = vld [vmem:[#allocation13] ss:$0 sm:$0xff] }
 0x396   :  { %7154 = vmatprep.subr.bf16.mxu0 %v8521_v60  ;;  %7176 = vmatprep.subr.bf16.mxu1 %v8522_v61 }
 0x399   :  { %7155 = vmatpush3.bf16.msra.mxu0 %v8523_v62  ;;  %7177 = vmatpush3.bf16.msra.mxu1 %v8524_v63 }
 0x39a   :  { %7156 = vmatprep.subr.bf16.mxu0 %v8525_v0  ;;  %7178 = vmatprep.subr.bf16.mxu1 %v8526_v1 }
 0x39d   :  { %7157 = vmatpush3.bf16.msra.mxu0 %v8527_v2  ;;  %7179 = vmatpush3.bf16.msra.mxu1 %v8528_v3 }
 0x39e   :  { %7195 = vmatprep.subr.bf16.mxu0 %v8734_v4 }
 0x453   :  { %v5326_v20 = vpop.f32.mrb[0].mxu0  ;;  %v5818_v11 = vpop.f32.mrb[0].mxu1 }
 0x454   :  { %v7215_v21 = vadd.f32 %v5326_v20, %v900_v13  ;;  %v7217_v14 = vadd.f32 %v5818_v11, %v908_v15  ;;  %v5328_v23 = vpop.f32.mrb[1].mxu0  ;;  %v5820_v24 = vpop.f32.mrb[1].mxu1 }
 0x455   :  { %v7216_v17 = vadd.f32 %v5328_v23, %v904_v16  ;;  %v7218_v26 = vadd.f32 %v5820_v24, %v912_v18  ;;  %v5330_v27 = vpop.f32.mrb[2].mxu0  ;;  %v5822_v28 = vpop.f32.mrb[2].mxu1 }
 0x456   :  { %v5825_v29 = vmax.f32 %v7215_v21, 0.0  ;;  %v5827_v30 = vmax.f32 %v7217_v14, 0.0  ;;  %v5331_v31 = vpop.f32.mrb[3].mxu0  ;;  %v5823_v32 = vpop.f32.mrb[3].mxu1 }
 0x457   :  { %v5826_v33 = vmax.f32 %v7216_v17, 0.0  ;;  %v5828_v34 = vmax.f32 %v7218_v26, 0.0 }
 0x458   :  { %v5829_v38 = vpack.c.bf16 %v5825_v29, %v5825_v29  ;;  %v5831_v39 = vpack.c.bf16 %v5827_v30, %v5827_v30 }
 0x459   :  { %v5830_v35 = vpack.c.bf16 %v5826_v33, %v5826_v33  ;;  %v5832_v36 = vpack.c.bf16 %v5828_v34, %v5828_v34 }
 0x45b   :  { %6128 = vmatprep.mubr.bf16.mxu0 %v5830_v35  ;;  %6168 = vmatprep.mubr.bf16.mxu1 %v5832_v36 }
 0x45c   :  { %6129 = vmatmul.mubr.bf16.vlgmr.msra.gmra.mrb[4].mxu0 %v5829_v38  ;;  %6169 = vmatmul.mubr.bf16.vlgmr.msra.gmra.mrb[4].mxu1 %v5831_v39 }
 0x45d   :  { %7196 = vmatpush3.bf16.msra.mxu0 %v8529_v37  ;;  %7211 = vmatprep.mubr.msk.bf16.mxu0 %vm8735_vm0, %v8734_v4 }
 0x45e   :  { %7197 = vmatprep.subr.bf16.mxu0 %v8734_v4 }
 0x461   :  { %7198 = vmatpush3.bf16.msra.mxu0 %v8530_v40 }
 0x462   :  { %7199 = vmatprep.subr.bf16.mxu0 %v8734_v4 }
 0x465   :  { %7200 = vmatpush3.bf16.msra.mxu0 %v8531_v22 }
 0x466   :  { %7201 = vmatprep.subr.bf16.mxu0 %v8734_v4 }
 0x469   :  { %7202 = vmatpush3.bf16.msra.mxu0 %v8532_v41 }
 0x46a   :  { %7203 = vmatprep.subr.bf16.mxu0 %v8734_v4 }
 0x46d   :  { %7204 = vmatpush3.bf16.msra.mxu0 %v8533_v42 }
 0x46e   :  { %7205 = vmatprep.subr.bf16.mxu0 %v8734_v4 }
 0x471   :  { %7206 = vmatpush3.bf16.msra.mxu0 %v8534_v43 }
 0x472   :  { %7207 = vmatprep.subr.bf16.mxu0 %v8734_v4 }
 0x475   :  { %7208 = vmatpush3.bf16.msra.mxu0 %v8535_v25 }
 0x476   :  { %7209 = vmatprep.subr.bf16.mxu0 %v8734_v4 }
 0x479   :  { %7210 = vmatpush3.bf16.msra.mxu0 %v8536_v44 }
 0x52f   :  { %v7158_v45 = vpop.f32.mrb[4].mxu0  ;;  %v7180_v46 = vpop.f32.mrb[4].mxu1 }
 0x530   :  { %v7159_v47 = vpop.f32.mrb[5].mxu0  ;;  %v7181_v48 = vpop.f32.mrb[5].mxu1 }
 0x531   :  { %v7160_v49 = vadd.f32 %v7159_v47, %v7158_v45  ;;  %v7182_v50 = vadd.f32 %v7181_v48, %v7180_v46  ;;  %v7161_v51 = vpop.f32.mrb[6].mxu0  ;;  %v7183_v52 = vpop.f32.mrb[6].mxu1 }
 0x532   :  { %v7162_v53 = vpop.f32.mrb[7].mxu0  ;;  %v7184_v54 = vpop.f32.mrb[7].mxu1 }
 0x533   :  { %v6131_v55 = vadd.f32 %v7160_v49, %v7100_v19 }
 0x535   :  { %v6171_v56 = vadd.f32 %v7182_v50, %v6131_v55 }
 0x537   :  { %v6176_v57 = vmax.f32 %v6171_v56, 0.0 }
 0x539   :  { %v6177_v58 = vpack.c.bf16 %v6176_v57, %v6176_v57 }
 0x53b   :  { %7212 = vmatmul.mubr.bf16.vlgmr.msra.gmra.mrb[8].mxu0 %v6177_v58 }
 0x60e   :  { %v6283_v60 = vpop.f32.mrb[8].mxu0 }
 0x60f   :  { %v6284_v61 = vadd.f32 %v7133_v59, %v6283_v60  ;;  %v7213_v62 = vpop.f32.mrb[9].mxu0 }
 0x610   :  { %v6286_v63 = vpop.f32.mrb[10].mxu0 }
 0x611   :  { %6289 = vst [vmem:[#allocation14] sm:$0xff] %v6284_v61  ;;  %v7214_v0 = vpop.f32.mrb[11].mxu0 }
 0x612   :  { %8702 = shalt.err (!%p8699_p4)
}
 0x613   :  { %s8703_s15 = scalar_lea.hbm %s8946_s7, 128 }
 0x614   :  { %p8704_p5 = scmp.ne.s32.totalorder %s8946_s7, %s8703_s15  ;;  %p8707_p6 = scmp.lt.u32.totalorder %s8703_s15, %s8946_s7 }
 0x616   :  { %p8709_p7 = pnand %p8707_p6, %p8704_p5 }
 0x618   :  { %8712 = shalt.err (!%p8709_p7)
}
 0x619   :  { %6299 = dma.vmem_to_hbm [thread:$0]  %s6297_s13, 128, %s8946_s7, [#allocation4]  }
 0x61a   :  { %8721 = dma.done.wait [#allocation4], 128  }
 0x61b   :  { %8722 = vsyncadd [#allocation4], 4294967168 }
 0x61c   :  { %6303 = vsyncpa [#allocation3], 1 }
 0x61d   :  { %6304 = vsyncpa [#allocation6], 1 }
 0x61e   :  { %6305 = vsyncpa [#allocation9], 1 }
 0x61f   :  { %6306 = vsyncpa [#allocation12], 1 }
 0x620   :  { %6307 = vsyncpa [#allocation4], 1 }

</bundles_post_ra>
